<compile_context>
chip_gen: v5e
topology: v5e:2x2
jax: 0.10.0
libtpu: 0.0.40
codegen_flags: <defaults>
</compile_context>

<pallas_src>
import functools

import numpy as np
import jax
import jax.numpy as jnp
from jax.experimental import pallas as pl
from jax.experimental.pallas import tpu as pltpu


# ---------------------------------------------------------------------------
# Kernel 1: bn1+relu -> conv1 (3x3, stride 1, pad 1) + bias -> bn2+relu.
# Output is conv2's zero-padded (P1, Cmid) flat layout (bf16), one aligned store.
# ---------------------------------------------------------------------------
def _conv1_fused_kernel(x_ref, bmask_ref, s1_ref, t1_ref, w1_ref, b1_ref,
                        s2_ref, t2_ref, obmask_ref, o_ref, *, Wp, P1):
    # x_ref     : (1, L, Cin)   bf16  [Wp+1 zero rows | zero-padded image flat | zero slack]
    # bmask_ref : (L, 1)        f32   1.0 on interior pixels, 0.0 on pad/slack rows
    # w1_ref    : (3, 3, Cin, Cmid)  bf16
    # obmask_ref: (P1, 1)       f32   1.0 on interior output rows, 0.0 on pad/slack rows
    # o_ref     : (1, P1, Cmid) bf16  conv2's zero-padded, already-activated input
    x = x_ref[0].astype(jnp.float32)
    act = jnp.maximum(x * s1_ref[...] + t1_ref[...], 0.0)        # bn1 + relu fused into load
    act = (act * bmask_ref[...]).astype(jnp.bfloat16)             # exact zeros on padding

    acc = None
    for dh in range(3):                                            # implicit im2col: 9 shifted
        for dw in range(3):                                        # slices of the flat padded
            shift = dh * Wp + dw                                   # image, 9 MXU matmuls
            part = jnp.dot(act[shift:shift + P1, :], w1_ref[dh, dw],
                           preferred_element_type=jnp.float32)
            acc = part if acc is None else acc + part

    h = acc + b1_ref[...]                                          # conv1 bias
    h = jnp.maximum(h * s2_ref[...] + t2_ref[...], 0.0)            # bn2 + relu epilogue
    o_ref[0] = (h * obmask_ref[...]).astype(o_ref.dtype)           # single aligned full store


# ---------------------------------------------------------------------------
# Kernel 2, stride == 1: conv2 via flat-shift + bias + shortcut + residual add.
# ---------------------------------------------------------------------------
def _make_conv2_s1_kernel(conv_sc, Wp, M1):
    def compute(a2p_ref, xq_ref, w2_ref, b2_ref, wsc_ref, bsc_ref, o_ref):
        a2 = a2p_ref[0]                                            # (P1, Cmid) bf16, padded
        acc = None
        for dh in range(3):
            for dw in range(3):
                shift = dh * Wp + dw
                part = jnp.dot(a2[shift:shift + M1, :], w2_ref[dh, dw],
                               preferred_element_type=jnp.float32)
                acc = part if acc is None else acc + part
        out = acc + b2_ref[...]                                    # conv2 bias
        xres = xq_ref[0, 2 * Wp + 2:2 * Wp + 2 + M1, :]            # x at the output positions
        if conv_sc:                                                # fused 1x1-conv shortcut
            sc = jnp.dot(xres, wsc_ref[...],
                         preferred_element_type=jnp.float32) + bsc_ref[...]
        else:                                                      # identity residual
            sc = xres.astype(jnp.float32)
        o_ref[0] = (out + sc).astype(o_ref.dtype)                  # fused residual add

    if conv_sc:
        def kernel(a2p, xq, w2, b2, wsc, bsc, o):
            compute(a2p, xq, w2, b2, wsc, bsc, o)
    else:
        def kernel(a2p, xq, w2, b2, o):
            compute(a2p, xq, w2, b2, None, None, o)
    return kernel


# ---------------------------------------------------------------------------
# Kernel 2, stride == 2: conv2 on the column-folded activation (6 taps, K=2*Cmid)
#                        + bias + 1x1-conv shortcut + residual add.
# ---------------------------------------------------------------------------
def _make_conv2_s2_kernel(Ho, Wo):
    def kernel(a2f_ref, xs_ref, w2f_ref, b2_ref, wsc_ref, bsc_ref, o_ref, patch_ref):
        # a2f_ref : (1, Hp, Wg, 2*Cmid) bf16  column-folded padded activation
        # w2f_ref : (3, 2, 2*Cmid, Cout) bf16 folded weights (half of tap g=1 is zero)
        acc = None
        for dh in range(3):
            for g in range(2):
                for i in range(Ho):                                # H decimation: row gather
                    patch_ref[i * Wo:(i + 1) * Wo, :] = a2f_ref[0, 2 * i + dh, g:g + Wo, :]
                part = jnp.dot(patch_ref[...], w2f_ref[dh, g],
                               preferred_element_type=jnp.float32)
                acc = part if acc is None else acc + part
        out = acc + b2_ref[...]                                    # conv2 bias
        sc = jnp.dot(xs_ref[0], wsc_ref[...],
                     preferred_element_type=jnp.float32) + bsc_ref[...]
        o_ref[0] = (out + sc).astype(o_ref.dtype)
    return kernel


# ---------------------------------------------------------------------------
# Wrapper
# ---------------------------------------------------------------------------
def _fold_bn(gamma, beta, mean, var, eps=1e-5):
    scale = gamma / jnp.sqrt(var + eps)
    return scale, beta - mean * scale


def _round_up(v, m):
    return -(-v // m) * m


@functools.partial(jax.jit, static_argnums=(2,))
def wide_basic_forward(x_nchw, params, stride):
    assert stride in (1, 2)                       # TODO(synk): other strides unsupported
    x = jnp.transpose(x_nchw, (0, 2, 3, 1))       # NCHW -> NHWC
    x16 = x.astype(jnp.bfloat16)                  # bf16 activation DMA policy
    N, H, W, Cin = x.shape
    Cmid = params["conv1_w"].shape[0]
    Cout = params["conv2_w"].shape[0]
    if stride == 2:
        assert H % 2 == 0 and W % 2 == 0          # TODO(synk): odd spatial with stride 2

    Hp, Wp = H + 2, W + 2
    Ho = (H - 1) // stride + 1
    Wo = (W - 1) // stride + 1
    M1 = H * Wp                                   # width-padded flat conv2-output rows (s=1)
    lead = Wp + 1                                 # leading zero rows of the flat input
    # conv1 output rows (must cover all conv2 flat-shift reads when stride==1)
    P1 = _round_up(Hp * Wp + 2, 8) if stride == 1 else Hp * Wp
    L = _round_up(P1 + 2 * Wp + 2, 8)             # flat input length (with leading/trailing zeros)

    s1, t1 = _fold_bn(params["bn1_gamma"], params["bn1_beta"],
                      params["bn1_mean"], params["bn1_var"])
    s2, t2 = _fold_bn(params["bn2_gamma"], params["bn2_beta"],
                      params["bn2_mean"], params["bn2_var"])

    # static masks (built with numpy at trace time)
    uu = np.arange(L)
    pp, qq = (uu - lead) // Wp, (uu - lead) % Wp
    inb = (uu >= lead) & (uu < lead + Hp * Wp)
    bmask = jnp.asarray((inb & (pp >= 1) & (pp <= H) & (qq >= 1) & (qq <= W))
                        .astype(np.float32).reshape(L, 1))
    rr = np.arange(P1)
    rp, rq = rr // Wp, rr % Wp
    obmask = jnp.asarray(((rr < Hp * Wp) & (rp >= 1) & (rp <= H) & (rq >= 1) & (rq <= W))
                         .astype(np.float32).reshape(P1, 1))

    # --- kernel 1: bn1/relu -> conv1 -> bias/bn2/relu, padded flat output ----
    xpad = jnp.pad(x16, ((0, 0), (1, 1), (1, 1), (0, 0)))
    act_in = jnp.pad(xpad.reshape(N, Hp * Wp, Cin),
                     ((0, 0), (lead, L - lead - Hp * Wp), (0, 0)))      # (N, L, Cin) bf16
    w1 = jnp.transpose(params["conv1_w"], (2, 3, 1, 0)).astype(jnp.bfloat16)
    b1 = params["conv1_b"].reshape(1, Cmid)

    ce1 = pl.CostEstimate(
        flops=int(2 * N * P1 * 9 * Cin * Cmid),
        transcendentals=0,
        bytes_accessed=int(N * (L * Cin * 2 + P1 * Cmid * 2)
                           + 9 * Cin * Cmid * 2 + (L + P1) * 4))

    a2p = pl.pallas_call(
        functools.partial(_conv1_fused_kernel, Wp=Wp, P1=P1),
        out_shape=jax.ShapeDtypeStruct((N, P1, Cmid), jnp.bfloat16),
        grid=(N,),
        in_specs=[
            pl.BlockSpec((1, L, Cin), lambda n: (n, 0, 0)),
            pl.BlockSpec((L, 1), lambda n: (0, 0)),
            pl.BlockSpec((1, Cin), lambda n: (0, 0)),
            pl.BlockSpec((1, Cin), lambda n: (0, 0)),
            pl.BlockSpec((3, 3, Cin, Cmid), lambda n: (0, 0, 0, 0)),
            pl.BlockSpec((1, Cmid), lambda n: (0, 0)),
            pl.BlockSpec((1, Cmid), lambda n: (0, 0)),
            pl.BlockSpec((1, Cmid), lambda n: (0, 0)),
            pl.BlockSpec((P1, 1), lambda n: (0, 0)),
        ],
        out_specs=pl.BlockSpec((1, P1, Cmid), lambda n: (n, 0, 0)),
        compiler_params=pltpu.CompilerParams(dimension_semantics=("parallel",)),
        cost_estimate=ce1,
    )(act_in, bmask, s1.reshape(1, Cin), t1.reshape(1, Cin), w1, b1,
      s2.reshape(1, Cmid), t2.reshape(1, Cmid), obmask)

    # --- kernel 2: conv2 + bias + shortcut + residual add --------------------
    b2 = params["conv2_b"].reshape(1, Cout)
    conv_sc = (stride != 1) or (Cin != Cout)
    if conv_sc:
        wsc = params["sc_w"].reshape(Cout, Cin).T.astype(jnp.bfloat16)
        bsc = params["sc_b"].reshape(1, Cout)

    if stride == 1:
        w2 = jnp.transpose(params["conv2_w"], (2, 3, 1, 0)).astype(jnp.bfloat16)
        inputs = [a2p, act_in, w2, b2]
        in_specs = [
            pl.BlockSpec((1, P1, Cmid), lambda n: (n, 0, 0)),
            pl.BlockSpec((1, L, Cin), lambda n: (n, 0, 0)),
            pl.BlockSpec((3, 3, Cmid, Cout), lambda n: (0, 0, 0, 0)),
            pl.BlockSpec((1, Cout), lambda n: (0, 0)),
        ]
        if conv_sc:
            inputs += [wsc, bsc]
            in_specs += [pl.BlockSpec((Cin, Cout), lambda n: (0, 0)),
                         pl.BlockSpec((1, Cout), lambda n: (0, 0))]
        ce2 = pl.CostEstimate(
            flops=int(2 * N * M1 * (9 * Cmid + (Cin if conv_sc else 0)) * Cout),
            transcendentals=0,
            bytes_accessed=int(N * (P1 * Cmid * 2 + L * Cin * 2 + M1 * Cout * 4)
                               + 9 * Cmid * Cout * 2))
        outp = pl.pallas_call(
            _make_conv2_s1_kernel(conv_sc, Wp, M1),
            out_shape=jax.ShapeDtypeStruct((N, M1, Cout), jnp.float32),
            grid=(N,),
            in_specs=in_specs,
            out_specs=pl.BlockSpec((1, M1, Cout), lambda n: (n, 0, 0)),
            compiler_params=pltpu.CompilerParams(dimension_semantics=("parallel",)),
            cost_estimate=ce2,
        )(*inputs)
        out = outp.reshape(N, H, Wp, Cout)[:, :, :W, :]
    else:
        Wg = Wp // 2
        a2f = a2p.reshape(N, Hp, Wg, 2 * Cmid)                     # free column fold
        w2t = jnp.transpose(params["conv2_w"], (2, 3, 1, 0)).astype(jnp.bfloat16)  # (3,3,I,O)
        w2e = jnp.concatenate(
            [w2t, jnp.zeros((3, 1, Cmid, Cout), jnp.bfloat16)], axis=1)            # dw=3 -> 0
        w2f = w2e.reshape(3, 2, 2 * Cmid, Cout)                    # folded weights
        xs = x16[:, ::stride, ::stride, :].reshape(N, Ho * Wo, Cin)
        ce2 = pl.CostEstimate(
            flops=int(2 * N * Ho * Wo * (6 * 2 * Cmid + Cin) * Cout),
            transcendentals=0,
            bytes_accessed=int(N * (Hp * Wp * Cmid * 2 + Ho * Wo * Cin * 2
                                    + Ho * Wo * Cout * 4) + 12 * Cmid * Cout * 2))
        outp = pl.pallas_call(
            _make_conv2_s2_kernel(Ho, Wo),
            out_shape=jax.ShapeDtypeStruct((N, Ho * Wo, Cout), jnp.float32),
            grid=(N,),
            in_specs=[
                pl.BlockSpec((1, Hp, Wg, 2 * Cmid), lambda n: (n, 0, 0, 0)),
                pl.BlockSpec((1, Ho * Wo, Cin), lambda n: (n, 0, 0)),
                pl.BlockSpec((3, 2, 2 * Cmid, Cout), lambda n: (0, 0, 0, 0)),
                pl.BlockSpec((1, Cout), lambda n: (0, 0)),
                pl.BlockSpec((Cin, Cout), lambda n: (0, 0)),
                pl.BlockSpec((1, Cout), lambda n: (0, 0)),
            ],
            out_specs=pl.BlockSpec((1, Ho * Wo, Cout), lambda n: (n, 0, 0)),
            scratch_shapes=[pltpu.VMEM((Ho * Wo, 2 * Cmid), jnp.bfloat16)],
            compiler_params=pltpu.CompilerParams(dimension_semantics=("parallel",)),
            cost_estimate=ce2,
        )(a2f, xs, w2f, b2, wsc, bsc)
        out = outp.reshape(N, Ho, Wo, Cout)

    return jnp.transpose(out, (0, 3, 1, 2))                        # back to NCHW


# ---------------------------------------------------------------------------
# Pure-JAX reference (mirrors the bf16-activation / f32-accumulation policy)
# ---------------------------------------------------------------------------
def reference_forward(x_nchw, params, stride, eps=1e-5):
    x = jnp.transpose(x_nchw, (0, 2, 3, 1))
    x16 = x.astype(jnp.bfloat16)
    xf = x16.astype(jnp.float32)
    Cin = x.shape[-1]
    Cout = params["conv2_w"].shape[0]

    def conv(v_bf16, w_oihw, bias, s, pad):
        w = jnp.transpose(w_oihw, (2, 3, 1, 0)).astype(jnp.bfloat16)
        o = jax.lax.conv_general_dilated(
            v_bf16, w, window_strides=(s, s), padding=pad,
            dimension_numbers=("NHWC", "HWIO", "NHWC"),
            preferred_element_type=jnp.float32)
        return o + bias.reshape(1, 1, 1, -1)

    s1, t1 = _fold_bn(params["bn1_gamma"], params["bn1_beta"],
                      params["bn1_mean"], params["bn1_var"], eps)
    s2, t2 = _fold_bn(params["bn2_gamma"], params["bn2_beta"],
                      params["bn2_mean"], params["bn2_var"], eps)

    a1 = jnp.maximum(xf * s1 + t1, 0.0).astype(jnp.bfloat16)
    c1 = conv(a1, params["conv1_w"], params["conv1_b"], 1, [(1, 1), (1, 1)])
    a2 = jnp.maximum(c1 * s2 + t2, 0.0).astype(jnp.bfloat16)
    c2 = conv(a2, params["conv2_w"], params["conv2_b"], stride, [(1, 1), (1, 1)])
    if stride != 1 or Cin != Cout:
        sc = conv(x16, params["sc_w"], params["sc_b"], stride, [(0, 0), (0, 0)])
    else:
        sc = xf
    return jnp.transpose(c2 + sc, (0, 3, 1, 2))


def make_params(key, in_planes, planes):
    ks = jax.random.split(key, 10)
    p = {
        "bn1_gamma": jax.random.normal(ks[0], (in_planes,)) * 0.1 + 1.0,
        "bn1_beta": jax.random.normal(ks[1], (in_planes,)) * 0.1,
        "bn1_mean": jax.random.normal(ks[2], (in_planes,)) * 0.1,
        "bn1_var": jnp.abs(jax.random.normal(ks[3], (in_planes,))) * 0.1 + 1.0,
        "conv1_w": jax.random.normal(ks[4], (planes, in_planes, 3, 3)) * 0.1,
        "conv1_b": jax.random.normal(ks[5], (planes,)) * 0.1,
        "bn2_gamma": jnp.ones((planes,)) * 1.05,
        "bn2_beta": jnp.ones((planes,)) * 0.02,
        "bn2_mean": jnp.zeros((planes,)) + 0.01,
        "bn2_var": jnp.ones((planes,)) * 0.9,
        "conv2_w": jax.random.normal(ks[6], (planes, planes, 3, 3)) * 0.1,
        "conv2_b": jax.random.normal(ks[7], (planes,)) * 0.1,
        "sc_w": jax.random.normal(ks[8], (planes, in_planes, 1, 1)) * 0.1,
        "sc_b": jax.random.normal(ks[9], (planes,)) * 0.1,
    }
    return jax.tree_util.tree_map(lambda a: a.astype(jnp.float32), p)


if __name__ == "__main__":
    key = jax.random.PRNGKey(0)
    kx, kp, kx2, kp2 = jax.random.split(key, 4)

    # Config 1: strided block with 1x1-conv shortcut (the canonical downsampling block).
    N, in_planes, planes, H, W, stride = 2, 4, 8, 16, 16, 2
    x = jax.random.normal(kx, (N, in_planes, H, W), dtype=jnp.float32)
    params = make_params(kp, in_planes, planes)
    out = jax.block_until_ready(wide_basic_forward(x, params, stride))
    ref = jax.block_until_ready(reference_forward(x, params, stride))
    assert out.shape == (N, planes, H // stride, W // stride), out.shape
    np.testing.assert_allclose(np.asarray(out), np.asarray(ref), rtol=2e-3, atol=2e-3)

    # Config 2: stride-1 block with identity shortcut.
    N2, planes2, H2, W2 = 2, 8, 8, 8
    x2 = jax.random.normal(kx2, (N2, planes2, H2, W2), dtype=jnp.float32)
    params2 = make_params(kp2, planes2, planes2)
    out2 = jax.block_until_ready(wide_basic_forward(x2, params2, 1))
    ref2 = jax.block_until_ready(reference_forward(x2, params2, 1))
    np.testing.assert_allclose(np.asarray(out2), np.asarray(ref2), rtol=2e-3, atol=2e-3)

    print("KERNEL_OK")
</pallas_src>

<mosaic_0001>
module attributes {stable_mosaic.version = 11 : i64} {
  func.func @_conv1_fused_kernel(%arg0: i32, %arg1: memref<1x368x4xbf16, #tpu.memory_space<vmem>>, %arg2: memref<368x1xf32, #tpu.memory_space<vmem>>, %arg3: memref<1x4xf32, #tpu.memory_space<vmem>>, %arg4: memref<1x4xf32, #tpu.memory_space<vmem>>, %arg5: memref<3x3x4x8xbf16, #tpu.memory_space<vmem>>, %arg6: memref<1x8xf32, #tpu.memory_space<vmem>>, %arg7: memref<1x8xf32, #tpu.memory_space<vmem>>, %arg8: memref<1x8xf32, #tpu.memory_space<vmem>>, %arg9: memref<324x1xf32, #tpu.memory_space<vmem>>, %arg10: memref<1x324x8xbf16, #tpu.memory_space<vmem>>) attributes {dimension_semantics = [#tpu.dimension_semantics<parallel>], iteration_bounds = array<i64: 2>, scalar_prefetch = 0 : i64, scratch_operands = 0 : i64, tpu.core_type = #tpu.core_type<tc>, window_params = [{transform_indices = @transform_0, window_bounds = array<i64: 1, 368, 4>}, {pipeline_mode = #tpu.pipeline_mode<synchronous>, transform_indices = @transform_1, window_bounds = array<i64: 368, 1>}, {pipeline_mode = #tpu.pipeline_mode<synchronous>, transform_indices = @transform_2, window_bounds = array<i64: 1, 4>}, {pipeline_mode = #tpu.pipeline_mode<synchronous>, transform_indices = @transform_3, window_bounds = array<i64: 1, 4>}, {pipeline_mode = #tpu.pipeline_mode<synchronous>, transform_indices = @transform_4, window_bounds = array<i64: 3, 3, 4, 8>}, {pipeline_mode = #tpu.pipeline_mode<synchronous>, transform_indices = @transform_5, window_bounds = array<i64: 1, 8>}, {pipeline_mode = #tpu.pipeline_mode<synchronous>, transform_indices = @transform_6, window_bounds = array<i64: 1, 8>}, {pipeline_mode = #tpu.pipeline_mode<synchronous>, transform_indices = @transform_7, window_bounds = array<i64: 1, 8>}, {pipeline_mode = #tpu.pipeline_mode<synchronous>, transform_indices = @transform_8, window_bounds = array<i64: 324, 1>}, {transform_indices = @transform_9, window_bounds = array<i64: 1, 324, 8>}]} {
    %c0 = arith.constant 0 : index
    %c0_0 = arith.constant 0 : index
    %c0_1 = arith.constant 0 : index
    %0 = vector.load %arg1[%c0, %c0_0, %c0_1] : memref<1x368x4xbf16, #tpu.memory_space<vmem>>, vector<1x368x4xbf16>
    %1 = vector.shape_cast %0 : vector<1x368x4xbf16> to vector<368x4xbf16>
    %2 = arith.extf %1 : vector<368x4xbf16> to vector<368x4xf32>
    %c0_2 = arith.constant 0 : index
    %c0_3 = arith.constant 0 : index
    %3 = vector.load %arg3[%c0_2, %c0_3] : memref<1x4xf32, #tpu.memory_space<vmem>>, vector<1x4xf32>
    %4 = vector.broadcast %3 : vector<1x4xf32> to vector<368x4xf32>
    %5 = arith.mulf %2, %4 : vector<368x4xf32>
    %c0_4 = arith.constant 0 : index
    %c0_5 = arith.constant 0 : index
    %6 = vector.load %arg4[%c0_4, %c0_5] : memref<1x4xf32, #tpu.memory_space<vmem>>, vector<1x4xf32>
    %7 = vector.broadcast %6 : vector<1x4xf32> to vector<368x4xf32>
    %8 = arith.addf %5, %7 : vector<368x4xf32>
    %cst = arith.constant 0.000000e+00 : f32
    %9 = vector.broadcast %cst : f32 to vector<368x4xf32>
    %10 = arith.maximumf %8, %9 : vector<368x4xf32>
    %c0_6 = arith.constant 0 : index
    %c0_7 = arith.constant 0 : index
    %11 = vector.load %arg2[%c0_6, %c0_7] : memref<368x1xf32, #tpu.memory_space<vmem>>, vector<368x1xf32>
    %12 = vector.broadcast %11 : vector<368x1xf32> to vector<368x4xf32>
    %13 = arith.mulf %10, %12 : vector<368x4xf32>
    %14 = arith.truncf %13 : vector<368x4xf32> to vector<368x4xbf16>
    %15 = vector.extract_strided_slice %14 {offsets = [0, 0], sizes = [324, 4], strides = [1, 1]} : vector<368x4xbf16> to vector<324x4xbf16>
    %c0_8 = arith.constant 0 : index
    %c0_9 = arith.constant 0 : index
    %c0_10 = arith.constant 0 : index
    %c0_11 = arith.constant 0 : index
    %16 = vector.load %arg5[%c0_8, %c0_9, %c0_10, %c0_11] : memref<3x3x4x8xbf16, #tpu.memory_space<vmem>>, vector<1x1x4x8xbf16>
    %17 = vector.shape_cast %16 : vector<1x1x4x8xbf16> to vector<4x8xbf16>
    %cst_12 = arith.constant dense<0.000000e+00> : vector<324x8xf32>
    %18 = tpu.matmul %15, %17, %cst_12 {dimension_numbers = #tpu.dot_dimension_numbers<[1], [0], [0], [1], [0, 0, 1, 1], [], []>} : vector<324x4xbf16>, vector<4x8xbf16>, vector<324x8xf32> -> vector<324x8xf32>
    %19 = vector.extract_strided_slice %14 {offsets = [1, 0], sizes = [324, 4], strides = [1, 1]} : vector<368x4xbf16> to vector<324x4xbf16>
    %c0_13 = arith.constant 0 : index
    %c1 = arith.constant 1 : index
    %c0_14 = arith.constant 0 : index
    %c0_15 = arith.constant 0 : index
    %20 = vector.load %arg5[%c0_13, %c1, %c0_14, %c0_15] : memref<3x3x4x8xbf16, #tpu.memory_space<vmem>>, vector<1x1x4x8xbf16>
    %21 = vector.shape_cast %20 : vector<1x1x4x8xbf16> to vector<4x8xbf16>
    %cst_16 = arith.constant dense<0.000000e+00> : vector<324x8xf32>
    %22 = tpu.matmul %19, %21, %cst_16 {dimension_numbers = #tpu.dot_dimension_numbers<[1], [0], [0], [1], [0, 0, 1, 1], [], []>} : vector<324x4xbf16>, vector<4x8xbf16>, vector<324x8xf32> -> vector<324x8xf32>
    %23 = arith.addf %18, %22 : vector<324x8xf32>
    %24 = vector.extract_strided_slice %14 {offsets = [2, 0], sizes = [324, 4], strides = [1, 1]} : vector<368x4xbf16> to vector<324x4xbf16>
    %c0_17 = arith.constant 0 : index
    %c2 = arith.constant 2 : index
    %c0_18 = arith.constant 0 : index
    %c0_19 = arith.constant 0 : index
    %25 = vector.load %arg5[%c0_17, %c2, %c0_18, %c0_19] : memref<3x3x4x8xbf16, #tpu.memory_space<vmem>>, vector<1x1x4x8xbf16>
    %26 = vector.shape_cast %25 : vector<1x1x4x8xbf16> to vector<4x8xbf16>
    %cst_20 = arith.constant dense<0.000000e+00> : vector<324x8xf32>
    %27 = tpu.matmul %24, %26, %cst_20 {dimension_numbers = #tpu.dot_dimension_numbers<[1], [0], [0], [1], [0, 0, 1, 1], [], []>} : vector<324x4xbf16>, vector<4x8xbf16>, vector<324x8xf32> -> vector<324x8xf32>
    %28 = arith.addf %23, %27 : vector<324x8xf32>
    %29 = vector.extract_strided_slice %14 {offsets = [18, 0], sizes = [324, 4], strides = [1, 1]} : vector<368x4xbf16> to vector<324x4xbf16>
    %c1_21 = arith.constant 1 : index
    %c0_22 = arith.constant 0 : index
    %c0_23 = arith.constant 0 : index
    %c0_24 = arith.constant 0 : index
    %30 = vector.load %arg5[%c1_21, %c0_22, %c0_23, %c0_24] : memref<3x3x4x8xbf16, #tpu.memory_space<vmem>>, vector<1x1x4x8xbf16>
    %31 = vector.shape_cast %30 : vector<1x1x4x8xbf16> to vector<4x8xbf16>
    %cst_25 = arith.constant dense<0.000000e+00> : vector<324x8xf32>
    %32 = tpu.matmul %29, %31, %cst_25 {dimension_numbers = #tpu.dot_dimension_numbers<[1], [0], [0], [1], [0, 0, 1, 1], [], []>} : vector<324x4xbf16>, vector<4x8xbf16>, vector<324x8xf32> -> vector<324x8xf32>
    %33 = arith.addf %28, %32 : vector<324x8xf32>
    %34 = vector.extract_strided_slice %14 {offsets = [19, 0], sizes = [324, 4], strides = [1, 1]} : vector<368x4xbf16> to vector<324x4xbf16>
    %c1_26 = arith.constant 1 : index
    %c1_27 = arith.constant 1 : index
    %c0_28 = arith.constant 0 : index
    %c0_29 = arith.constant 0 : index
    %35 = vector.load %arg5[%c1_26, %c1_27, %c0_28, %c0_29] : memref<3x3x4x8xbf16, #tpu.memory_space<vmem>>, vector<1x1x4x8xbf16>
    %36 = vector.shape_cast %35 : vector<1x1x4x8xbf16> to vector<4x8xbf16>
    %cst_30 = arith.constant dense<0.000000e+00> : vector<324x8xf32>
    %37 = tpu.matmul %34, %36, %cst_30 {dimension_numbers = #tpu.dot_dimension_numbers<[1], [0], [0], [1], [0, 0, 1, 1], [], []>} : vector<324x4xbf16>, vector<4x8xbf16>, vector<324x8xf32> -> vector<324x8xf32>
    %38 = arith.addf %33, %37 : vector<324x8xf32>
    %39 = vector.extract_strided_slice %14 {offsets = [20, 0], sizes = [324, 4], strides = [1, 1]} : vector<368x4xbf16> to vector<324x4xbf16>
    %c1_31 = arith.constant 1 : index
    %c2_32 = arith.constant 2 : index
    %c0_33 = arith.constant 0 : index
    %c0_34 = arith.constant 0 : index
    %40 = vector.load %arg5[%c1_31, %c2_32, %c0_33, %c0_34] : memref<3x3x4x8xbf16, #tpu.memory_space<vmem>>, vector<1x1x4x8xbf16>
    %41 = vector.shape_cast %40 : vector<1x1x4x8xbf16> to vector<4x8xbf16>
    %cst_35 = arith.constant dense<0.000000e+00> : vector<324x8xf32>
    %42 = tpu.matmul %39, %41, %cst_35 {dimension_numbers = #tpu.dot_dimension_numbers<[1], [0], [0], [1], [0, 0, 1, 1], [], []>} : vector<324x4xbf16>, vector<4x8xbf16>, vector<324x8xf32> -> vector<324x8xf32>
    %43 = arith.addf %38, %42 : vector<324x8xf32>
    %44 = vector.extract_strided_slice %14 {offsets = [36, 0], sizes = [324, 4], strides = [1, 1]} : vector<368x4xbf16> to vector<324x4xbf16>
    %c2_36 = arith.constant 2 : index
    %c0_37 = arith.constant 0 : index
    %c0_38 = arith.constant 0 : index
    %c0_39 = arith.constant 0 : index
    %45 = vector.load %arg5[%c2_36, %c0_37, %c0_38, %c0_39] : memref<3x3x4x8xbf16, #tpu.memory_space<vmem>>, vector<1x1x4x8xbf16>
    %46 = vector.shape_cast %45 : vector<1x1x4x8xbf16> to vector<4x8xbf16>
    %cst_40 = arith.constant dense<0.000000e+00> : vector<324x8xf32>
    %47 = tpu.matmul %44, %46, %cst_40 {dimension_numbers = #tpu.dot_dimension_numbers<[1], [0], [0], [1], [0, 0, 1, 1], [], []>} : vector<324x4xbf16>, vector<4x8xbf16>, vector<324x8xf32> -> vector<324x8xf32>
    %48 = arith.addf %43, %47 : vector<324x8xf32>
    %49 = vector.extract_strided_slice %14 {offsets = [37, 0], sizes = [324, 4], strides = [1, 1]} : vector<368x4xbf16> to vector<324x4xbf16>
    %c2_41 = arith.constant 2 : index
    %c1_42 = arith.constant 1 : index
    %c0_43 = arith.constant 0 : index
    %c0_44 = arith.constant 0 : index
    %50 = vector.load %arg5[%c2_41, %c1_42, %c0_43, %c0_44] : memref<3x3x4x8xbf16, #tpu.memory_space<vmem>>, vector<1x1x4x8xbf16>
    %51 = vector.shape_cast %50 : vector<1x1x4x8xbf16> to vector<4x8xbf16>
    %cst_45 = arith.constant dense<0.000000e+00> : vector<324x8xf32>
    %52 = tpu.matmul %49, %51, %cst_45 {dimension_numbers = #tpu.dot_dimension_numbers<[1], [0], [0], [1], [0, 0, 1, 1], [], []>} : vector<324x4xbf16>, vector<4x8xbf16>, vector<324x8xf32> -> vector<324x8xf32>
    %53 = arith.addf %48, %52 : vector<324x8xf32>
    %54 = vector.extract_strided_slice %14 {offsets = [38, 0], sizes = [324, 4], strides = [1, 1]} : vector<368x4xbf16> to vector<324x4xbf16>
    %c2_46 = arith.constant 2 : index
    %c2_47 = arith.constant 2 : index
    %c0_48 = arith.constant 0 : index
    %c0_49 = arith.constant 0 : index
    %55 = vector.load %arg5[%c2_46, %c2_47, %c0_48, %c0_49] : memref<3x3x4x8xbf16, #tpu.memory_space<vmem>>, vector<1x1x4x8xbf16>
    %56 = vector.shape_cast %55 : vector<1x1x4x8xbf16> to vector<4x8xbf16>
    %cst_50 = arith.constant dense<0.000000e+00> : vector<324x8xf32>
    %57 = tpu.matmul %54, %56, %cst_50 {dimension_numbers = #tpu.dot_dimension_numbers<[1], [0], [0], [1], [0, 0, 1, 1], [], []>} : vector<324x4xbf16>, vector<4x8xbf16>, vector<324x8xf32> -> vector<324x8xf32>
    %58 = arith.addf %53, %57 : vector<324x8xf32>
    %c0_51 = arith.constant 0 : index
    %c0_52 = arith.constant 0 : index
    %59 = vector.load %arg6[%c0_51, %c0_52] : memref<1x8xf32, #tpu.memory_space<vmem>>, vector<1x8xf32>
    %60 = vector.broadcast %59 : vector<1x8xf32> to vector<324x8xf32>
    %61 = arith.addf %58, %60 : vector<324x8xf32>
    %c0_53 = arith.constant 0 : index
    %c0_54 = arith.constant 0 : index
    %62 = vector.load %arg7[%c0_53, %c0_54] : memref<1x8xf32, #tpu.memory_space<vmem>>, vector<1x8xf32>
    %63 = vector.broadcast %62 : vector<1x8xf32> to vector<324x8xf32>
    %64 = arith.mulf %61, %63 : vector<324x8xf32>
    %c0_55 = arith.constant 0 : index
    %c0_56 = arith.constant 0 : index
    %65 = vector.load %arg8[%c0_55, %c0_56] : memref<1x8xf32, #tpu.memory_space<vmem>>, vector<1x8xf32>
    %66 = vector.broadcast %65 : vector<1x8xf32> to vector<324x8xf32>
    %67 = arith.addf %64, %66 : vector<324x8xf32>
    %cst_57 = arith.constant 0.000000e+00 : f32
    %68 = vector.broadcast %cst_57 : f32 to vector<324x8xf32>
    %69 = arith.maximumf %67, %68 : vector<324x8xf32>
    %c0_58 = arith.constant 0 : index
    %c0_59 = arith.constant 0 : index
    %70 = vector.load %arg9[%c0_58, %c0_59] : memref<324x1xf32, #tpu.memory_space<vmem>>, vector<324x1xf32>
    %71 = vector.broadcast %70 : vector<324x1xf32> to vector<324x8xf32>
    %72 = arith.mulf %69, %71 : vector<324x8xf32>
    %73 = arith.truncf %72 : vector<324x8xf32> to vector<324x8xbf16>
    %c0_60 = arith.constant 0 : index
    %c0_61 = arith.constant 0 : index
    %c0_62 = arith.constant 0 : index
    %74 = vector.load %arg10[%c0_60, %c0_61, %c0_62] : memref<1x324x8xbf16, #tpu.memory_space<vmem>>, vector<1x324x8xbf16>
    %75 = vector.shape_cast %74 : vector<1x324x8xbf16> to vector<324x8xbf16>
    %76 = vector.shape_cast %73 : vector<324x8xbf16> to vector<1x324x8xbf16>
    tpu.vector_store %arg10[%c0_60, %c0_61, %c0_62], %76 {strides = array<i32>} : memref<1x324x8xbf16, #tpu.memory_space<vmem>>, vector<1x324x8xbf16>,
    return
  }
  func.func @transform_0(%arg0: i32) -> (i32, i32, i32) {
    %c0_i32 = arith.constant 0 : i32
    %c0_i32_0 = arith.constant 0 : i32
    %c0_i32_1 = arith.constant 0 : i32
    return %arg0, %c0_i32, %c0_i32_0 : i32, i32, i32
  }
  func.func @transform_1(%arg0: i32) -> (i32, i32) {
    %c0_i32 = arith.constant 0 : i32
    %c0_i32_0 = arith.constant 0 : i32
    %c0_i32_1 = arith.constant 0 : i32
    return %c0_i32, %c0_i32_0 : i32, i32
  }
  func.func @transform_2(%arg0: i32) -> (i32, i32) {
    %c0_i32 = arith.constant 0 : i32
    %c0_i32_0 = arith.constant 0 : i32
    %c0_i32_1 = arith.constant 0 : i32
    return %c0_i32, %c0_i32_0 : i32, i32
  }
  func.func @transform_3(%arg0: i32) -> (i32, i32) {
    %c0_i32 = arith.constant 0 : i32
    %c0_i32_0 = arith.constant 0 : i32
    %c0_i32_1 = arith.constant 0 : i32
    return %c0_i32, %c0_i32_0 : i32, i32
  }
  func.func @transform_4(%arg0: i32) -> (i32, i32, i32, i32) {
    %c0_i32 = arith.constant 0 : i32
    %c0_i32_0 = arith.constant 0 : i32
    %c0_i32_1 = arith.constant 0 : i32
    %c0_i32_2 = arith.constant 0 : i32
    %c0_i32_3 = arith.constant 0 : i32
    return %c0_i32, %c0_i32_0, %c0_i32_1, %c0_i32_2 : i32, i32, i32, i32
  }
  func.func @transform_5(%arg0: i32) -> (i32, i32) {
    %c0_i32 = arith.constant 0 : i32
    %c0_i32_0 = arith.constant 0 : i32
    %c0_i32_1 = arith.constant 0 : i32
    return %c0_i32, %c0_i32_0 : i32, i32
  }
  func.func @transform_6(%arg0: i32) -> (i32, i32) {
    %c0_i32 = arith.constant 0 : i32
    %c0_i32_0 = arith.constant 0 : i32
    %c0_i32_1 = arith.constant 0 : i32
    return %c0_i32, %c0_i32_0 : i32, i32
  }
  func.func @transform_7(%arg0: i32) -> (i32, i32) {
    %c0_i32 = arith.constant 0 : i32
    %c0_i32_0 = arith.constant 0 : i32
    %c0_i32_1 = arith.constant 0 : i32
    return %c0_i32, %c0_i32_0 : i32, i32
  }
  func.func @transform_8(%arg0: i32) -> (i32, i32) {
    %c0_i32 = arith.constant 0 : i32
    %c0_i32_0 = arith.constant 0 : i32
    %c0_i32_1 = arith.constant 0 : i32
    return %c0_i32, %c0_i32_0 : i32, i32
  }
  func.func @transform_9(%arg0: i32) -> (i32, i32, i32) {
    %c0_i32 = arith.constant 0 : i32
    %c0_i32_0 = arith.constant 0 : i32
    %c0_i32_1 = arith.constant 0 : i32
    return %arg0, %c0_i32, %c0_i32_0 : i32, i32, i32
  }
}

module attributes {stable_mosaic.version = 11 : i64} {
  func.func @kernel(%arg0: i32, %arg1: memref<1x18x9x16xbf16, #tpu.memory_space<vmem>>, %arg2: memref<1x64x4xbf16, #tpu.memory_space<vmem>>, %arg3: memref<3x2x16x8xbf16, #tpu.memory_space<vmem>>, %arg4: memref<1x8xf32, #tpu.memory_space<vmem>>, %arg5: memref<4x8xbf16, #tpu.memory_space<vmem>>, %arg6: memref<1x8xf32, #tpu.memory_space<vmem>>, %arg7: memref<1x64x8xf32, #tpu.memory_space<vmem>>, %arg8: memref<64x16xbf16, #tpu.memory_space<vmem>>) attributes {dimension_semantics = [#tpu.dimension_semantics<parallel>], iteration_bounds = array<i64: 2>, scalar_prefetch = 0 : i64, scratch_operands = 1 : i64, tpu.core_type = #tpu.core_type<tc>, window_params = [{transform_indices = @transform_0, window_bounds = array<i64: 1, 18, 9, 16>}, {transform_indices = @transform_1, window_bounds = array<i64: 1, 64, 4>}, {pipeline_mode = #tpu.pipeline_mode<synchronous>, transform_indices = @transform_2, window_bounds = array<i64: 3, 2, 16, 8>}, {pipeline_mode = #tpu.pipeline_mode<synchronous>, transform_indices = @transform_3, window_bounds = array<i64: 1, 8>}, {pipeline_mode = #tpu.pipeline_mode<synchronous>, transform_indices = @transform_4, window_bounds = array<i64: 4, 8>}, {pipeline_mode = #tpu.pipeline_mode<synchronous>, transform_indices = @transform_5, window_bounds = array<i64: 1, 8>}, {transform_indices = @transform_6, window_bounds = array<i64: 1, 64, 8>}]} {
    %c0 = arith.constant 0 : index
    %c0_0 = arith.constant 0 : index
    %c0_1 = arith.constant 0 : index
    %c0_2 = arith.constant 0 : index
    %0 = vector.load %arg1[%c0, %c0_0, %c0_1, %c0_2] : memref<1x18x9x16xbf16, #tpu.memory_space<vmem>>, vector<1x1x8x16xbf16>
    %1 = vector.shape_cast %0 : vector<1x1x8x16xbf16> to vector<8x16xbf16>
    %c0_3 = arith.constant 0 : index
    %c0_4 = arith.constant 0 : index
    %2 = vector.load %arg8[%c0_3, %c0_4] : memref<64x16xbf16, #tpu.memory_space<vmem>>, vector<8x16xbf16>
    tpu.vector_store %arg8[%c0_3, %c0_4], %1 {strides = array<i32>} : memref<64x16xbf16, #tpu.memory_space<vmem>>, vector<8x16xbf16>,
    %c0_5 = arith.constant 0 : index
    %c2 = arith.constant 2 : index
    %c0_6 = arith.constant 0 : index
    %c0_7 = arith.constant 0 : index
    %3 = vector.load %arg1[%c0_5, %c2, %c0_6, %c0_7] : memref<1x18x9x16xbf16, #tpu.memory_space<vmem>>, vector<1x1x8x16xbf16>
    %4 = vector.shape_cast %3 : vector<1x1x8x16xbf16> to vector<8x16xbf16>
    %c8 = arith.constant 8 : index
    %c0_8 = arith.constant 0 : index
    %5 = vector.load %arg8[%c8, %c0_8] : memref<64x16xbf16, #tpu.memory_space<vmem>>, vector<8x16xbf16>
    tpu.vector_store %arg8[%c8, %c0_8], %4 {strides = array<i32>} : memref<64x16xbf16, #tpu.memory_space<vmem>>, vector<8x16xbf16>,
    %c0_9 = arith.constant 0 : index
    %c4 = arith.constant 4 : index
    %c0_10 = arith.constant 0 : index
    %c0_11 = arith.constant 0 : index
    %6 = vector.load %arg1[%c0_9, %c4, %c0_10, %c0_11] : memref<1x18x9x16xbf16, #tpu.memory_space<vmem>>, vector<1x1x8x16xbf16>
    %7 = vector.shape_cast %6 : vector<1x1x8x16xbf16> to vector<8x16xbf16>
    %c16 = arith.constant 16 : index
    %c0_12 = arith.constant 0 : index
    %8 = vector.load %arg8[%c16, %c0_12] : memref<64x16xbf16, #tpu.memory_space<vmem>>, vector<8x16xbf16>
    tpu.vector_store %arg8[%c16, %c0_12], %7 {strides = array<i32>} : memref<64x16xbf16, #tpu.memory_space<vmem>>, vector<8x16xbf16>,
    %c0_13 = arith.constant 0 : index
    %c6 = arith.constant 6 : index
    %c0_14 = arith.constant 0 : index
    %c0_15 = arith.constant 0 : index
    %9 = vector.load %arg1[%c0_13, %c6, %c0_14, %c0_15] : memref<1x18x9x16xbf16, #tpu.memory_space<vmem>>, vector<1x1x8x16xbf16>
    %10 = vector.shape_cast %9 : vector<1x1x8x16xbf16> to vector<8x16xbf16>
    %c24 = arith.constant 24 : index
    %c0_16 = arith.constant 0 : index
    %11 = vector.load %arg8[%c24, %c0_16] : memref<64x16xbf16, #tpu.memory_space<vmem>>, vector<8x16xbf16>
    tpu.vector_store %arg8[%c24, %c0_16], %10 {strides = array<i32>} : memref<64x16xbf16, #tpu.memory_space<vmem>>, vector<8x16xbf16>,
    %c0_17 = arith.constant 0 : index
    %c8_18 = arith.constant 8 : index
    %c0_19 = arith.constant 0 : index
    %c0_20 = arith.constant 0 : index
    %12 = vector.load %arg1[%c0_17, %c8_18, %c0_19, %c0_20] : memref<1x18x9x16xbf16, #tpu.memory_space<vmem>>, vector<1x1x8x16xbf16>
    %13 = vector.shape_cast %12 : vector<1x1x8x16xbf16> to vector<8x16xbf16>
    %c32 = arith.constant 32 : index
    %c0_21 = arith.constant 0 : index
    %14 = vector.load %arg8[%c32, %c0_21] : memref<64x16xbf16, #tpu.memory_space<vmem>>, vector<8x16xbf16>
    tpu.vector_store %arg8[%c32, %c0_21], %13 {strides = array<i32>} : memref<64x16xbf16, #tpu.memory_space<vmem>>, vector<8x16xbf16>,
    %c0_22 = arith.constant 0 : index
    %c10 = arith.constant 10 : index
    %c0_23 = arith.constant 0 : index
    %c0_24 = arith.constant 0 : index
    %15 = vector.load %arg1[%c0_22, %c10, %c0_23, %c0_24] : memref<1x18x9x16xbf16, #tpu.memory_space<vmem>>, vector<1x1x8x16xbf16>
    %16 = vector.shape_cast %15 : vector<1x1x8x16xbf16> to vector<8x16xbf16>
    %c40 = arith.constant 40 : index
    %c0_25 = arith.constant 0 : index
    %17 = vector.load %arg8[%c40, %c0_25] : memref<64x16xbf16, #tpu.memory_space<vmem>>, vector<8x16xbf16>
    tpu.vector_store %arg8[%c40, %c0_25], %16 {strides = array<i32>} : memref<64x16xbf16, #tpu.memory_space<vmem>>, vector<8x16xbf16>,
    %c0_26 = arith.constant 0 : index
    %c12 = arith.constant 12 : index
    %c0_27 = arith.constant 0 : index
    %c0_28 = arith.constant 0 : index
    %18 = vector.load %arg1[%c0_26, %c12, %c0_27, %c0_28] : memref<1x18x9x16xbf16, #tpu.memory_space<vmem>>, vector<1x1x8x16xbf16>
    %19 = vector.shape_cast %18 : vector<1x1x8x16xbf16> to vector<8x16xbf16>
    %c48 = arith.constant 48 : index
    %c0_29 = arith.constant 0 : index
    %20 = vector.load %arg8[%c48, %c0_29] : memref<64x16xbf16, #tpu.memory_space<vmem>>, vector<8x16xbf16>
    tpu.vector_store %arg8[%c48, %c0_29], %19 {strides = array<i32>} : memref<64x16xbf16, #tpu.memory_space<vmem>>, vector<8x16xbf16>,
    %c0_30 = arith.constant 0 : index
    %c14 = arith.constant 14 : index
    %c0_31 = arith.constant 0 : index
    %c0_32 = arith.constant 0 : index
    %21 = vector.load %arg1[%c0_30, %c14, %c0_31, %c0_32] : memref<1x18x9x16xbf16, #tpu.memory_space<vmem>>, vector<1x1x8x16xbf16>
    %22 = vector.shape_cast %21 : vector<1x1x8x16xbf16> to vector<8x16xbf16>
    %c56 = arith.constant 56 : index
    %c0_33 = arith.constant 0 : index
    %23 = vector.load %arg8[%c56, %c0_33] : memref<64x16xbf16, #tpu.memory_space<vmem>>, vector<8x16xbf16>
    tpu.vector_store %arg8[%c56, %c0_33], %22 {strides = array<i32>} : memref<64x16xbf16, #tpu.memory_space<vmem>>, vector<8x16xbf16>,
    %c0_34 = arith.constant 0 : index
    %c0_35 = arith.constant 0 : index
    %24 = vector.load %arg8[%c0_34, %c0_35] : memref<64x16xbf16, #tpu.memory_space<vmem>>, vector<64x16xbf16>
    %c0_36 = arith.constant 0 : index
    %c0_37 = arith.constant 0 : index
    %c0_38 = arith.constant 0 : index
    %c0_39 = arith.constant 0 : index
    %25 = vector.load %arg3[%c0_36, %c0_37, %c0_38, %c0_39] : memref<3x2x16x8xbf16, #tpu.memory_space<vmem>>, vector<1x1x16x8xbf16>
    %26 = vector.shape_cast %25 : vector<1x1x16x8xbf16> to vector<16x8xbf16>
    %cst = arith.constant dense<0.000000e+00> : vector<64x8xf32>
    %27 = tpu.matmul %24, %26, %cst {dimension_numbers = #tpu.dot_dimension_numbers<[1], [0], [0], [1], [0, 0, 1, 1], [], []>} : vector<64x16xbf16>, vector<16x8xbf16>, vector<64x8xf32> -> vector<64x8xf32>
    %c0_40 = arith.constant 0 : index
    %c0_41 = arith.constant 0 : index
    %c1 = arith.constant 1 : index
    %c0_42 = arith.constant 0 : index
    %28 = vector.load %arg1[%c0_40, %c0_41, %c1, %c0_42] : memref<1x18x9x16xbf16, #tpu.memory_space<vmem>>, vector<1x1x8x16xbf16>
    %29 = vector.shape_cast %28 : vector<1x1x8x16xbf16> to vector<8x16xbf16>
    %c0_43 = arith.constant 0 : index
    %c0_44 = arith.constant 0 : index
    %30 = vector.load %arg8[%c0_43, %c0_44] : memref<64x16xbf16, #tpu.memory_space<vmem>>, vector<8x16xbf16>
    tpu.vector_store %arg8[%c0_43, %c0_44], %29 {strides = array<i32>} : memref<64x16xbf16, #tpu.memory_space<vmem>>, vector<8x16xbf16>,
    %c0_45 = arith.constant 0 : index
    %c2_46 = arith.constant 2 : index
    %c1_47 = arith.constant 1 : index
    %c0_48 = arith.constant 0 : index
    %31 = vector.load %arg1[%c0_45, %c2_46, %c1_47, %c0_48] : memref<1x18x9x16xbf16, #tpu.memory_space<vmem>>, vector<1x1x8x16xbf16>
    %32 = vector.shape_cast %31 : vector<1x1x8x16xbf16> to vector<8x16xbf16>
    %c8_49 = arith.constant 8 : index
    %c0_50 = arith.constant 0 : index
    %33 = vector.load %arg8[%c8_49, %c0_50] : memref<64x16xbf16, #tpu.memory_space<vmem>>, vector<8x16xbf16>
    tpu.vector_store %arg8[%c8_49, %c0_50], %32 {strides = array<i32>} : memref<64x16xbf16, #tpu.memory_space<vmem>>, vector<8x16xbf16>,
    %c0_51 = arith.constant 0 : index
    %c4_52 = arith.constant 4 : index
    %c1_53 = arith.constant 1 : index
    %c0_54 = arith.constant 0 : index
    %34 = vector.load %arg1[%c0_51, %c4_52, %c1_53, %c0_54] : memref<1x18x9x16xbf16, #tpu.memory_space<vmem>>, vector<1x1x8x16xbf16>
    %35 = vector.shape_cast %34 : vector<1x1x8x16xbf16> to vector<8x16xbf16>
    %c16_55 = arith.constant 16 : index
    %c0_56 = arith.constant 0 : index
    %36 = vector.load %arg8[%c16_55, %c0_56] : memref<64x16xbf16, #tpu.memory_space<vmem>>, vector<8x16xbf16>
    tpu.vector_store %arg8[%c16_55, %c0_56], %35 {strides = array<i32>} : memref<64x16xbf16, #tpu.memory_space<vmem>>, vector<8x16xbf16>,
    %c0_57 = arith.constant 0 : index
    %c6_58 = arith.constant 6 : index
    %c1_59 = arith.constant 1 : index
    %c0_60 = arith.constant 0 : index
    %37 = vector.load %arg1[%c0_57, %c6_58, %c1_59, %c0_60] : memref<1x18x9x16xbf16, #tpu.memory_space<vmem>>, vector<1x1x8x16xbf16>
    %38 = vector.shape_cast %37 : vector<1x1x8x16xbf16> to vector<8x16xbf16>
    %c24_61 = arith.constant 24 : index
    %c0_62 = arith.constant 0 : index
    %39 = vector.load %arg8[%c24_61, %c0_62] : memref<64x16xbf16, #tpu.memory_space<vmem>>, vector<8x16xbf16>
    tpu.vector_store %arg8[%c24_61, %c0_62], %38 {strides = array<i32>} : memref<64x16xbf16, #tpu.memory_space<vmem>>, vector<8x16xbf16>,
    %c0_63 = arith.constant 0 : index
    %c8_64 = arith.constant 8 : index
    %c1_65 = arith.constant 1 : index
    %c0_66 = arith.constant 0 : index
    %40 = vector.load %arg1[%c0_63, %c8_64, %c1_65, %c0_66] : memref<1x18x9x16xbf16, #tpu.memory_space<vmem>>, vector<1x1x8x16xbf16>
    %41 = vector.shape_cast %40 : vector<1x1x8x16xbf16> to vector<8x16xbf16>
    %c32_67 = arith.constant 32 : index
    %c0_68 = arith.constant 0 : index
    %42 = vector.load %arg8[%c32_67, %c0_68] : memref<64x16xbf16, #tpu.memory_space<vmem>>, vector<8x16xbf16>
    tpu.vector_store %arg8[%c32_67, %c0_68], %41 {strides = array<i32>} : memref<64x16xbf16, #tpu.memory_space<vmem>>, vector<8x16xbf16>,
    %c0_69 = arith.constant 0 : index
    %c10_70 = arith.constant 10 : index
    %c1_71 = arith.constant 1 : index
    %c0_72 = arith.constant 0 : index
    %43 = vector.load %arg1[%c0_69, %c10_70, %c1_71, %c0_72] : memref<1x18x9x16xbf16, #tpu.memory_space<vmem>>, vector<1x1x8x16xbf16>
    %44 = vector.shape_cast %43 : vector<1x1x8x16xbf16> to vector<8x16xbf16>
    %c40_73 = arith.constant 40 : index
    %c0_74 = arith.constant 0 : index
    %45 = vector.load %arg8[%c40_73, %c0_74] : memref<64x16xbf16, #tpu.memory_space<vmem>>, vector<8x16xbf16>
    tpu.vector_store %arg8[%c40_73, %c0_74], %44 {strides = array<i32>} : memref<64x16xbf16, #tpu.memory_space<vmem>>, vector<8x16xbf16>,
    %c0_75 = arith.constant 0 : index
    %c12_76 = arith.constant 12 : index
    %c1_77 = arith.constant 1 : index
    %c0_78 = arith.constant 0 : index
    %46 = vector.load %arg1[%c0_75, %c12_76, %c1_77, %c0_78] : memref<1x18x9x16xbf16, #tpu.memory_space<vmem>>, vector<1x1x8x16xbf16>
    %47 = vector.shape_cast %46 : vector<1x1x8x16xbf16> to vector<8x16xbf16>
    %c48_79 = arith.constant 48 : index
    %c0_80 = arith.constant 0 : index
    %48 = vector.load %arg8[%c48_79, %c0_80] : memref<64x16xbf16, #tpu.memory_space<vmem>>, vector<8x16xbf16>
    tpu.vector_store %arg8[%c48_79, %c0_80], %47 {strides = array<i32>} : memref<64x16xbf16, #tpu.memory_space<vmem>>, vector<8x16xbf16>,
    %c0_81 = arith.constant 0 : index
    %c14_82 = arith.constant 14 : index
    %c1_83 = arith.constant 1 : index
    %c0_84 = arith.constant 0 : index
    %49 = vector.load %arg1[%c0_81, %c14_82, %c1_83, %c0_84] : memref<1x18x9x16xbf16, #tpu.memory_space<vmem>>, vector<1x1x8x16xbf16>
    %50 = vector.shape_cast %49 : vector<1x1x8x16xbf16> to vector<8x16xbf16>
    %c56_85 = arith.constant 56 : index
    %c0_86 = arith.constant 0 : index
    %51 = vector.load %arg8[%c56_85, %c0_86] : memref<64x16xbf16, #tpu.memory_space<vmem>>, vector<8x16xbf16>
    tpu.vector_store %arg8[%c56_85, %c0_86], %50 {strides = array<i32>} : memref<64x16xbf16, #tpu.memory_space<vmem>>, vector<8x16xbf16>,
    %c0_87 = arith.constant 0 : index
    %c0_88 = arith.constant 0 : index
    %52 = vector.load %arg8[%c0_87, %c0_88] : memref<64x16xbf16, #tpu.memory_space<vmem>>, vector<64x16xbf16>
    %c0_89 = arith.constant 0 : index
    %c1_90 = arith.constant 1 : index
    %c0_91 = arith.constant 0 : index
    %c0_92 = arith.constant 0 : index
    %53 = vector.load %arg3[%c0_89, %c1_90, %c0_91, %c0_92] : memref<3x2x16x8xbf16, #tpu.memory_space<vmem>>, vector<1x1x16x8xbf16>
    %54 = vector.shape_cast %53 : vector<1x1x16x8xbf16> to vector<16x8xbf16>
    %cst_93 = arith.constant dense<0.000000e+00> : vector<64x8xf32>
    %55 = tpu.matmul %52, %54, %cst_93 {dimension_numbers = #tpu.dot_dimension_numbers<[1], [0], [0], [1], [0, 0, 1, 1], [], []>} : vector<64x16xbf16>, vector<16x8xbf16>, vector<64x8xf32> -> vector<64x8xf32>
    %56 = arith.addf %27, %55 : vector<64x8xf32>
    %c0_94 = arith.constant 0 : index
    %c1_95 = arith.constant 1 : index
    %c0_96 = arith.constant 0 : index
    %c0_97 = arith.constant 0 : index
    %57 = vector.load %arg1[%c0_94, %c1_95, %c0_96, %c0_97] : memref<1x18x9x16xbf16, #tpu.memory_space<vmem>>, vector<1x1x8x16xbf16>
    %58 = vector.shape_cast %57 : vector<1x1x8x16xbf16> to vector<8x16xbf16>
    %c0_98 = arith.constant 0 : index
    %c0_99 = arith.constant 0 : index
    %59 = vector.load %arg8[%c0_98, %c0_99] : memref<64x16xbf16, #tpu.memory_space<vmem>>, vector<8x16xbf16>
    tpu.vector_store %arg8[%c0_98, %c0_99], %58 {strides = array<i32>} : memref<64x16xbf16, #tpu.memory_space<vmem>>, vector<8x16xbf16>,
    %c0_100 = arith.constant 0 : index
    %c3 = arith.constant 3 : index
    %c0_101 = arith.constant 0 : index
    %c0_102 = arith.constant 0 : index
    %60 = vector.load %arg1[%c0_100, %c3, %c0_101, %c0_102] : memref<1x18x9x16xbf16, #tpu.memory_space<vmem>>, vector<1x1x8x16xbf16>
    %61 = vector.shape_cast %60 : vector<1x1x8x16xbf16> to vector<8x16xbf16>
    %c8_103 = arith.constant 8 : index
    %c0_104 = arith.constant 0 : index
    %62 = vector.load %arg8[%c8_103, %c0_104] : memref<64x16xbf16, #tpu.memory_space<vmem>>, vector<8x16xbf16>
    tpu.vector_store %arg8[%c8_103, %c0_104], %61 {strides = array<i32>} : memref<64x16xbf16, #tpu.memory_space<vmem>>, vector<8x16xbf16>,
    %c0_105 = arith.constant 0 : index
    %c5 = arith.constant 5 : index
    %c0_106 = arith.constant 0 : index
    %c0_107 = arith.constant 0 : index
    %63 = vector.load %arg1[%c0_105, %c5, %c0_106, %c0_107] : memref<1x18x9x16xbf16, #tpu.memory_space<vmem>>, vector<1x1x8x16xbf16>
    %64 = vector.shape_cast %63 : vector<1x1x8x16xbf16> to vector<8x16xbf16>
    %c16_108 = arith.constant 16 : index
    %c0_109 = arith.constant 0 : index
    %65 = vector.load %arg8[%c16_108, %c0_109] : memref<64x16xbf16, #tpu.memory_space<vmem>>, vector<8x16xbf16>
    tpu.vector_store %arg8[%c16_108, %c0_109], %64 {strides = array<i32>} : memref<64x16xbf16, #tpu.memory_space<vmem>>, vector<8x16xbf16>,
    %c0_110 = arith.constant 0 : index
    %c7 = arith.constant 7 : index
    %c0_111 = arith.constant 0 : index
    %c0_112 = arith.constant 0 : index
    %66 = vector.load %arg1[%c0_110, %c7, %c0_111, %c0_112] : memref<1x18x9x16xbf16, #tpu.memory_space<vmem>>, vector<1x1x8x16xbf16>
    %67 = vector.shape_cast %66 : vector<1x1x8x16xbf16> to vector<8x16xbf16>
    %c24_113 = arith.constant 24 : index
    %c0_114 = arith.constant 0 : index
    %68 = vector.load %arg8[%c24_113, %c0_114] : memref<64x16xbf16, #tpu.memory_space<vmem>>, vector<8x16xbf16>
    tpu.vector_store %arg8[%c24_113, %c0_114], %67 {strides = array<i32>} : memref<64x16xbf16, #tpu.memory_space<vmem>>, vector<8x16xbf16>,
    %c0_115 = arith.constant 0 : index
    %c9 = arith.constant 9 : index
    %c0_116 = arith.constant 0 : index
    %c0_117 = arith.constant 0 : index
    %69 = vector.load %arg1[%c0_115, %c9, %c0_116, %c0_117] : memref<1x18x9x16xbf16, #tpu.memory_space<vmem>>, vector<1x1x8x16xbf16>
    %70 = vector.shape_cast %69 : vector<1x1x8x16xbf16> to vector<8x16xbf16>
    %c32_118 = arith.constant 32 : index
    %c0_119 = arith.constant 0 : index
    %71 = vector.load %arg8[%c32_118, %c0_119] : memref<64x16xbf16, #tpu.memory_space<vmem>>, vector<8x16xbf16>
    tpu.vector_store %arg8[%c32_118, %c0_119], %70 {strides = array<i32>} : memref<64x16xbf16, #tpu.memory_space<vmem>>, vector<8x16xbf16>,
    %c0_120 = arith.constant 0 : index
    %c11 = arith.constant 11 : index
    %c0_121 = arith.constant 0 : index
    %c0_122 = arith.constant 0 : index
    %72 = vector.load %arg1[%c0_120, %c11, %c0_121, %c0_122] : memref<1x18x9x16xbf16, #tpu.memory_space<vmem>>, vector<1x1x8x16xbf16>
    %73 = vector.shape_cast %72 : vector<1x1x8x16xbf16> to vector<8x16xbf16>
    %c40_123 = arith.constant 40 : index
    %c0_124 = arith.constant 0 : index
    %74 = vector.load %arg8[%c40_123, %c0_124] : memref<64x16xbf16, #tpu.memory_space<vmem>>, vector<8x16xbf16>
    tpu.vector_store %arg8[%c40_123, %c0_124], %73 {strides = array<i32>} : memref<64x16xbf16, #tpu.memory_space<vmem>>, vector<8x16xbf16>,
    %c0_125 = arith.constant 0 : index
    %c13 = arith.constant 13 : index
    %c0_126 = arith.constant 0 : index
    %c0_127 = arith.constant 0 : index
    %75 = vector.load %arg1[%c0_125, %c13, %c0_126, %c0_127] : memref<1x18x9x16xbf16, #tpu.memory_space<vmem>>, vector<1x1x8x16xbf16>
    %76 = vector.shape_cast %75 : vector<1x1x8x16xbf16> to vector<8x16xbf16>
    %c48_128 = arith.constant 48 : index
    %c0_129 = arith.constant 0 : index
    %77 = vector.load %arg8[%c48_128, %c0_129] : memref<64x16xbf16, #tpu.memory_space<vmem>>, vector<8x16xbf16>
    tpu.vector_store %arg8[%c48_128, %c0_129], %76 {strides = array<i32>} : memref<64x16xbf16, #tpu.memory_space<vmem>>, vector<8x16xbf16>,
    %c0_130 = arith.constant 0 : index
    %c15 = arith.constant 15 : index
    %c0_131 = arith.constant 0 : index
    %c0_132 = arith.constant 0 : index
    %78 = vector.load %arg1[%c0_130, %c15, %c0_131, %c0_132] : memref<1x18x9x16xbf16, #tpu.memory_space<vmem>>, vector<1x1x8x16xbf16>
    %79 = vector.shape_cast %78 : vector<1x1x8x16xbf16> to vector<8x16xbf16>
    %c56_133 = arith.constant 56 : index
    %c0_134 = arith.constant 0 : index
    %80 = vector.load %arg8[%c56_133, %c0_134] : memref<64x16xbf16, #tpu.memory_space<vmem>>, vector<8x16xbf16>
    tpu.vector_store %arg8[%c56_133, %c0_134], %79 {strides = array<i32>} : memref<64x16xbf16, #tpu.memory_space<vmem>>, vector<8x16xbf16>,
    %c0_135 = arith.constant 0 : index
    %c0_136 = arith.constant 0 : index
    %81 = vector.load %arg8[%c0_135, %c0_136] : memref<64x16xbf16, #tpu.memory_space<vmem>>, vector<64x16xbf16>
    %c1_137 = arith.constant 1 : index
    %c0_138 = arith.constant 0 : index
    %c0_139 = arith.constant 0 : index
    %c0_140 = arith.constant 0 : index
    %82 = vector.load %arg3[%c1_137, %c0_138, %c0_139, %c0_140] : memref<3x2x16x8xbf16, #tpu.memory_space<vmem>>, vector<1x1x16x8xbf16>
    %83 = vector.shape_cast %82 : vector<1x1x16x8xbf16> to vector<16x8xbf16>
    %cst_141 = arith.constant dense<0.000000e+00> : vector<64x8xf32>
    %84 = tpu.matmul %81, %83, %cst_141 {dimension_numbers = #tpu.dot_dimension_numbers<[1], [0], [0], [1], [0, 0, 1, 1], [], []>} : vector<64x16xbf16>, vector<16x8xbf16>, vector<64x8xf32> -> vector<64x8xf32>
    %85 = arith.addf %56, %84 : vector<64x8xf32>
    %c0_142 = arith.constant 0 : index
    %c1_143 = arith.constant 1 : index
    %c1_144 = arith.constant 1 : index
    %c0_145 = arith.constant 0 : index
    %86 = vector.load %arg1[%c0_142, %c1_143, %c1_144, %c0_145] : memref<1x18x9x16xbf16, #tpu.memory_space<vmem>>, vector<1x1x8x16xbf16>
    %87 = vector.shape_cast %86 : vector<1x1x8x16xbf16> to vector<8x16xbf16>
    %c0_146 = arith.constant 0 : index
    %c0_147 = arith.constant 0 : index
    %88 = vector.load %arg8[%c0_146, %c0_147] : memref<64x16xbf16, #tpu.memory_space<vmem>>, vector<8x16xbf16>
    tpu.vector_store %arg8[%c0_146, %c0_147], %87 {strides = array<i32>} : memref<64x16xbf16, #tpu.memory_space<vmem>>, vector<8x16xbf16>,
    %c0_148 = arith.constant 0 : index
    %c3_149 = arith.constant 3 : index
    %c1_150 = arith.constant 1 : index
    %c0_151 = arith.constant 0 : index
    %89 = vector.load %arg1[%c0_148, %c3_149, %c1_150, %c0_151] : memref<1x18x9x16xbf16, #tpu.memory_space<vmem>>, vector<1x1x8x16xbf16>
    %90 = vector.shape_cast %89 : vector<1x1x8x16xbf16> to vector<8x16xbf16>
    %c8_152 = arith.constant 8 : index
    %c0_153 = arith.constant 0 : index
    %91 = vector.load %arg8[%c8_152, %c0_153] : memref<64x16xbf16, #tpu.memory_space<vmem>>, vector<8x16xbf16>
    tpu.vector_store %arg8[%c8_152, %c0_153], %90 {strides = array<i32>} : memref<64x16xbf16, #tpu.memory_space<vmem>>, vector<8x16xbf16>,
    %c0_154 = arith.constant 0 : index
    %c5_155 = arith.constant 5 : index
    %c1_156 = arith.constant 1 : index
    %c0_157 = arith.constant 0 : index
    %92 = vector.load %arg1[%c0_154, %c5_155, %c1_156, %c0_157] : memref<1x18x9x16xbf16, #tpu.memory_space<vmem>>, vector<1x1x8x16xbf16>
    %93 = vector.shape_cast %92 : vector<1x1x8x16xbf16> to vector<8x16xbf16>
    %c16_158 = arith.constant 16 : index
    %c0_159 = arith.constant 0 : index
    %94 = vector.load %arg8[%c16_158, %c0_159] : memref<64x16xbf16, #tpu.memory_space<vmem>>, vector<8x16xbf16>
    tpu.vector_store %arg8[%c16_158, %c0_159], %93 {strides = array<i32>} : memref<64x16xbf16, #tpu.memory_space<vmem>>, vector<8x16xbf16>,
    %c0_160 = arith.constant 0 : index
    %c7_161 = arith.constant 7 : index
    %c1_162 = arith.constant 1 : index
    %c0_163 = arith.constant 0 : index
    %95 = vector.load %arg1[%c0_160, %c7_161, %c1_162, %c0_163] : memref<1x18x9x16xbf16, #tpu.memory_space<vmem>>, vector<1x1x8x16xbf16>
    %96 = vector.shape_cast %95 : vector<1x1x8x16xbf16> to vector<8x16xbf16>
    %c24_164 = arith.constant 24 : index
    %c0_165 = arith.constant 0 : index
    %97 = vector.load %arg8[%c24_164, %c0_165] : memref<64x16xbf16, #tpu.memory_space<vmem>>, vector<8x16xbf16>
    tpu.vector_store %arg8[%c24_164, %c0_165], %96 {strides = array<i32>} : memref<64x16xbf16, #tpu.memory_space<vmem>>, vector<8x16xbf16>,
    %c0_166 = arith.constant 0 : index
    %c9_167 = arith.constant 9 : index
    %c1_168 = arith.constant 1 : index
    %c0_169 = arith.constant 0 : index
    %98 = vector.load %arg1[%c0_166, %c9_167, %c1_168, %c0_169] : memref<1x18x9x16xbf16, #tpu.memory_space<vmem>>, vector<1x1x8x16xbf16>
    %99 = vector.shape_cast %98 : vector<1x1x8x16xbf16> to vector<8x16xbf16>
    %c32_170 = arith.constant 32 : index
    %c0_171 = arith.constant 0 : index
    %100 = vector.load %arg8[%c32_170, %c0_171] : memref<64x16xbf16, #tpu.memory_space<vmem>>, vector<8x16xbf16>
    tpu.vector_store %arg8[%c32_170, %c0_171], %99 {strides = array<i32>} : memref<64x16xbf16, #tpu.memory_space<vmem>>, vector<8x16xbf16>,
    %c0_172 = arith.constant 0 : index
    %c11_173 = arith.constant 11 : index
    %c1_174 = arith.constant 1 : index
    %c0_175 = arith.constant 0 : index
    %101 = vector.load %arg1[%c0_172, %c11_173, %c1_174, %c0_175] : memref<1x18x9x16xbf16, #tpu.memory_space<vmem>>, vector<1x1x8x16xbf16>
    %102 = vector.shape_cast %101 : vector<1x1x8x16xbf16> to vector<8x16xbf16>
    %c40_176 = arith.constant 40 : index
    %c0_177 = arith.constant 0 : index
    %103 = vector.load %arg8[%c40_176, %c0_177] : memref<64x16xbf16, #tpu.memory_space<vmem>>, vector<8x16xbf16>
    tpu.vector_store %arg8[%c40_176, %c0_177], %102 {strides = array<i32>} : memref<64x16xbf16, #tpu.memory_space<vmem>>, vector<8x16xbf16>,
    %c0_178 = arith.constant 0 : index
    %c13_179 = arith.constant 13 : index
    %c1_180 = arith.constant 1 : index
    %c0_181 = arith.constant 0 : index
    %104 = vector.load %arg1[%c0_178, %c13_179, %c1_180, %c0_181] : memref<1x18x9x16xbf16, #tpu.memory_space<vmem>>, vector<1x1x8x16xbf16>
    %105 = vector.shape_cast %104 : vector<1x1x8x16xbf16> to vector<8x16xbf16>
    %c48_182 = arith.constant 48 : index
    %c0_183 = arith.constant 0 : index
    %106 = vector.load %arg8[%c48_182, %c0_183] : memref<64x16xbf16, #tpu.memory_space<vmem>>, vector<8x16xbf16>
    tpu.vector_store %arg8[%c48_182, %c0_183], %105 {strides = array<i32>} : memref<64x16xbf16, #tpu.memory_space<vmem>>, vector<8x16xbf16>,
    %c0_184 = arith.constant 0 : index
    %c15_185 = arith.constant 15 : index
    %c1_186 = arith.constant 1 : index
    %c0_187 = arith.constant 0 : index
    %107 = vector.load %arg1[%c0_184, %c15_185, %c1_186, %c0_187] : memref<1x18x9x16xbf16, #tpu.memory_space<vmem>>, vector<1x1x8x16xbf16>
    %108 = vector.shape_cast %107 : vector<1x1x8x16xbf16> to vector<8x16xbf16>
    %c56_188 = arith.constant 56 : index
    %c0_189 = arith.constant 0 : index
    %109 = vector.load %arg8[%c56_188, %c0_189] : memref<64x16xbf16, #tpu.memory_space<vmem>>, vector<8x16xbf16>
    tpu.vector_store %arg8[%c56_188, %c0_189], %108 {strides = array<i32>} : memref<64x16xbf16, #tpu.memory_space<vmem>>, vector<8x16xbf16>,
    %c0_190 = arith.constant 0 : index
    %c0_191 = arith.constant 0 : index
    %110 = vector.load %arg8[%c0_190, %c0_191] : memref<64x16xbf16, #tpu.memory_space<vmem>>, vector<64x16xbf16>
    %c1_192 = arith.constant 1 : index
    %c1_193 = arith.constant 1 : index
    %c0_194 = arith.constant 0 : index
    %c0_195 = arith.constant 0 : index
    %111 = vector.load %arg3[%c1_192, %c1_193, %c0_194, %c0_195] : memref<3x2x16x8xbf16, #tpu.memory_space<vmem>>, vector<1x1x16x8xbf16>
    %112 = vector.shape_cast %111 : vector<1x1x16x8xbf16> to vector<16x8xbf16>
    %cst_196 = arith.constant dense<0.000000e+00> : vector<64x8xf32>
    %113 = tpu.matmul %110, %112, %cst_196 {dimension_numbers = #tpu.dot_dimension_numbers<[1], [0], [0], [1], [0, 0, 1, 1], [], []>} : vector<64x16xbf16>, vector<16x8xbf16>, vector<64x8xf32> -> vector<64x8xf32>
    %114 = arith.addf %85, %113 : vector<64x8xf32>
    %c0_197 = arith.constant 0 : index
    %c2_198 = arith.constant 2 : index
    %c0_199 = arith.constant 0 : index
    %c0_200 = arith.constant 0 : index
    %115 = vector.load %arg1[%c0_197, %c2_198, %c0_199, %c0_200] : memref<1x18x9x16xbf16, #tpu.memory_space<vmem>>, vector<1x1x8x16xbf16>
    %116 = vector.shape_cast %115 : vector<1x1x8x16xbf16> to vector<8x16xbf16>
    %c0_201 = arith.constant 0 : index
    %c0_202 = arith.constant 0 : index
    %117 = vector.load %arg8[%c0_201, %c0_202] : memref<64x16xbf16, #tpu.memory_space<vmem>>, vector<8x16xbf16>
    tpu.vector_store %arg8[%c0_201, %c0_202], %116 {strides = array<i32>} : memref<64x16xbf16, #tpu.memory_space<vmem>>, vector<8x16xbf16>,
    %c0_203 = arith.constant 0 : index
    %c4_204 = arith.constant 4 : index
    %c0_205 = arith.constant 0 : index
    %c0_206 = arith.constant 0 : index
    %118 = vector.load %arg1[%c0_203, %c4_204, %c0_205, %c0_206] : memref<1x18x9x16xbf16, #tpu.memory_space<vmem>>, vector<1x1x8x16xbf16>
    %119 = vector.shape_cast %118 : vector<1x1x8x16xbf16> to vector<8x16xbf16>
    %c8_207 = arith.constant 8 : index
    %c0_208 = arith.constant 0 : index
    %120 = vector.load %arg8[%c8_207, %c0_208] : memref<64x16xbf16, #tpu.memory_space<vmem>>, vector<8x16xbf16>
    tpu.vector_store %arg8[%c8_207, %c0_208], %119 {strides = array<i32>} : memref<64x16xbf16, #tpu.memory_space<vmem>>, vector<8x16xbf16>,
    %c0_209 = arith.constant 0 : index
    %c6_210 = arith.constant 6 : index
    %c0_211 = arith.constant 0 : index
    %c0_212 = arith.constant 0 : index
    %121 = vector.load %arg1[%c0_209, %c6_210, %c0_211, %c0_212] : memref<1x18x9x16xbf16, #tpu.memory_space<vmem>>, vector<1x1x8x16xbf16>
    %122 = vector.shape_cast %121 : vector<1x1x8x16xbf16> to vector<8x16xbf16>
    %c16_213 = arith.constant 16 : index
    %c0_214 = arith.constant 0 : index
    %123 = vector.load %arg8[%c16_213, %c0_214] : memref<64x16xbf16, #tpu.memory_space<vmem>>, vector<8x16xbf16>
    tpu.vector_store %arg8[%c16_213, %c0_214], %122 {strides = array<i32>} : memref<64x16xbf16, #tpu.memory_space<vmem>>, vector<8x16xbf16>,
    %c0_215 = arith.constant 0 : index
    %c8_216 = arith.constant 8 : index
    %c0_217 = arith.constant 0 : index
    %c0_218 = arith.constant 0 : index
    %124 = vector.load %arg1[%c0_215, %c8_216, %c0_217, %c0_218] : memref<1x18x9x16xbf16, #tpu.memory_space<vmem>>, vector<1x1x8x16xbf16>
    %125 = vector.shape_cast %124 : vector<1x1x8x16xbf16> to vector<8x16xbf16>
    %c24_219 = arith.constant 24 : index
    %c0_220 = arith.constant 0 : index
    %126 = vector.load %arg8[%c24_219, %c0_220] : memref<64x16xbf16, #tpu.memory_space<vmem>>, vector<8x16xbf16>
    tpu.vector_store %arg8[%c24_219, %c0_220], %125 {strides = array<i32>} : memref<64x16xbf16, #tpu.memory_space<vmem>>, vector<8x16xbf16>,
    %c0_221 = arith.constant 0 : index
    %c10_222 = arith.constant 10 : index
    %c0_223 = arith.constant 0 : index
    %c0_224 = arith.constant 0 : index
    %127 = vector.load %arg1[%c0_221, %c10_222, %c0_223, %c0_224] : memref<1x18x9x16xbf16, #tpu.memory_space<vmem>>, vector<1x1x8x16xbf16>
    %128 = vector.shape_cast %127 : vector<1x1x8x16xbf16> to vector<8x16xbf16>
    %c32_225 = arith.constant 32 : index
    %c0_226 = arith.constant 0 : index
    %129 = vector.load %arg8[%c32_225, %c0_226] : memref<64x16xbf16, #tpu.memory_space<vmem>>, vector<8x16xbf16>
    tpu.vector_store %arg8[%c32_225, %c0_226], %128 {strides = array<i32>} : memref<64x16xbf16, #tpu.memory_space<vmem>>, vector<8x16xbf16>,
    %c0_227 = arith.constant 0 : index
    %c12_228 = arith.constant 12 : index
    %c0_229 = arith.constant 0 : index
    %c0_230 = arith.constant 0 : index
    %130 = vector.load %arg1[%c0_227, %c12_228, %c0_229, %c0_230] : memref<1x18x9x16xbf16, #tpu.memory_space<vmem>>, vector<1x1x8x16xbf16>
    %131 = vector.shape_cast %130 : vector<1x1x8x16xbf16> to vector<8x16xbf16>
    %c40_231 = arith.constant 40 : index
    %c0_232 = arith.constant 0 : index
    %132 = vector.load %arg8[%c40_231, %c0_232] : memref<64x16xbf16, #tpu.memory_space<vmem>>, vector<8x16xbf16>
    tpu.vector_store %arg8[%c40_231, %c0_232], %131 {strides = array<i32>} : memref<64x16xbf16, #tpu.memory_space<vmem>>, vector<8x16xbf16>,
    %c0_233 = arith.constant 0 : index
    %c14_234 = arith.constant 14 : index
    %c0_235 = arith.constant 0 : index
    %c0_236 = arith.constant 0 : index
    %133 = vector.load %arg1[%c0_233, %c14_234, %c0_235, %c0_236] : memref<1x18x9x16xbf16, #tpu.memory_space<vmem>>, vector<1x1x8x16xbf16>
    %134 = vector.shape_cast %133 : vector<1x1x8x16xbf16> to vector<8x16xbf16>
    %c48_237 = arith.constant 48 : index
    %c0_238 = arith.constant 0 : index
    %135 = vector.load %arg8[%c48_237, %c0_238] : memref<64x16xbf16, #tpu.memory_space<vmem>>, vector<8x16xbf16>
    tpu.vector_store %arg8[%c48_237, %c0_238], %134 {strides = array<i32>} : memref<64x16xbf16, #tpu.memory_space<vmem>>, vector<8x16xbf16>,
    %c0_239 = arith.constant 0 : index
    %c16_240 = arith.constant 16 : index
    %c0_241 = arith.constant 0 : index
    %c0_242 = arith.constant 0 : index
    %136 = vector.load %arg1[%c0_239, %c16_240, %c0_241, %c0_242] : memref<1x18x9x16xbf16, #tpu.memory_space<vmem>>, vector<1x1x8x16xbf16>
    %137 = vector.shape_cast %136 : vector<1x1x8x16xbf16> to vector<8x16xbf16>
    %c56_243 = arith.constant 56 : index
    %c0_244 = arith.constant 0 : index
    %138 = vector.load %arg8[%c56_243, %c0_244] : memref<64x16xbf16, #tpu.memory_space<vmem>>, vector<8x16xbf16>
    tpu.vector_store %arg8[%c56_243, %c0_244], %137 {strides = array<i32>} : memref<64x16xbf16, #tpu.memory_space<vmem>>, vector<8x16xbf16>,
    %c0_245 = arith.constant 0 : index
    %c0_246 = arith.constant 0 : index
    %139 = vector.load %arg8[%c0_245, %c0_246] : memref<64x16xbf16, #tpu.memory_space<vmem>>, vector<64x16xbf16>
    %c2_247 = arith.constant 2 : index
    %c0_248 = arith.constant 0 : index
    %c0_249 = arith.constant 0 : index
    %c0_250 = arith.constant 0 : index
    %140 = vector.load %arg3[%c2_247, %c0_248, %c0_249, %c0_250] : memref<3x2x16x8xbf16, #tpu.memory_space<vmem>>, vector<1x1x16x8xbf16>
    %141 = vector.shape_cast %140 : vector<1x1x16x8xbf16> to vector<16x8xbf16>
    %cst_251 = arith.constant dense<0.000000e+00> : vector<64x8xf32>
    %142 = tpu.matmul %139, %141, %cst_251 {dimension_numbers = #tpu.dot_dimension_numbers<[1], [0], [0], [1], [0, 0, 1, 1], [], []>} : vector<64x16xbf16>, vector<16x8xbf16>, vector<64x8xf32> -> vector<64x8xf32>
    %143 = arith.addf %114, %142 : vector<64x8xf32>
    %c0_252 = arith.constant 0 : index
    %c2_253 = arith.constant 2 : index
    %c1_254 = arith.constant 1 : index
    %c0_255 = arith.constant 0 : index
    %144 = vector.load %arg1[%c0_252, %c2_253, %c1_254, %c0_255] : memref<1x18x9x16xbf16, #tpu.memory_space<vmem>>, vector<1x1x8x16xbf16>
    %145 = vector.shape_cast %144 : vector<1x1x8x16xbf16> to vector<8x16xbf16>
    %c0_256 = arith.constant 0 : index
    %c0_257 = arith.constant 0 : index
    %146 = vector.load %arg8[%c0_256, %c0_257] : memref<64x16xbf16, #tpu.memory_space<vmem>>, vector<8x16xbf16>
    tpu.vector_store %arg8[%c0_256, %c0_257], %145 {strides = array<i32>} : memref<64x16xbf16, #tpu.memory_space<vmem>>, vector<8x16xbf16>,
    %c0_258 = arith.constant 0 : index
    %c4_259 = arith.constant 4 : index
    %c1_260 = arith.constant 1 : index
    %c0_261 = arith.constant 0 : index
    %147 = vector.load %arg1[%c0_258, %c4_259, %c1_260, %c0_261] : memref<1x18x9x16xbf16, #tpu.memory_space<vmem>>, vector<1x1x8x16xbf16>
    %148 = vector.shape_cast %147 : vector<1x1x8x16xbf16> to vector<8x16xbf16>
    %c8_262 = arith.constant 8 : index
    %c0_263 = arith.constant 0 : index
    %149 = vector.load %arg8[%c8_262, %c0_263] : memref<64x16xbf16, #tpu.memory_space<vmem>>, vector<8x16xbf16>
    tpu.vector_store %arg8[%c8_262, %c0_263], %148 {strides = array<i32>} : memref<64x16xbf16, #tpu.memory_space<vmem>>, vector<8x16xbf16>,
    %c0_264 = arith.constant 0 : index
    %c6_265 = arith.constant 6 : index
    %c1_266 = arith.constant 1 : index
    %c0_267 = arith.constant 0 : index
    %150 = vector.load %arg1[%c0_264, %c6_265, %c1_266, %c0_267] : memref<1x18x9x16xbf16, #tpu.memory_space<vmem>>, vector<1x1x8x16xbf16>
    %151 = vector.shape_cast %150 : vector<1x1x8x16xbf16> to vector<8x16xbf16>
    %c16_268 = arith.constant 16 : index
    %c0_269 = arith.constant 0 : index
    %152 = vector.load %arg8[%c16_268, %c0_269] : memref<64x16xbf16, #tpu.memory_space<vmem>>, vector<8x16xbf16>
    tpu.vector_store %arg8[%c16_268, %c0_269], %151 {strides = array<i32>} : memref<64x16xbf16, #tpu.memory_space<vmem>>, vector<8x16xbf16>,
    %c0_270 = arith.constant 0 : index
    %c8_271 = arith.constant 8 : index
    %c1_272 = arith.constant 1 : index
    %c0_273 = arith.constant 0 : index
    %153 = vector.load %arg1[%c0_270, %c8_271, %c1_272, %c0_273] : memref<1x18x9x16xbf16, #tpu.memory_space<vmem>>, vector<1x1x8x16xbf16>
    %154 = vector.shape_cast %153 : vector<1x1x8x16xbf16> to vector<8x16xbf16>
    %c24_274 = arith.constant 24 : index
    %c0_275 = arith.constant 0 : index
    %155 = vector.load %arg8[%c24_274, %c0_275] : memref<64x16xbf16, #tpu.memory_space<vmem>>, vector<8x16xbf16>
    tpu.vector_store %arg8[%c24_274, %c0_275], %154 {strides = array<i32>} : memref<64x16xbf16, #tpu.memory_space<vmem>>, vector<8x16xbf16>,
    %c0_276 = arith.constant 0 : index
    %c10_277 = arith.constant 10 : index
    %c1_278 = arith.constant 1 : index
    %c0_279 = arith.constant 0 : index
    %156 = vector.load %arg1[%c0_276, %c10_277, %c1_278, %c0_279] : memref<1x18x9x16xbf16, #tpu.memory_space<vmem>>, vector<1x1x8x16xbf16>
    %157 = vector.shape_cast %156 : vector<1x1x8x16xbf16> to vector<8x16xbf16>
    %c32_280 = arith.constant 32 : index
    %c0_281 = arith.constant 0 : index
    %158 = vector.load %arg8[%c32_280, %c0_281] : memref<64x16xbf16, #tpu.memory_space<vmem>>, vector<8x16xbf16>
    tpu.vector_store %arg8[%c32_280, %c0_281], %157 {strides = array<i32>} : memref<64x16xbf16, #tpu.memory_space<vmem>>, vector<8x16xbf16>,
    %c0_282 = arith.constant 0 : index
    %c12_283 = arith.constant 12 : index
    %c1_284 = arith.constant 1 : index
    %c0_285 = arith.constant 0 : index
    %159 = vector.load %arg1[%c0_282, %c12_283, %c1_284, %c0_285] : memref<1x18x9x16xbf16, #tpu.memory_space<vmem>>, vector<1x1x8x16xbf16>
    %160 = vector.shape_cast %159 : vector<1x1x8x16xbf16> to vector<8x16xbf16>
    %c40_286 = arith.constant 40 : index
    %c0_287 = arith.constant 0 : index
    %161 = vector.load %arg8[%c40_286, %c0_287] : memref<64x16xbf16, #tpu.memory_space<vmem>>, vector<8x16xbf16>
    tpu.vector_store %arg8[%c40_286, %c0_287], %160 {strides = array<i32>} : memref<64x16xbf16, #tpu.memory_space<vmem>>, vector<8x16xbf16>,
    %c0_288 = arith.constant 0 : index
    %c14_289 = arith.constant 14 : index
    %c1_290 = arith.constant 1 : index
    %c0_291 = arith.constant 0 : index
    %162 = vector.load %arg1[%c0_288, %c14_289, %c1_290, %c0_291] : memref<1x18x9x16xbf16, #tpu.memory_space<vmem>>, vector<1x1x8x16xbf16>
    %163 = vector.shape_cast %162 : vector<1x1x8x16xbf16> to vector<8x16xbf16>
    %c48_292 = arith.constant 48 : index
    %c0_293 = arith.constant 0 : index
    %164 = vector.load %arg8[%c48_292, %c0_293] : memref<64x16xbf16, #tpu.memory_space<vmem>>, vector<8x16xbf16>
    tpu.vector_store %arg8[%c48_292, %c0_293], %163 {strides = array<i32>} : memref<64x16xbf16, #tpu.memory_space<vmem>>, vector<8x16xbf16>,
    %c0_294 = arith.constant 0 : index
    %c16_295 = arith.constant 16 : index
    %c1_296 = arith.constant 1 : index
    %c0_297 = arith.constant 0 : index
    %165 = vector.load %arg1[%c0_294, %c16_295, %c1_296, %c0_297] : memref<1x18x9x16xbf16, #tpu.memory_space<vmem>>, vector<1x1x8x16xbf16>
    %166 = vector.shape_cast %165 : vector<1x1x8x16xbf16> to vector<8x16xbf16>
    %c56_298 = arith.constant 56 : index
    %c0_299 = arith.constant 0 : index
    %167 = vector.load %arg8[%c56_298, %c0_299] : memref<64x16xbf16, #tpu.memory_space<vmem>>, vector<8x16xbf16>
    tpu.vector_store %arg8[%c56_298, %c0_299], %166 {strides = array<i32>} : memref<64x16xbf16, #tpu.memory_space<vmem>>, vector<8x16xbf16>,
    %c0_300 = arith.constant 0 : index
    %c0_301 = arith.constant 0 : index
    %168 = vector.load %arg8[%c0_300, %c0_301] : memref<64x16xbf16, #tpu.memory_space<vmem>>, vector<64x16xbf16>
    %c2_302 = arith.constant 2 : index
    %c1_303 = arith.constant 1 : index
    %c0_304 = arith.constant 0 : index
    %c0_305 = arith.constant 0 : index
    %169 = vector.load %arg3[%c2_302, %c1_303, %c0_304, %c0_305] : memref<3x2x16x8xbf16, #tpu.memory_space<vmem>>, vector<1x1x16x8xbf16>
    %170 = vector.shape_cast %169 : vector<1x1x16x8xbf16> to vector<16x8xbf16>
    %cst_306 = arith.constant dense<0.000000e+00> : vector<64x8xf32>
    %171 = tpu.matmul %168, %170, %cst_306 {dimension_numbers = #tpu.dot_dimension_numbers<[1], [0], [0], [1], [0, 0, 1, 1], [], []>} : vector<64x16xbf16>, vector<16x8xbf16>, vector<64x8xf32> -> vector<64x8xf32>
    %172 = arith.addf %143, %171 : vector<64x8xf32>
    %c0_307 = arith.constant 0 : index
    %c0_308 = arith.constant 0 : index
    %173 = vector.load %arg4[%c0_307, %c0_308] : memref<1x8xf32, #tpu.memory_space<vmem>>, vector<1x8xf32>
    %174 = vector.broadcast %173 : vector<1x8xf32> to vector<64x8xf32>
    %175 = arith.addf %172, %174 : vector<64x8xf32>
    %c0_309 = arith.constant 0 : index
    %c0_310 = arith.constant 0 : index
    %c0_311 = arith.constant 0 : index
    %176 = vector.load %arg2[%c0_309, %c0_310, %c0_311] : memref<1x64x4xbf16, #tpu.memory_space<vmem>>, vector<1x64x4xbf16>
    %177 = vector.shape_cast %176 : vector<1x64x4xbf16> to vector<64x4xbf16>
    %c0_312 = arith.constant 0 : index
    %c0_313 = arith.constant 0 : index
    %178 = vector.load %arg5[%c0_312, %c0_313] : memref<4x8xbf16, #tpu.memory_space<vmem>>, vector<4x8xbf16>
    %cst_314 = arith.constant dense<0.000000e+00> : vector<64x8xf32>
    %179 = tpu.matmul %177, %178, %cst_314 {dimension_numbers = #tpu.dot_dimension_numbers<[1], [0], [0], [1], [0, 0, 1, 1], [], []>} : vector<64x4xbf16>, vector<4x8xbf16>, vector<64x8xf32> -> vector<64x8xf32>
    %c0_315 = arith.constant 0 : index
    %c0_316 = arith.constant 0 : index
    %180 = vector.load %arg6[%c0_315, %c0_316] : memref<1x8xf32, #tpu.memory_space<vmem>>, vector<1x8xf32>
    %181 = vector.broadcast %180 : vector<1x8xf32> to vector<64x8xf32>
    %182 = arith.addf %179, %181 : vector<64x8xf32>
    %183 = arith.addf %175, %182 : vector<64x8xf32>
    %c0_317 = arith.constant 0 : index
    %c0_318 = arith.constant 0 : index
    %c0_319 = arith.constant 0 : index
    %184 = vector.load %arg7[%c0_317, %c0_318, %c0_319] : memref<1x64x8xf32, #tpu.memory_space<vmem>>, vector<1x64x8xf32>
    %185 = vector.shape_cast %184 : vector<1x64x8xf32> to vector<64x8xf32>
    %186 = vector.shape_cast %183 : vector<64x8xf32> to vector<1x64x8xf32>
    tpu.vector_store %arg7[%c0_317, %c0_318, %c0_319], %186 {strides = array<i32>} : memref<1x64x8xf32, #tpu.memory_space<vmem>>, vector<1x64x8xf32>,
    return
  }
  func.func @transform_0(%arg0: i32) -> (i32, i32, i32, i32) {
    %c0_i32 = arith.constant 0 : i32
    %c0_i32_0 = arith.constant 0 : i32
    %c0_i32_1 = arith.constant 0 : i32
    %c0_i32_2 = arith.constant 0 : i32
    return %arg0, %c0_i32, %c0_i32_0, %c0_i32_1 : i32, i32, i32, i32
  }
  func.func @transform_1(%arg0: i32) -> (i32, i32, i32) {
    %c0_i32 = arith.constant 0 : i32
    %c0_i32_0 = arith.constant 0 : i32
    %c0_i32_1 = arith.constant 0 : i32
    return %arg0, %c0_i32, %c0_i32_0 : i32, i32, i32
  }
  func.func @transform_2(%arg0: i32) -> (i32, i32, i32, i32) {
    %c0_i32 = arith.constant 0 : i32
    %c0_i32_0 = arith.constant 0 : i32
    %c0_i32_1 = arith.constant 0 : i32
    %c0_i32_2 = arith.constant 0 : i32
    %c0_i32_3 = arith.constant 0 : i32
    return %c0_i32, %c0_i32_0, %c0_i32_1, %c0_i32_2 : i32, i32, i32, i32
  }
  func.func @transform_3(%arg0: i32) -> (i32, i32) {
    %c0_i32 = arith.constant 0 : i32
    %c0_i32_0 = arith.constant 0 : i32
    %c0_i32_1 = arith.constant 0 : i32
    return %c0_i32, %c0_i32_0 : i32, i32
  }
  func.func @transform_4(%arg0: i32) -> (i32, i32) {
    %c0_i32 = arith.constant 0 : i32
    %c0_i32_0 = arith.constant 0 : i32
    %c0_i32_1 = arith.constant 0 : i32
    return %c0_i32, %c0_i32_0 : i32, i32
  }
  func.func @transform_5(%arg0: i32) -> (i32, i32) {
    %c0_i32 = arith.constant 0 : i32
    %c0_i32_0 = arith.constant 0 : i32
    %c0_i32_1 = arith.constant 0 : i32
    return %c0_i32, %c0_i32_0 : i32, i32
  }
  func.func @transform_6(%arg0: i32) -> (i32, i32, i32) {
    %c0_i32 = arith.constant 0 : i32
    %c0_i32_0 = arith.constant 0 : i32
    %c0_i32_1 = arith.constant 0 : i32
    return %arg0, %c0_i32, %c0_i32_0 : i32, i32, i32
  }
}

</mosaic_0001>

<bundles_post_ra>
// kernel: wide_basic_forward.3
= control target key start
LH: loop header
LB: loop body
LE: loop exit
PB: predicated region body
PF: predicated region fallthrough
CT: control target
= control target key end

     0   :  { %s1796_s21 = smov 0   ;;  %s2152_s0 = inlined_call_operand.vmem [shape: bf16[2,18,9,16], index: 0, kind: input, shape index: {}]   ;;  %s2153_s1 = inlined_call_operand.vmem [shape: bf16[2,64,4], index: 1, kind: input, shape index: {}]   ;;  %s2154_s2 = inlined_call_operand.vmem [shape: bf16[3,2,16,8], index: 2, kind: input, shape index: {}]   ;;  %s2155_s3 = inlined_call_operand.vmem [shape: f32[1,8], index: 3, kind: input, shape index: {}]   ;;  %s2156_s4 = inlined_call_operand.vmem [shape: bf16[4,8], index: 4, kind: input, shape index: {}]   ;;  %s2157_s5 = inlined_call_operand.vmem [shape: f32[1,8], index: 5, kind: input, shape index: {}]   ;;  %s2158_s6 = inlined_call_operand.vmem [shape: f32[2,64,8], index: 6, kind: output, shape index: {}]  }
   0x1 LB: > { %s1448_s22 = sadd.s32 4294967295, %s1759_s21   ;;  %p1452_p0 = scmp.ge.s32.totalorder %s1759_s21, 1  ;;  %s1759_s21 = sphi %s1796_s21, %s16_s21  }
   0x2   : > { %p222_p1 = scmp.lt.s32.totalorder %s1759_s21, 3 }
   0x4   : > { %p223_p2 = pnand %p1452_p0, %p222_p1 }
   0x5   : > { %p257_p3 = scmp.lt.s32.totalorder (!%p223_p2), %s1448_s22, 1 }
   0x6   : > { %226 = sbr.rel (%p223_p2) target bundleno = 296 (0x128), region = 44 }
   0xb   : > { %v1714_v0 = vld [vmem:[%s2154_s2 + $0x8] sm:$0xff]  ;;  %s2162_s22 = smov (!%p257_p3, %s1448_s22), 1  ;;  %v1709_v1 = vld [vmem:[%s2154_s2] sm:$0xff]  ;;  %v1724_v2 = vld [vmem:[%s2154_s2 + $0x18] sm:$0xff]  ;;  %vm274_vm0 = vcmask 125952   ;;  %vm491_vm4 = vcmask 130048  }
   0xc   : > { %511 = vmatpush.bf16.msra.mxu0 %v1714_v0  ;;  %1739 = vmatpush.bf16.msra.mxu3 %v1714_v0  ;;  %v1818_v3 = vld [vmem:[%s2154_s2 + $0x10] sm:$0xff]  ;;  %s1742_s7 = smul.u32 144, %s2162_s22  ;;  %vm309_vm1 = vsmask.f32 3328  ;;  %vm310_vm2 = vsmask.f32 7440 }
   0xd   : > { %1740 = vmatpush.bf16.msra.mxu1 %v1709_v1  ;;  %1741 = vmatpush.bf16.msra.mxu2 %v1818_v3  ;;  %vm1839_vm3 = vmor %vm309_vm1, %vm310_vm2  ;;  %v1734_v46 = vld [vmem:[%s2154_s2 + $0x28] sm:$0xff]  ;;  %vm1331_vm5 = vcmask 1041408   ;;  %s1703_s17 = sshll.u32 %s2162_s22, 5  ;;  %vm1318_vm6 = vcmask 31744   ;;  %s1704_s27 = sshll.u32 %s2162_s22, 6  ;;  %vm1372_vm7 = vcmask 64512  }
   0xe   : > { %s1825_s10 = scalar_lea.vmem %s2152_s0, %s1742_s7  ;;  %s2030_s20 = scalar_lea.vmem %s2153_s1, %s1703_s17 }
   0xf   : > { %v273_v4 = vld [vmem:[%s1825_s10] sm:$0xf]  ;;  %v1458_v5 = vld [vmem:[%s1825_s10 + $0x10] sm:$0xf]  ;;  %v308_v7 = vld [vmem:[%s1825_s10 + $0x4] sm:$0x1]  ;;  %s2105_s30 = scalar_lea.vmem %s2158_s6, %s1704_s27 }
  0x10   : > { %578 = vmatpush.bf16.msrb.mxu0 %v1709_v1  ;;  %910 = vmatpush.bf16.msrb.mxu3 %v1724_v2  ;;  %v307_v6 = vld [vmem:[%s1825_s10] sm:$0xf]  ;;  %275 = vst.msk [vmem:[#allocation2] sm:$0xf] %vm274_vm0, %v273_v4  ;;  %v322_v10 = vshll.u32 %v308_v7, 16  ;;  %v1737_v24 = vld [vmem:[%s2030_s20 + $0x10] sm:$0xff] }
  0x11   : > { %v313_v8 = vshrl.u32 %v307_v6, 16  ;;  %v316_v9 = vshll.u32 %v307_v6, 16  ;;  %278 = vst.msk [vmem:[#allocation2 + $0x4] sm:$0xf] %vm274_vm0, %v1458_v5  ;;  %v1465_v11 = vld [vmem:[%s1825_s10 + $0x10] sm:$0xf]  ;;  %1243 = vmatpush.bf16.msrb.mxu1 %v1734_v46 }
  0x12   : > { %v1466_v14 = vld [vmem:[%s1825_s10 + $0x14] sm:$0x1]  ;;  %v331_v15 = vshrl.u32 %v1465_v11, 16  ;;  %v334_v16 = vshll.u32 %v1465_v11, 16  ;;  %v324_v17 = vrot.slane %v322_v10, 5 }
  0x13   : > { %v315_v12 = vrot.slane %v313_v8, 4  ;;  %v318_v13 = vrot.slane %v316_v9, 5  ;;  %v340_v18 = vshll.u32 %v1466_v14, 16  ;;  %v1459_v22 = vld [vmem:[%s1825_s10 + $0x20] sm:$0xf] }
  0x14   : > { %v333_v20 = vrot.slane %v331_v15, 4  ;;  %v336_v21 = vrot.slane %v334_v16, 5  ;;  %v1460_v23 = vld [vmem:[%s1825_s10 + $0x30] sm:$0xf]  ;;  %v1529_v26 = vld [vmem:[%s1825_s10 + $0x8] sm:$0xf] }
  0x15   : > { %v319_v19 = vor.u32 %v318_v13, %v315_v12  ;;  %v342_v25 = vrot.slane %v340_v18, 5  ;;  %281 = vst.msk [vmem:[#allocation2 + $0x8] sm:$0xf] %vm274_vm0, %v1459_v22  ;;  %v1467_v27 = vld [vmem:[%s1825_s10 + $0x20] sm:$0xf] }
  0x16   : > { %v337_v29 = vor.u32 %v336_v21, %v333_v20  ;;  %284 = vst.msk [vmem:[#allocation2 + $0xc] sm:$0xf] %vm274_vm0, %v1460_v23  ;;  %v1468_v30 = vld [vmem:[%s1825_s10 + $0x24] sm:$0x1]  ;;  %v349_v31 = vshrl.u32 %v1467_v27, 16  ;;  %v352_v33 = vshll.u32 %v1467_v27, 16 }
  0x17   : > { %v320_v28 = vrot.slane %v319_v19, 4  ;;  %v1848_v32 = vld [vmem:[#allocation2] sm:$0xf]  ;;  %v358_v34 = vshll.u32 %v1468_v30, 16  ;;  %v1469_v35 = vld [vmem:[%s1825_s10 + $0x30] sm:$0xf] }
  0x18   : > { %v1851_v36 = vld [vmem:[#allocation2] sm:$0xf0]  ;;  %v338_v38 = vrot.slane %v337_v29, 4  ;;  %v351_v39 = vrot.slane %v349_v31, 4  ;;  %v1470_v40 = vld [vmem:[%s1825_s10 + $0x34] sm:$0x1] }
  0x19   : > { %v325_v37 = vsel %vm1839_vm3, %v320_v28, %v324_v17  ;;  %v354_v41 = vrot.slane %v352_v33, 5  ;;  %v367_v42 = vshrl.u32 %v1469_v35, 16  ;;  %v370_v43 = vshll.u32 %v1469_v35, 16  ;;  %v1531_v53 = vld [vmem:[%s1825_s10 + $0x28] sm:$0xf] }
  0x1a   : > { %327 = vst.msk [vmem:[#allocation2] sm:$0xf] %vm274_vm0, %v325_v37  ;;  %v343_v44 = vsel %vm1839_vm3, %v338_v38, %v342_v25  ;;  %v376_v45 = vshll.u32 %v1470_v40, 16  ;;  %v360_v48 = vrot.slane %v358_v34, 5  ;;  %v1567_v54 = vld [vmem:[%s1825_s10 + $0x28] sm:$0xf] }
  0x1b   : > { %602 = vst.msk [vmem:[#allocation2] sm:$0xf] %vm274_vm0, %v1529_v26  ;;  %v355_v47 = vor.u32 %v354_v41, %v351_v39  ;;  %v369_v49 = vrot.slane %v367_v42, 4  ;;  %v372_v50 = vrot.slane %v370_v43, 5  ;;  %v1568_v58 = vld [vmem:[%s1825_s10 + $0x2c] sm:$0x1] }
  0x1c   : > { %345 = vst.msk [vmem:[#allocation2 + $0x4] sm:$0xf] %vm274_vm0, %v343_v44  ;;  %v1511_v51 = vld [vmem:[#allocation2 + $0x8] sm:$0xf]  ;;  %v378_v52 = vrot.slane %v376_v45, 5  ;;  %v749_v59 = vshrl.u32 %v1567_v54, 16 }
  0x1d   : > { %v1706_v55 = vld [vmem:[#allocation2 + $0x8] sm:$0xf0]  ;;  %v356_v56 = vrot.slane %v355_v47, 4  ;;  %v373_v57 = vor.u32 %v372_v50, %v369_v49  ;;  %v752_v61 = vshll.u32 %v1567_v54, 16  ;;  %v758_v62 = vshll.u32 %v1568_v58, 16 }
  0x1e   : > { %v1512_v60 = vor.u32 %v1706_v55, %v1511_v51  ;;  %v1569_v63 = vld [vmem:[%s1825_s10 + $0x38] sm:$0xf]  ;;  %v1570_v0 = vld [vmem:[%s1825_s10 + $0x3c] sm:$0x1]  ;;  %v751_v4 = vrot.slane %v749_v59, 4 }
  0x1f   : > { %v361_v1 = vsel %vm1839_vm3, %v356_v56, %v360_v48  ;;  %v374_v2 = vrot.slane %v373_v57, 4  ;;  %v767_v5 = vshrl.u32 %v1569_v63, 16  ;;  %v1293_v6 = vld [vmem:[%s2156_s4] sm:$0x3]  ;;  %v1530_v7 = vld [vmem:[%s1825_s10 + $0x18] sm:$0xf] }
  0x20   : > { %363 = vst.msk [vmem:[#allocation2 + $0x8] sm:$0xf] %vm274_vm0, %v361_v1  ;;  %1526 = vmatmul.msk.bf16.vlgmr.msra.gmra.mxu1 %vm491_vm4, %v1512_v60  ;;  %v754_v8 = vrot.slane %v752_v61, 5  ;;  %v770_v9 = vshll.u32 %v1569_v63, 16  ;;  %v1333_v12 = vsel %vm1331_vm5, %v1293_v6, 0  ;;  %v760_v16 = vrot.slane %v758_v62, 5 }
  0x21   : > { %v379_v10 = vsel %vm1839_vm3, %v374_v2, %v378_v52  ;;  %608 = vst.msk [vmem:[#allocation2 + $0x8] sm:$0xf] %vm274_vm0, %v1531_v53  ;;  %v769_v11 = vrot.slane %v767_v5, 4  ;;  %v1461_v13 = vld [vmem:[%s1825_s10 + $0x40] sm:$0xf]  ;;  %v776_v18 = vshll.u32 %v1570_v0, 16  ;;  %1342 = vmatpush.bf16.msrb.mxu2 %v1333_v12 }
  0x22   : > { %381 = vst.msk [vmem:[#allocation2 + $0xc] sm:$0xf] %vm274_vm0, %v379_v10  ;;  %v755_v15 = vor.u32 %v754_v8, %v751_v4  ;;  %v772_v17 = vrot.slane %v770_v9, 5  ;;  %v1462_v19 = vld [vmem:[%s1825_s10 + $0x50] sm:$0xf] }
  0x23   : > { %v1710_v14 = vld [vmem:[#allocation2] sm:$0xff]  ;;  %287 = vst.msk [vmem:[#allocation2 + $0x10] sm:$0xf] %vm274_vm0, %v1461_v13  ;;  %v1473_v28 = vld [vmem:[%s1825_s10 + $0x50] sm:$0xf]  ;;  %v778_v40 = vrot.slane %v776_v18, 5 }
  0x24   : > { %605 = vst.msk [vmem:[#allocation2 + $0x4] sm:$0xf] %vm274_vm0, %v1530_v7  ;;  %v1471_v20 = vld [vmem:[%s1825_s10 + $0x40] sm:$0xf]  ;;  %1501 = vmatmul.msk.bf16.vlgmr.msra.gmra.mxu0 %vm491_vm4, %v1710_v14  ;;  %v756_v21 = vrot.slane %v755_v15, 4  ;;  %v773_v22 = vor.u32 %v772_v17, %v769_v11  ;;  %v403_v34 = vshrl.u32 %v1473_v28, 16  ;;  %v1508_v7 = vor.u32 %v1851_v36, %v1848_v32 }
  0x25   : > { %v1472_v23 = vld [vmem:[%s1825_s10 + $0x44] sm:$0x1]  ;;  %v385_v25 = vshrl.u32 %v1471_v20, 16  ;;  %290 = vst.msk [vmem:[#allocation2 + $0x14] sm:$0xf] %vm274_vm0, %v1462_v19  ;;  %v388_v26 = vshll.u32 %v1471_v20, 16  ;;  %680 = vmatpush.bf16.msra.mxu0 %v1818_v3 }
  0x26   : > { %v394_v27 = vshll.u32 %v1472_v23, 16  ;;  %v1532_v29 = vld [vmem:[%s1825_s10 + $0x38] sm:$0xf]  ;;  %v761_v30 = vsel %vm1839_vm3, %v756_v21, %v760_v16  ;;  %v1474_v33 = vld [vmem:[%s1825_s10 + $0x54] sm:$0x1]  ;;  %v406_v37 = vshll.u32 %v1473_v28, 16 }
  0x27   : > { %v387_v31 = vrot.slane %v385_v25, 4  ;;  %763 = vst.msk [vmem:[#allocation2 + $0x8] sm:$0xf] %vm274_vm0, %v761_v30  ;;  %v390_v35 = vrot.slane %v388_v26, 5  ;;  %v412_v38 = vshll.u32 %v1474_v33, 16  ;;  %v774_v39 = vrot.slane %v773_v22, 4 }
  0x28   : > { %v405_v41 = vrot.slane %v403_v34, 4  ;;  %v396_v43 = vrot.slane %v394_v27, 5  ;;  %v408_v44 = vrot.slane %v406_v37, 5  ;;  %v1571_v46 = vld [vmem:[%s1825_s10 + $0x48] sm:$0xf]  ;;  %v1729_v28 = vld [vmem:[%s2154_s2 + $0x20] sm:$0xff] }
  0x29   : > { %v391_v3 = vor.u32 %v390_v35, %v387_v31  ;;  %v414_v45 = vrot.slane %v412_v38, 5  ;;  %v1572_v47 = vld [vmem:[%s1825_s10 + $0x4c] sm:$0x1]  ;;  %v785_v48 = vshrl.u32 %v1571_v46, 16  ;;  %v788_v49 = vshll.u32 %v1571_v46, 16 }
  0x2a   : > { %v1515_v50 = vld [vmem:[#allocation2 + $0x10] sm:$0xf]  ;;  %v409_v52 = vor.u32 %v408_v44, %v405_v41  ;;  %v794_v53 = vshll.u32 %v1572_v47, 16  ;;  %v1573_v54 = vld [vmem:[%s1825_s10 + $0x58] sm:$0xf]  ;;  %v779_v5 = vsel %vm1839_vm3, %v774_v39, %v778_v40 }
  0x2b   : > { %v392_v51 = vrot.slane %v391_v3, 4  ;;  %v1533_v56 = vld [vmem:[%s1825_s10 + $0x48] sm:$0xf]  ;;  %v787_v57 = vrot.slane %v785_v48, 4  ;;  %v790_v58 = vrot.slane %v788_v49, 5  ;;  %v803_v1 = vshrl.u32 %v1573_v54, 16 }
  0x2c   : > { %v1707_v55 = vld [vmem:[#allocation2 + $0x10] sm:$0xf0]  ;;  %v410_v60 = vrot.slane %v409_v52, 4  ;;  %v796_v62 = vrot.slane %v794_v53, 5  ;;  %v1574_v63 = vld [vmem:[%s1825_s10 + $0x5c] sm:$0x1] }
  0x2d   : > { %v397_v59 = vsel %vm1839_vm3, %v392_v51, %v396_v43  ;;  %v1516_v61 = vor.u32 %v1707_v55, %v1515_v50  ;;  %v791_v0 = vor.u32 %v790_v58, %v787_v57  ;;  %v806_v2 = vshll.u32 %v1573_v54, 16  ;;  %v1463_v4 = vld [vmem:[%s1825_s10 + $0x60] sm:$0xf]  ;;  %v1464_v8 = vld [vmem:[%s1825_s10 + $0x70] sm:$0xf] }
  0x2e   : > { %v1711_v42 = vld [vmem:[#allocation2 + $0x8] sm:$0xff]  ;;  %399 = vst.msk [vmem:[#allocation2 + $0x10] sm:$0xf] %vm274_vm0, %v397_v59  ;;  %v415_v6 = vsel %vm1839_vm3, %v410_v60, %v414_v45  ;;  %v1475_v9 = vld [vmem:[%s1825_s10 + $0x60] sm:$0xf]  ;;  %v805_v12 = vrot.slane %v803_v1, 4 }
  0x2f   : > { %611 = vst.msk [vmem:[#allocation2 + $0xc] sm:$0xf] %vm274_vm0, %v1532_v29  ;;  %1502 = vmatmul.msk.bf16.vlgmr.msra.gmra.mxu3 %vm491_vm4, %v1711_v42  ;;  %v1476_v10 = vld [vmem:[%s1825_s10 + $0x64] sm:$0x1]  ;;  %v792_v11 = vrot.slane %v791_v0, 4  ;;  %v808_v13 = vrot.slane %v806_v2, 5 }
  0x30   : > { %614 = vst.msk [vmem:[#allocation2 + $0x10] sm:$0xf] %vm274_vm0, %v1533_v56  ;;  %1527 = vmatmul.msk.bf16.gmra.mxu1 %vm491_vm4, %v1516_v61  ;;  %v812_v14 = vshll.u32 %v1574_v63, 16  ;;  %v421_v16 = vshrl.u32 %v1475_v9, 16  ;;  %v424_v17 = vshll.u32 %v1475_v9, 16  ;;  %v430_v18 = vshll.u32 %v1476_v10, 16 }
  0x31   : > { %417 = vst.msk [vmem:[#allocation2 + $0x14] sm:$0xf] %vm274_vm0, %v415_v6  ;;  %v797_v32 = vsel %vm1839_vm3, %v792_v11, %v796_v62  ;;  %v809_v36 = vor.u32 %v808_v13, %v805_v12  ;;  %v1477_v19 = vld [vmem:[%s1825_s10 + $0x70] sm:$0xf]  ;;  %v1478_v20 = vld [vmem:[%s1825_s10 + $0x74] sm:$0x1] }
  0x32   : > { %293 = vst.msk [vmem:[#allocation2 + $0x18] sm:$0xf] %vm274_vm0, %v1463_v4  ;;  %v423_v21 = vrot.slane %v421_v16, 4  ;;  %v426_v22 = vrot.slane %v424_v17, 5  ;;  %v439_v23 = vshrl.u32 %v1477_v19, 16  ;;  %v814_v25 = vrot.slane %v812_v14, 5 }
  0x33   : > { %799 = vst.msk [vmem:[#allocation2 + $0x10] sm:$0xf] %vm274_vm0, %v797_v32  ;;  %v442_v26 = vshll.u32 %v1477_v19, 16  ;;  %v448_v27 = vshll.u32 %v1478_v20, 16  ;;  %v1534_v29 = vld [vmem:[%s1825_s10 + $0x58] sm:$0xf] }
  0x34   : > { %1525 = vmatmul.msk.bf16.vlgmr.msrb.gmra.mxu0 %vm491_vm4, %v1508_v7  ;;  %296 = vst.msk [vmem:[#allocation2 + $0x1c] sm:$0xf] %vm274_vm0, %v1464_v8  ;;  %v810_v30 = vrot.slane %v809_v36, 4  ;;  %v427_v31 = vor.u32 %v426_v22, %v423_v21  ;;  %v432_v33 = vrot.slane %v430_v18, 5  ;;  %v441_v34 = vrot.slane %v439_v23, 4  ;;  %v1715_v17 = vld [vmem:[#allocation2] sm:$0xff] }
  0x35   : > { %v444_v35 = vrot.slane %v442_v26, 5  ;;  %v450_v37 = vrot.slane %v448_v27, 5  ;;  %v1535_v38 = vld [vmem:[%s1825_s10 + $0x68] sm:$0xf]  ;;  %v1564_v40 = vld [vmem:[%s1825_s10 + $0xc] sm:$0x1]  ;;  %1013 = vmatpush.bf16.msrb.mxu0 %v1729_v28 }
  0x36   : > { %v1716_v15 = vld [vmem:[#allocation2 + $0x8] sm:$0xff]  ;;  %v428_v42 = vrot.slane %v427_v31, 4  ;;  %v722_v44 = vshll.u32 %v1564_v40, 16  ;;  %v1565_v47 = vld [vmem:[%s1825_s10 + $0x18] sm:$0xf]  ;;  %v815_v60 = vsel %vm1839_vm3, %v810_v30, %v814_v25 }
  0x37   : > { %781 = vst.msk [vmem:[#allocation2 + $0xc] sm:$0xf] %vm274_vm0, %v779_v5  ;;  %1560 = vmatmul.msk.bf16.vlgmr.msra.gmra.mxu2 %vm491_vm4, %v1716_v15  ;;  %v1563_v39 = vld [vmem:[%s1825_s10 + $0x8] sm:$0xf]  ;;  %v445_v46 = vor.u32 %v444_v35, %v441_v34  ;;  %v1566_v52 = vld [vmem:[%s1825_s10 + $0x1c] sm:$0x1] }
  0x38   : > { %v713_v3 = vshrl.u32 %v1563_v39, 16  ;;  %v716_v43 = vshll.u32 %v1563_v39, 16  ;;  %v433_v48 = vsel %vm1839_vm3, %v428_v42, %v432_v33  ;;  %v724_v51 = vrot.slane %v722_v44, 5  ;;  %v1575_v59 = vld [vmem:[%s1825_s10 + $0x68] sm:$0xf] }
  0x39   : > { %v1519_v45 = vld [vmem:[#allocation2 + $0x18] sm:$0xf]  ;;  %v446_v53 = vrot.slane %v445_v46, 4  ;;  %v731_v54 = vshrl.u32 %v1565_v47, 16  ;;  %v734_v55 = vshll.u32 %v1565_v47, 16  ;;  %v740_v56 = vshll.u32 %v1566_v52, 16 }
  0x3a   : > { %v1712_v41 = vld [vmem:[#allocation2 + $0x10] sm:$0xff]  ;;  %v715_v49 = vrot.slane %v713_v3, 4  ;;  %v718_v50 = vrot.slane %v716_v43, 5  ;;  %435 = vst.msk [vmem:[#allocation2 + $0x18] sm:$0xf] %vm274_vm0, %v433_v48  ;;  %v821_v4 = vshrl.u32 %v1575_v59, 16 }
  0x3b   : > { %617 = vst.msk [vmem:[#allocation2 + $0x14] sm:$0xf] %vm274_vm0, %v1534_v29  ;;  %v1708_v57 = vld [vmem:[#allocation2 + $0x18] sm:$0xf0]  ;;  %v451_v61 = vsel %vm1839_vm3, %v446_v53, %v450_v37  ;;  %v733_v62 = vrot.slane %v731_v54, 4  ;;  %v736_v63 = vrot.slane %v734_v55, 5 }
  0x3c   : > { %620 = vst.msk [vmem:[#allocation2 + $0x18] sm:$0xf] %vm274_vm0, %v1535_v38  ;;  %v719_v58 = vor.u32 %v718_v50, %v715_v49  ;;  %v1576_v0 = vld [vmem:[%s1825_s10 + $0x6c] sm:$0x1]  ;;  %v1520_v2 = vor.u32 %v1708_v57, %v1519_v45  ;;  %v824_v5 = vshll.u32 %v1575_v59, 16  ;;  %v742_v7 = vrot.slane %v740_v56, 5 }
  0x3d   : > { %453 = vst.msk [vmem:[#allocation2 + $0x1c] sm:$0xf] %vm274_vm0, %v451_v61  ;;  %v737_v6 = vor.u32 %v736_v63, %v733_v62  ;;  %v830_v8 = vshll.u32 %v1576_v0, 16  ;;  %v1577_v9 = vld [vmem:[%s1825_s10 + $0x78] sm:$0xf]  ;;  %v823_v13 = vrot.slane %v821_v4, 4 }
  0x3e   : > { %v720_v1 = vrot.slane %v719_v58, 4  ;;  %v1578_v10 = vld [vmem:[%s1825_s10 + $0x7c] sm:$0x1]  ;;  %v826_v14 = vrot.slane %v824_v5, 5  ;;  %v839_v15 = vshrl.u32 %v1577_v9, 16  ;;  %v842_v32 = vshll.u32 %v1577_v9, 16 }
  0x3f   : > { %1503 = vmatmul.msk.bf16.gmra.mxu3 %vm491_vm4, %v1712_v41  ;;  %v1605_v16 = vld [vmem:[%s1825_s10 + $0x10] sm:$0xf]  ;;  %v738_v18 = vrot.slane %v737_v6, 4  ;;  %v848_v36 = vshll.u32 %v1578_v10, 16  ;;  %v1536_v19 = vld [vmem:[%s1825_s10 + $0x78] sm:$0xf] }
  0x40   : > { %v725_v12 = vsel %vm1839_vm3, %v720_v1, %v724_v51  ;;  %1528 = vmatmul.msk.bf16.gmra.mxu1 %vm491_vm4, %v1520_v2  ;;  %v827_v20 = vor.u32 %v826_v14, %v823_v13  ;;  %v832_v21 = vrot.slane %v830_v8, 5  ;;  %v841_v22 = vrot.slane %v839_v15, 4  ;;  %v1639_v26 = vld [vmem:[%s1825_s10 + $0x10] sm:$0xf]  ;;  %v1640_v28 = vld [vmem:[%s1825_s10 + $0x14] sm:$0x1] }
  0x41   : > { %727 = vst.msk [vmem:[#allocation2] sm:$0xf] %vm274_vm0, %v725_v12  ;;  %v743_v23 = vsel %vm1839_vm3, %v738_v18, %v742_v7  ;;  %v844_v25 = vrot.slane %v842_v32, 5  ;;  %v1046_v29 = vshrl.u32 %v1639_v26, 16  ;;  %v850_v33 = vrot.slane %v848_v36, 5  ;;  %v1976_v45 = vld [vmem:[#allocation2 + $0x8] sm:$0xff] }
  0x42   : > { %v1717_v11 = vld [vmem:[#allocation2 + $0x10] sm:$0xff]  ;;  %941 = vst.msk [vmem:[#allocation2] sm:$0xf] %vm274_vm0, %v1605_v16  ;;  %v828_v27 = vrot.slane %v827_v20, 4  ;;  %v1049_v34 = vshll.u32 %v1639_v26, 16  ;;  %v1055_v35 = vshll.u32 %v1640_v28, 16 }
  0x43   : > { %817 = vst.msk [vmem:[#allocation2 + $0x14] sm:$0xf] %vm274_vm0, %v815_v60  ;;  %v845_v31 = vor.u32 %v844_v25, %v841_v22  ;;  %v1641_v37 = vld [vmem:[%s1825_s10 + $0x20] sm:$0xf]  ;;  %v1048_v39 = vrot.slane %v1046_v29, 4 }
  0x44   : > { %745 = vst.msk [vmem:[#allocation2 + $0x4] sm:$0xf] %vm274_vm0, %v743_v23  ;;  %v1713_v30 = vld [vmem:[#allocation2 + $0x18] sm:$0xff]  ;;  %1559 = vmatmul.msk.bf16.vlgmr.msra.gmra.mxu0 %vm491_vm4, %v1715_v17  ;;  %v833_v38 = vsel %vm1839_vm3, %v828_v27, %v832_v21  ;;  %v1642_v40 = vld [vmem:[%s1825_s10 + $0x24] sm:$0x1]  ;;  %v1064_v41 = vshrl.u32 %v1641_v37, 16 }
  0x45   : > { %623 = vst.msk [vmem:[#allocation2 + $0x1c] sm:$0xf] %vm274_vm0, %v1536_v19  ;;  %v846_v42 = vrot.slane %v845_v31, 4  ;;  %v1606_v3 = vld [vmem:[%s1825_s10 + $0x20] sm:$0xf]  ;;  %v1051_v43 = vrot.slane %v1049_v34, 5 }
  0x46   : > { %835 = vst.msk [vmem:[#allocation2 + $0x18] sm:$0xf] %vm274_vm0, %v833_v38  ;;  %v1067_v44 = vshll.u32 %v1641_v37, 16  ;;  %v1066_v46 = vrot.slane %v1064_v41, 4  ;;  %v1073_v47 = vshll.u32 %v1642_v40, 16  ;;  %v1057_v51 = vrot.slane %v1055_v35, 5 }
  0x47   : > { %1561 = vmatmul.msk.bf16.gmra.mxu2 %vm491_vm4, %v1717_v11  ;;  %v1607_v48 = vld [vmem:[%s1825_s10 + $0x30] sm:$0xf]  ;;  %v1608_v49 = vld [vmem:[%s1825_s10 + $0x40] sm:$0xf]  ;;  %v1052_v50 = vor.u32 %v1051_v43, %v1048_v39  ;;  %v851_v54 = vsel %vm1839_vm3, %v846_v42, %v850_v33  ;;  %v1644_v56 = vld [vmem:[%s1825_s10 + $0x34] sm:$0x1] }
  0x48   : > { %v1069_v52 = vrot.slane %v1067_v44, 5  ;;  %945 = vst.msk [vmem:[#allocation2 + $0x8] sm:$0xf] %vm274_vm0, %v1607_v48  ;;  %v1643_v53 = vld [vmem:[%s1825_s10 + $0x30] sm:$0xf]  ;;  %v1075_v55 = vrot.slane %v1073_v47, 5 }
  0x49   : > { %947 = vst.msk [vmem:[#allocation2 + $0xc] sm:$0xf] %vm274_vm0, %v1608_v49  ;;  %v1082_v57 = vshrl.u32 %v1643_v53, 16  ;;  %v1053_v59 = vrot.slane %v1052_v50, 4  ;;  %v1085_v61 = vshll.u32 %v1643_v53, 16  ;;  %v1091_v62 = vshll.u32 %v1644_v56, 16 }
  0x4a   : > { %v1070_v60 = vor.u32 %v1069_v52, %v1066_v46  ;;  %v1645_v63 = vld [vmem:[%s1825_s10 + $0x40] sm:$0xf]  ;;  %v1646_v1 = vld [vmem:[%s1825_s10 + $0x44] sm:$0x1]  ;;  %v1995_v12 = vld [vmem:[#allocation2 + $0x10] sm:$0xff] }
  0x4b   : > { %v1986_v58 = vld [vmem:[#allocation2] sm:$0xff]  ;;  %v1084_v0 = vrot.slane %v1082_v57, 4  ;;  %v1100_v2 = vshrl.u32 %v1645_v63, 16  ;;  %v1058_v5 = vsel %vm1839_vm3, %v1053_v59, %v1057_v51  ;;  %v1087_v7 = vrot.slane %v1085_v61, 5  ;;  %v1609_v14 = vld [vmem:[%s1825_s10 + $0x50] sm:$0xf] }
  0x4c   : > { %943 = vst.msk [vmem:[#allocation2 + $0x4] sm:$0xf] %vm274_vm0, %v1606_v3  ;;  %v1071_v6 = vrot.slane %v1070_v60, 4  ;;  %v1093_v8 = vrot.slane %v1091_v62, 5  ;;  %v1103_v10 = vshll.u32 %v1645_v63, 16  ;;  %v1109_v11 = vshll.u32 %v1646_v1, 16 }
  0x4d   : > { %v1718_v4 = vld [vmem:[#allocation2 + $0x18] sm:$0xff]  ;;  %v1102_v9 = vrot.slane %v1100_v2, 4  ;;  %1060 = vst.msk [vmem:[#allocation2] sm:$0xf] %vm274_vm0, %v1058_v5  ;;  %v1088_v13 = vor.u32 %v1087_v7, %v1084_v0  ;;  %v1610_v15 = vld [vmem:[%s1825_s10 + $0x60] sm:$0xf] }
  0x4e   : > { %853 = vst.msk [vmem:[#allocation2 + $0x1c] sm:$0xf] %vm274_vm0, %v851_v54  ;;  %v1105_v16 = vrot.slane %v1103_v10, 5  ;;  %v1647_v17 = vld [vmem:[%s1825_s10 + $0x50] sm:$0xf]  ;;  %v1076_v18 = vsel %vm1839_vm3, %v1071_v6, %v1075_v55  ;;  %v1111_v36 = vrot.slane %v1109_v11, 5 }
  0x4f   : > { %1504 = vmatmul.msk.bf16.gmra.mxu3 %vm491_vm4, %v1713_v30  ;;  %949 = vst.msk [vmem:[#allocation2 + $0x10] sm:$0xf] %vm274_vm0, %v1609_v14  ;;  %v1089_v32 = vrot.slane %v1088_v13, 4  ;;  %v1648_v19 = vld [vmem:[%s1825_s10 + $0x54] sm:$0x1]  ;;  %v1118_v21 = vshrl.u32 %v1647_v17, 16 }
  0x50   : > { %951 = vst.msk [vmem:[#allocation2 + $0x14] sm:$0xf] %vm274_vm0, %v1610_v15  ;;  %v1106_v20 = vor.u32 %v1105_v16, %v1102_v9  ;;  %v1121_v22 = vshll.u32 %v1647_v17, 16  ;;  %v1127_v23 = vshll.u32 %v1648_v19, 16  ;;  %v1649_v25 = vld [vmem:[%s1825_s10 + $0x60] sm:$0xf] }
  0x51   : > { %v1094_v27 = vsel %vm1839_vm3, %v1089_v32, %v1093_v8  ;;  %v1650_v28 = vld [vmem:[%s1825_s10 + $0x64] sm:$0x1]  ;;  %v1136_v29 = vshrl.u32 %v1649_v25, 16  ;;  %v1139_v30 = vshll.u32 %v1649_v25, 16  ;;  %v1726_v31 = vld [vmem:[#allocation2 + $0x8] sm:$0xff]  ;;  %v1120_v34 = vrot.slane %v1118_v21, 4 }
  0x52   : > { %v1107_v33 = vrot.slane %v1106_v20, 4  ;;  %v1123_v35 = vrot.slane %v1121_v22, 5  ;;  %1096 = vst.msk [vmem:[#allocation2 + $0x8] sm:$0xf] %vm274_vm0, %v1094_v27  ;;  %v1145_v39 = vshll.u32 %v1650_v28, 16  ;;  %v1129_v42 = vrot.slane %v1127_v23, 5 }
  0x53   : > { %v1138_v37 = vrot.slane %v1136_v29, 4  ;;  %v1141_v38 = vrot.slane %v1139_v30, 5  ;;  %v1651_v51 = vld [vmem:[%s1825_s10 + $0x70] sm:$0xf]  ;;  %v1653_v52 = vld [vmem:[%s1825_s10 + $0x80] sm:$0xf] }
  0x54   : > { %v1725_v26 = vld [vmem:[#allocation2] sm:$0xff]  ;;  %v1112_v40 = vsel %vm1839_vm3, %v1107_v33, %v1111_v36  ;;  %v1124_v41 = vor.u32 %v1123_v35, %v1120_v34  ;;  %v1147_v43 = vrot.slane %v1145_v39, 5  ;;  %v1611_v54 = vld [vmem:[%s1825_s10 + $0x70] sm:$0xf]  ;;  %v1154_v55 = vshrl.u32 %v1651_v51, 16  ;;  %v1736_v17 = vld [vmem:[%s2030_s20 + $0x8] sm:$0xff] }
  0x55   : > { %1078 = vst.msk [vmem:[#allocation2 + $0x4] sm:$0xf] %vm274_vm0, %v1076_v18  ;;  %1635 = vmatmul.msk.bf16.vlgmr.msrb.gmra.mxu0 %vm491_vm4, %v1725_v26  ;;  %v1142_v3 = vor.u32 %v1141_v38, %v1138_v37  ;;  %v1723_v53 = vld [vmem:[#allocation2 + $0x18] sm:$0xff]  ;;  %v1157_v56 = vshll.u32 %v1651_v51, 16  ;;  %v1612_v57 = vld [vmem:[%s1825_s10 + $0x80] sm:$0xf] }
  0x56   : > { %1114 = vst.msk [vmem:[#allocation2 + $0xc] sm:$0xf] %vm274_vm0, %v1112_v40  ;;  %v1125_v44 = vrot.slane %v1124_v41, 4  ;;  %v1175_v59 = vshll.u32 %v1653_v52, 16  ;;  %v1735_v60 = vld [vmem:[%s2030_s20] sm:$0xff]  ;;  %v1156_v61 = vrot.slane %v1154_v55, 4 }
  0x57   : > { %1562 = vmatmul.msk.bf16.gmra.mxu2 %vm491_vm4, %v1718_v4  ;;  %v1727_v46 = vld [vmem:[#allocation2 + $0x10] sm:$0xff]  ;;  %v1143_v47 = vrot.slane %v1142_v3, 4  ;;  %953 = vst.msk [vmem:[#allocation2 + $0x18] sm:$0xf] %vm274_vm0, %v1611_v54  ;;  %v1159_v62 = vrot.slane %v1157_v56, 5 }
  0x58   : > { %v1130_v48 = vsel %vm1839_vm3, %v1125_v44, %v1129_v42  ;;  %956 = vst.msk [vmem:[#allocation2 + $0x1c] sm:$0xf] %vm274_vm0, %v1612_v57  ;;  %v1652_v63 = vld [vmem:[%s1825_s10 + $0x74] sm:$0x1]  ;;  %v1654_v0 = vld [vmem:[%s1825_s10 + $0x84] sm:$0x1] }
  0x59   : > { %1132 = vst.msk [vmem:[#allocation2 + $0x10] sm:$0xf] %vm274_vm0, %v1130_v48  ;;  %v1148_v50 = vsel %vm1839_vm3, %v1143_v47, %v1147_v43  ;;  %v1177_v2 = vrot.slane %v1175_v59, 5  ;;  %v1160_v4 = vor.u32 %v1159_v62, %v1156_v61  ;;  %v1163_v5 = vshll.u32 %v1652_v63, 16  ;;  %v2092_v55 = vld [vmem:[%s2155_s3] ss:$0 sm:$0xff] }
  0x5a   : > { %1150 = vst.msk [vmem:[#allocation2 + $0x14] sm:$0xf] %vm274_vm0, %v1148_v50  ;;  %v1181_v6 = vshll.u32 %v1654_v0, 16  ;;  %v2097_v56 = vld [vmem:[%s2157_s5] ss:$0 sm:$0xff] }
  0x5b   : > { %v1161_v8 = vrot.slane %v1160_v4, 4  ;;  %v1165_v9 = vrot.slane %v1163_v5, 5 }
  0x5c   : > { %v1730_v49 = vld [vmem:[#allocation2] sm:$0xff]  ;;  %v1183_v10 = vrot.slane %v1181_v6, 5 }
  0x5d   : > { %1677 = vmatmul.msk.bf16.vlgmr.msrb.gmra.mxu1 %vm491_vm4, %v1730_v49  ;;  %v1166_v13 = vsel %vm1839_vm3, %v1161_v8, %v1165_v9  ;;  %v1731_v16 = vld [vmem:[#allocation2 + $0x8] sm:$0xff] }
  0x5f   : > { %1601 = vmatmul.msk.bf16.vlgmr.msrb.gmra.mxu3 %vm491_vm4, %v1986_v58  ;;  %v1172_v58 = vshrl.u32 %v1653_v52, 16  ;;  %v1728_v14 = vld [vmem:[#allocation2 + $0x18] sm:$0xff] }
  0x60   : > { %1168 = vst.msk [vmem:[#allocation2 + $0x18] sm:$0xf] %vm274_vm0, %v1166_v13 }
  0x61   : > { %v1174_v1 = vrot.slane %v1172_v58, 4  ;;  %v1732_v18 = vld [vmem:[#allocation2 + $0x10] sm:$0xff] }
  0x63   : > { %v1178_v7 = vor.u32 %v1177_v2, %v1174_v1 }
  0x65   : > { %1636 = vmatmul.msk.bf16.gmra.mxu0 %vm491_vm4, %v1726_v31  ;;  %v1179_v11 = vrot.slane %v1178_v7, 4 }
  0x67   : > { %1697 = vmatmul.msk.bf16.vlgmr.msrb.gmra.mxu2 %vm1318_vm6, %v1735_v60  ;;  %v1184_v15 = vsel %vm1839_vm3, %v1179_v11, %v1183_v10 }
  0x68   : > { %1186 = vst.msk [vmem:[#allocation2 + $0x1c] sm:$0xf] %vm274_vm0, %v1184_v15 }
  0x6d   : > { %1678 = vmatmul.msk.bf16.gmra.mxu1 %vm491_vm4, %v1731_v16 }
  0x6f   : > { %1602 = vmatmul.msk.bf16.gmra.mxu3 %vm491_vm4, %v1976_v45  ;;  %v1733_v32 = vld [vmem:[#allocation2 + $0x18] sm:$0xff] }
  0x70   : > { %v1738_v45 = vld [vmem:[%s2030_s20 + $0x18] sm:$0xff] }
  0x75   : > { %1637 = vmatmul.msk.bf16.gmra.mxu0 %vm491_vm4, %v1727_v46 }
  0x77   : > { %1698 = vmatmul.msk.bf16.gmra.mxu2 %vm1318_vm6, %v1736_v17 }
  0x7d   : > { %1679 = vmatmul.msk.bf16.gmra.mxu1 %vm491_vm4, %v1732_v18 }
  0x7f   : > { %1603 = vmatmul.msk.bf16.gmra.mxu3 %vm491_vm4, %v1995_v12 }
  0x85   : > { %1638 = vmatmul.msk.bf16.gmra.mxu0 %vm491_vm4, %v1728_v14 }
  0x87   : > { %1699 = vmatmul.msk.bf16.gmra.mxu2 %vm1318_vm6, %v1737_v24 }
  0x8d   : > { %1680 = vmatmul.msk.bf16.gmra.mxu1 %vm491_vm4, %v1733_v32 }
  0x8f   : > { %1604 = vmatmul.msk.bf16.gmra.mxu3 %vm491_vm4, %v1723_v53 }
  0x97   : > { %1700 = vmatmul.msk.bf16.gmra.mxu2 %vm1318_vm6, %v1738_v45 }
  0x9d   : > { %v585_v36 = vpop.f32.mrf.mxu1 }
  0xa1   : > { %v513_v19 = vpop.f32.mrf.mxu0 }
  0xa5   : > { %v587_v20 = vpop.f32.mrf.mxu1 }
  0xa9   : > { %v515_v21 = vpop.f32.mrf.mxu0 }
  0xad   : > { %v2065_v23 = vpop.f32.mrf.mxu1 }
  0xb1   : > { %v580_v22 = vpop.f32.mrf.mxu0 }
  0xb2   : > { %v518_v12 = vpop.f32.mrf.mxu3  ;;  %v581_v44 = vadd.f32 %v580_v22, %v513_v19 }
  0xb3   : > { %v586_v4 = vadd.f32 %v585_v36, %v518_v12 }
  0xb5   : > { %v2067_v28 = vpop.f32.mrf.mxu1 }
  0xb9   : > { %v582_v27 = vpop.f32.mrf.mxu0 }
  0xba   : > { %v520_v25 = vpop.f32.mrf.mxu3  ;;  %v687_v26 = vpop.f32.mrf.mxu2  ;;  %v583_v53 = vadd.f32 %v582_v27, %v515_v21 }
  0xbb   : > { %v704_v6 = vadd.f32 %v687_v26, %v586_v4  ;;  %v588_v17 = vadd.f32 %v587_v20, %v520_v25 }
  0xbd   : > { %v2071_v33 = vpop.f32.mrf.mxu1 }
  0xc1   : > { %v682_v31 = vpop.f32.mrf.mxu0 }
  0xc2   : > { %v2069_v29 = vpop.f32.mrf.mxu3  ;;  %v689_v30 = vpop.f32.mrf.mxu2  ;;  %v702_v47 = vadd.f32 %v682_v31, %v581_v44 }
  0xc3   : > { %v705_v24 = vadd.f32 %v689_v30, %v588_v17  ;;  %v591_v27 = vadd.f32 %v2065_v23, %v2069_v29 }
  0xc5   : > { %v2081_v40 = vpop.f32.mrf.mxu1 }
  0xc9   : > { %v684_v37 = vpop.f32.mrf.mxu0 }
  0xca   : > { %v2073_v34 = vpop.f32.mrf.mxu3  ;;  %v2075_v35 = vpop.f32.mrf.mxu2  ;;  %v703_v57 = vadd.f32 %v684_v37, %v583_v53 }
  0xcb   : > { %v706_v25 = vadd.f32 %v2075_v35, %v591_v27 }
  0xd2   : > { %v2077_v38 = vpop.f32.mrf.mxu3  ;;  %v2079_v39 = vpop.f32.mrf.mxu2 }
  0xd3   : > { %v1015_v41 = vpop.f32.mrf.mxu0 }
  0xda   : > { %v2083_v42 = vpop.f32.mrf.mxu3  ;;  %v2085_v3 = vpop.f32.mrf.mxu2 }
  0xdb   : > { %v1245_v43 = vpop.f32.mrf.mxu1  ;;  %v1017_v46 = vpop.f32.mrf.mxu0 }
  0xe2   : > { %v2087_v48 = vpop.f32.mrf.mxu2  ;;  %v912_v49 = vpop.f32.mrf.mxu3 }
  0xe3   : > { %v932_v50 = vadd.f32 %v912_v49, %v702_v47  ;;  %v1247_v52 = vpop.f32.mrf.mxu1  ;;  %v1020_v58 = vpop.f32.mrf.mxu0  ;;  %v593_v49 = vadd.f32 %v2067_v28, %v2073_v34  ;;  %v596_v28 = vadd.f32 %v2071_v33, %v2077_v38  ;;  %v598_v33 = vadd.f32 %v2081_v40, %v2083_v42 }
  0xe5   : > { %v1035_v51 = vadd.f32 %v1015_v41, %v932_v50  ;;  %v707_v50 = vadd.f32 %v2079_v39, %v593_v49 }
  0xe7   : > { %v1265_v54 = vadd.f32 %v1245_v43, %v1035_v51 }
  0xe9   : > { %v1277_v62 = vadd.f32 %v2092_v55, %v1265_v54 }
  0xea   : > { %v914_v59 = vpop.f32.mrf.mxu3  ;;  %v1344_v60 = vpop.f32.mrf.mxu2 }
  0xeb   : > { %v933_v61 = vadd.f32 %v914_v59, %v703_v57  ;;  %v1345_v63 = vadd.f32 %v2097_v56, %v1344_v60  ;;  %v1250_v2 = vpop.f32.mrf.mxu1  ;;  %v1022_v13 = vpop.f32.mrf.mxu0  ;;  %v708_v60 = vadd.f32 %v2085_v3, %v596_v28  ;;  %v709_v3 = vadd.f32 %v2087_v48, %v598_v33 }
  0xed   : > { %v1036_v0 = vadd.f32 %v1017_v46, %v933_v61  ;;  %v1364_v1 = vadd.f32 %v1345_v63, %v1277_v62 }
  0xef   : > { %v1266_v5 = vadd.f32 %v1247_v52, %v1036_v0  ;;  %1373 = vst.msk [vmem:[%s2105_s30] sm:$0xff] %vm1372_vm7, %v1364_v1 }
  0xf1   : > { %v1278_v10 = vadd.f32 %v2092_v55, %v1266_v5 }
  0xf2   : > { %v917_v7 = vpop.f32.mrf.mxu3  ;;  %v1346_v8 = vpop.f32.mrf.mxu2 }
  0xf3   : > { %v934_v9 = vadd.f32 %v917_v7, %v704_v6  ;;  %v1347_v11 = vadd.f32 %v2097_v56, %v1346_v8  ;;  %v1252_v16 = vpop.f32.mrf.mxu1  ;;  %v1025_v26 = vpop.f32.mrf.mxu0 }
  0xf5   : > { %v1037_v14 = vadd.f32 %v1020_v58, %v934_v9  ;;  %v1365_v15 = vadd.f32 %v1347_v11, %v1278_v10 }
  0xf7   : > { %v1267_v18 = vadd.f32 %v1250_v2, %v1037_v14  ;;  %1374 = vst.msk [vmem:[%s2105_s30 + $0x8] sm:$0xff] %vm1372_vm7, %v1365_v15 }
  0xf9   : > { %v1279_v19 = vadd.f32 %v2092_v55, %v1267_v18 }
  0xfa   : > { %v919_v32 = vpop.f32.mrf.mxu3  ;;  %v1349_v45 = vpop.f32.mrf.mxu2 }
  0xfb   : > { %v935_v36 = vadd.f32 %v919_v32, %v705_v24  ;;  %v1350_v21 = vadd.f32 %v2097_v56, %v1349_v45  ;;  %v1255_v20 = vpop.f32.mrf.mxu1  ;;  %v1027_v29 = vpop.f32.mrf.mxu0 }
  0xfd   : > { %v1038_v12 = vadd.f32 %v1022_v13, %v935_v36  ;;  %v1366_v22 = vadd.f32 %v1350_v21, %v1279_v19 }
  0xff   : > { %v1268_v31 = vadd.f32 %v1252_v16, %v1038_v12  ;;  %1375 = vst.msk [vmem:[%s2105_s30 + $0x10] sm:$0xff] %vm1372_vm7, %v1366_v22 }
 0x101   : > { %v1280_v43 = vadd.f32 %v2092_v55, %v1268_v31 }
 0x102   : > { %v922_v30 = vpop.f32.mrf.mxu3  ;;  %v1351_v37 = vpop.f32.mrf.mxu2 }
 0x103   : > { %v936_v41 = vadd.f32 %v922_v30, %v706_v25  ;;  %v1352_v44 = vadd.f32 %v2097_v56, %v1351_v37  ;;  %v1257_v35 = vpop.f32.mrf.mxu1  ;;  %v1030_v39 = vpop.f32.mrf.mxu0 }
 0x105   : > { %v1039_v46 = vadd.f32 %v1025_v26, %v936_v41  ;;  %v1367_v47 = vadd.f32 %v1352_v44, %v1280_v43 }
 0x107   : > { %v1269_v23 = vadd.f32 %v1255_v20, %v1039_v46  ;;  %1376 = vst.msk [vmem:[%s2105_s30 + $0x18] sm:$0xff] %vm1372_vm7, %v1367_v47 }
 0x109   : > { %v1281_v54 = vadd.f32 %v2092_v55, %v1269_v23 }
 0x10a   : > { %v924_v51 = vpop.f32.mrf.mxu3  ;;  %v1354_v52 = vpop.f32.mrf.mxu2 }
 0x10b   : > { %v937_v53 = vadd.f32 %v924_v51, %v707_v50  ;;  %v1355_v57 = vadd.f32 %v2097_v56, %v1354_v52  ;;  %v1260_v2 = vpop.f32.mrf.mxu1  ;;  %v1032_v11 = vpop.f32.mrf.mxu0 }
 0x10d   : > { %v1040_v58 = vadd.f32 %v1027_v29, %v937_v53  ;;  %v1368_v59 = vadd.f32 %v1355_v57, %v1281_v54 }
 0x10f   : > { %v1270_v34 = vadd.f32 %v1257_v35, %v1040_v58  ;;  %1377 = vst.msk [vmem:[%s2105_s30 + $0x20] sm:$0xff] %vm1372_vm7, %v1368_v59 }
 0x111   : > { %v1282_v0 = vadd.f32 %v2092_v55, %v1270_v34 }
 0x112   : > { %v927_v61 = vpop.f32.mrf.mxu3  ;;  %v1356_v62 = vpop.f32.mrf.mxu2 }
 0x113   : > { %v938_v63 = vadd.f32 %v927_v61, %v708_v60  ;;  %v1357_v1 = vadd.f32 %v2097_v56, %v1356_v62  ;;  %v1262_v15 = vpop.f32.mrf.mxu1 }
 0x115   : > { %v1041_v4 = vadd.f32 %v1030_v39, %v938_v63  ;;  %v1369_v5 = vadd.f32 %v1357_v1, %v1282_v0 }
 0x117   : > { %v1271_v38 = vadd.f32 %v1260_v2, %v1041_v4  ;;  %1378 = vst.msk [vmem:[%s2105_s30 + $0x28] sm:$0xff] %vm1372_vm7, %v1369_v5 }
 0x119   : > { %v1283_v9 = vadd.f32 %v2092_v55, %v1271_v38 }
 0x11a   : > { %v929_v6 = vpop.f32.mrf.mxu3  ;;  %v1359_v7 = vpop.f32.mrf.mxu2 }
 0x11b   : > { %v939_v8 = vadd.f32 %v929_v6, %v709_v3  ;;  %v1360_v10 = vadd.f32 %v2097_v56, %v1359_v7 }
 0x11d   : > { %v1042_v13 = vadd.f32 %v1032_v11, %v939_v8  ;;  %v1370_v14 = vadd.f32 %v1360_v10, %v1283_v9 }
 0x11f   : > { %v1272_v16 = vadd.f32 %v1262_v15, %v1042_v13  ;;  %1379 = vst.msk [vmem:[%s2105_s30 + $0x30] sm:$0xff] %vm1372_vm7, %v1370_v14 }
 0x121   : > { %v1284_v42 = vadd.f32 %v2092_v55, %v1272_v16 }
 0x122   : > { %v1361_v40 = vpop.f32.mrf.mxu2 }
 0x123   : > { %v1362_v48 = vadd.f32 %v2097_v56, %v1361_v40 }
 0x125   : > { %v1371_v17 = vadd.f32 %v1362_v48, %v1284_v42 }
 0x127   : > { %1380 = vst.msk [vmem:[%s2105_s30 + $0x38] sm:$0xff] %vm1372_vm7, %v1371_v17 }
 0x128 PF: > { %s16_s21 = sadd.s32 1, %s1759_s21  }
 0x129   : > { %p13_p4 = scmp.ge.s32.totalorder %s16_s21, 4  }
 0x12b   :  { %15 = sbr.rel (!%p13_p4) target bundleno = 1 (0x1), region = 98 }

// kernel: wide_basic_forward.2
= control target key start
LH: loop header
LB: loop body
LE: loop exit
PB: predicated region body
PF: predicated region fallthrough
CT: control target
= control target key end

     0   :  { %s4344_s30 = smov 0   ;;  %s6287_s0 = inlined_call_operand.vmem [shape: bf16[2,368,4], index: 0, kind: input, shape index: {}]   ;;  %s6288_s1 = inlined_call_operand.vmem [shape: f32[368,1], index: 1, kind: input, shape index: {}]   ;;  %s6289_s2 = inlined_call_operand.vmem [shape: f32[1,4], index: 2, kind: input, shape index: {}]   ;;  %s6290_s3 = inlined_call_operand.vmem [shape: f32[1,4], index: 3, kind: input, shape index: {}]   ;;  %s6291_s4 = inlined_call_operand.vmem [shape: bf16[3,3,4,8], index: 4, kind: input, shape index: {}]   ;;  %s6292_s5 = inlined_call_operand.vmem [shape: f32[1,8], index: 5, kind: input, shape index: {}]   ;;  %s6293_s6 = inlined_call_operand.vmem [shape: f32[1,8], index: 6, kind: input, shape index: {}]   ;;  %s6294_s7 = inlined_call_operand.vmem [shape: f32[1,8], index: 7, kind: input, shape index: {}]   ;;  %s6295_s8 = inlined_call_operand.vmem [shape: f32[324,1], index: 8, kind: input, shape index: {}]   ;;  %s6296_s9 = inlined_call_operand.vmem [shape: bf16[2,324,8], index: 9, kind: output, shape index: {}]  }
   0x1 LB: > { %s3938_s10 = sadd.s32 4294967295, %s4291_s30   ;;  %p3942_p0 = scmp.ge.s32.totalorder %s4291_s30, 1  ;;  %s4291_s30 = sphi %s4344_s30, %s19_s30  }
   0x2   : > { %p287_p1 = scmp.lt.s32.totalorder %s4291_s30, 3 }
   0x4   : > { %p288_p2 = pnand %p3942_p0, %p287_p1 }
   0x6   : > { %291 = sbr.rel (%p288_p2) target bundleno = 1076 (0x434), region = 56 }
   0xb   : > { %v598_v0 = vld [vmem:[%s6288_s1 + $0xd0] sm:$0xff]  ;;  %v596_v1 = vld [vmem:[%s6288_s1 + $0xc0] sm:$0xff]  ;;  %v4293_v3 = vmov 0   ;;  %v599_v4 = vld [vmem:[%s6288_s1 + $0xd8] sm:$0xff]  ;;  %p323_p3 = scmp.lt.s32.totalorder %s3938_s10, 1  ;;  %vm1278_vm0 = vcmask 1041408  }
   0xc   : > { %v584_v2 = vld [vmem:[%s6288_s1 + $0x60] sm:$0xff]  ;;  %4274 = vset.pattern.permute.xlu2 %v4293_v3  ;;  %4273 = vset.pattern.permute.xlu1 %v4293_v3  ;;  %v597_v5 = vld [vmem:[%s6288_s1 + $0xc8] sm:$0xff]  ;;  %v587_v7 = vld [vmem:[%s6288_s1 + $0x78] sm:$0xff]  ;;  %vm1046_vm1 = vsmask.f32 7424  ;;  %vm1214_vm2 = vcmask 31744  }
   0xd   : > { %4272 = vset.pattern.permute.xlu0 %v4293_v3  ;;  %750 = vperm.xlu1 %4273, %v598_v0   ;;  %v585_v6 = vld [vmem:[%s6288_s1 + $0x68] sm:$0xff]  ;;  %v586_v8 = vld [vmem:[%s6288_s1 + $0x70] sm:$0xff]  ;;  %v572_v9 = vld [vmem:[%s6288_s1] sm:$0xff]  ;;  %s6583_s10 = smov (!%p323_p3, %s3938_s10), 1  ;;  %vm1997_vm3 = vsmask.f32 6400 }
   0xe   : > { %740 = vperm.xlu0 %4272, %v596_v1   ;;  %680 = vperm.xlu2 %4274, %v584_v2   ;;  %v574_v10 = vld [vmem:[%s6288_s1 + $0x10] sm:$0xff]  ;;  %v573_v11 = vld [vmem:[%s6288_s1 + $0x8] sm:$0xff]  ;;  %v575_v12 = vld [vmem:[%s6288_s1 + $0x18] sm:$0xff]  ;;  %s4261_s26 = smul.u32 184, %s6583_s10  ;;  %vm1555_vm4 = vcmask 1046528   ;;  %vm2313_vm6 = vcmask 1045504  }
   0xf   : > { %v601_v13 = vld [vmem:[%s6288_s1 + $0xe8] sm:$0xff]  ;;  %v600_v14 = vld [vmem:[%s6288_s1 + $0xe0] sm:$0xff]  ;;  %v603_v19 = vld [vmem:[%s6288_s1 + $0xf8] sm:$0xff]  ;;  %vm2758_vm5 = vsmask.f32 5376  ;;  %vm3074_vm7 = vcmask 1044480  }
  0x10   : > { %v588_v15 = vld [vmem:[%s6288_s1 + $0x80] sm:$0xff]  ;;  %v589_v17 = vld [vmem:[%s6288_s1 + $0x88] sm:$0xff]  ;;  %v602_v20 = vld [vmem:[%s6288_s1 + $0xf0] sm:$0xff]  ;;  %s4481_s16 = scalar_lea.vmem %s6287_s0, %s4261_s26  ;;  %s4262_s17 = smul.u32 164, %s6583_s10  ;;  %vm3840_vm8 = vcmask 60416   ;;  %vm3881_vm9 = vcmask 58368  }
  0x11   : > { %v576_v16 = vld [vmem:[%s6288_s1 + $0x20] sm:$0xff]  ;;  %v577_v18 = vld [vmem:[%s6288_s1 + $0x28] sm:$0xff]  ;;  %v590_v21 = vld [vmem:[%s6288_s1 + $0x90] sm:$0xff] }
  0x12   : > { %v578_v22 = vld [vmem:[%s6288_s1 + $0x30] sm:$0xff]  ;;  %v591_v23 = vld [vmem:[%s6288_s1 + $0x98] sm:$0xff]  ;;  %v605_v25 = vld [vmem:[%s6288_s1 + $0x108] sm:$0xff]  ;;  %s5880_s10 = scalar_lea.vmem %s6296_s9, %s4262_s17 }
  0x13   : > { %v579_v24 = vld [vmem:[%s6288_s1 + $0x38] sm:$0xff]  ;;  %v604_v26 = vld [vmem:[%s6288_s1 + $0x100] sm:$0xff]  ;;  %v610_v28 = vld [vmem:[%s6288_s1 + $0x130] sm:$0xff] }
  0x14   : > { %v608_v27 = vld [vmem:[%s6288_s1 + $0x120] sm:$0xff]  ;;  %v609_v29 = vld [vmem:[%s6288_s1 + $0x128] sm:$0xff]  ;;  %v611_v30 = vld [vmem:[%s6288_s1 + $0x138] sm:$0xff] }
  0x15   : > { %755 = vperm.xlu1 %4273, %v599_v4   ;;  %v593_v31 = vld [vmem:[%s6288_s1 + $0xa8] sm:$0xff]  ;;  %v592_v32 = vld [vmem:[%s6288_s1 + $0xa0] sm:$0xff]  ;;  %v606_v34 = vld [vmem:[%s6288_s1 + $0x110] sm:$0xff] }
  0x16   : > { %745 = vperm.xlu0 %4272, %v597_v5   ;;  %685 = vperm.xlu2 %4274, %v585_v6   ;;  %v580_v33 = vld [vmem:[%s6288_s1 + $0x40] sm:$0xff]  ;;  %v581_v35 = vld [vmem:[%s6288_s1 + $0x48] sm:$0xff]  ;;  %v607_v36 = vld [vmem:[%s6288_s1 + $0x118] sm:$0xff] }
  0x17   : > { %v594_v38 = vld [vmem:[%s6288_s1 + $0xb0] sm:$0xff]  ;;  %v612_v39 = vld [vmem:[%s6288_s1 + $0x140] sm:$0xff]  ;;  %v595_v40 = vld [vmem:[%s6288_s1 + $0xb8] sm:$0xff] }
  0x18   : > { %v4241_v41 = vld [vmem:[%s4481_s16 + $0x30] sm:$0xff]   ;;  %v4248_v43 = vld [vmem:[%s4481_s16 + $0x68] sm:$0xff]   ;;  %v4488_v45 = vld [vmem:[%s6289_s2] ss:$0 sm:$0xff] }
  0x19   : > { %v4170_v44 = vunpack.c.l.bf16 %v4241_v41  ;;  %v4171_v46 = vunpack.c.h.bf16 %v4241_v41  ;;  %v583_v47 = vld [vmem:[%s6288_s1 + $0x58] sm:$0xff]  ;;  %v4247_v48 = vld [vmem:[%s4481_s16 + $0x60] sm:$0xff]   ;;  %v582_v49 = vld [vmem:[%s6288_s1 + $0x50] sm:$0xff]  ;;  %v4198_v52 = vunpack.c.l.bf16 %v4248_v43  ;;  %v4199_v60 = vunpack.c.h.bf16 %v4248_v43 }
  0x1a   : > { %v613_v50 = vld [vmem:[%s6288_s1 + $0x148] sm:$0xff]  ;;  %v3945_v51 = vld [vmem:[%s6291_s4 + $0x2] sm:$0x3]  ;;  %v4194_v54 = vunpack.c.l.bf16 %v4247_v48  ;;  %v4508_v56 = vld [vmem:[%s6290_s3] ss:$0 sm:$0xff]  ;;  %v4195_v62 = vunpack.c.h.bf16 %v4247_v48 }
  0x1b   : > { %v1280_v53 = vsel %vm1278_vm0, %v3945_v51, 0  ;;  %v442_v55 = vmul.f32 %v4488_v45, %v4170_v44  ;;  %v443_v57 = vmul.f32 %v4488_v45, %v4171_v46  ;;  %v456_v59 = vmul.f32 %v4488_v45, %v4198_v52  ;;  %v615_v1 = vld [vmem:[%s6288_s1 + $0x158] sm:$0xff]  ;;  %v614_v2 = vld [vmem:[%s6288_s1 + $0x150] sm:$0xff]  ;;  %v616_v3 = vld [vmem:[%s6288_s1 + $0x160] sm:$0xff] }
  0x1c   : > { %4259 = vmatpush.bf16.msra.mxu2 %v1280_v53  ;;  %4258 = vmatpush.bf16.msra.mxu1 %v1280_v53  ;;  %v454_v61 = vmul.f32 %v4488_v45, %v4194_v54  ;;  %v4145_v4 = vld [vmem:[%s4481_s16] sm:$0xff]   ;;  %v457_v6 = vmul.f32 %v4488_v45, %v4199_v60  ;;  %v3515_v60 = vld [vmem:[%s6295_s8 + $0x18] sm:$0xff] }
  0x1d   : > { %695 = vperm.xlu1 %4273, %v587_v7   ;;  %1289 = vmatpush.bf16.msra.mxu0 %v1280_v53  ;;  %v492_v63 = vadd.f32 %v4508_v56, %v442_v55  ;;  %v493_v0 = vadd.f32 %v4508_v56, %v443_v57  ;;  %v506_v5 = vadd.f32 %v4508_v56, %v456_v59  ;;  %v4557_v48 = vld [vmem:[%s4481_s16 + $0x40] sm:$0xff]  }
  0x1e   : > { %690 = vperm.xlu0 %4272, %v586_v8   ;;  %620 = vperm.xlu2 %4274, %v572_v9   ;;  %v504_v7 = vadd.f32 %v4508_v56, %v454_v61  ;;  %v455_v8 = vmul.f32 %v4488_v45, %v4195_v62  ;;  %v4242_v9 = vld [vmem:[%s4481_s16 + $0x38] sm:$0xff]  }
  0x1f   : > { %4260 = vmatpush.bf16.msra.mxu3 %v1280_v53 }
  0x25   : > { %630 = vperm.xlu1 %4273, %v574_v10   ;;  %v538_v10 = vmax.f32 %v492_v63, 0.0  ;;  %v4178_v63 = vunpack.c.l.bf16 %v4557_v48 }
  0x26   : > { %625 = vperm.xlu0 %4272, %v573_v11   ;;  %635 = vperm.xlu2 %4274, %v575_v12   ;;  %v539_v11 = vmax.f32 %v493_v0, 0.0  ;;  %v4236_v12 = vld [vmem:[%s4481_s16 + $0x8] sm:$0xff]   ;;  %v3514_v0 = vld [vmem:[%s6295_s8 + $0x10] sm:$0xff] }
  0x2d   : > { %765 = vperm.xlu1 %4273, %v601_v13   ;;  %v4146_v13 = vunpack.c.l.bf16 %v4145_v4 }
  0x2e   : > { %760 = vperm.xlu0 %4272, %v600_v14   ;;  %700 = vperm.xlu2 %4274, %v588_v15   ;;  %v552_v15 = vmax.f32 %v506_v5, 0.0  ;;  %v4575_v5 = vld [vmem:[%s4481_s16 + $0x10] sm:$0xff]  }
  0x35   : > { %640 = vperm.xlu1 %4273, %v576_v16  }
  0x36   : > { %705 = vperm.xlu0 %4272, %v589_v17   ;;  %645 = vperm.xlu2 %4274, %v577_v18   ;;  %v507_v18 = vadd.f32 %v4508_v56, %v457_v6 }
  0x3d   : > { %775 = vperm.xlu1 %4273, %v603_v19   ;;  %v4175_v19 = vunpack.c.h.bf16 %v4242_v9 }
  0x3e   : > { %770 = vperm.xlu0 %4272, %v602_v20   ;;  %710 = vperm.xlu2 %4274, %v590_v21   ;;  %v550_v20 = vmax.f32 %v504_v7, 0.0  ;;  %v4151_v21 = vunpack.c.h.bf16 %v4236_v12  ;;  %v4249_v7 = vld [vmem:[%s4481_s16 + $0x70] sm:$0xff]  }
  0x45   : > { %650 = vperm.xlu1 %4273, %v578_v22   ;;  %v505_v22 = vadd.f32 %v4508_v56, %v455_v8 }
  0x46   : > { %715 = vperm.xlu0 %4272, %v591_v23   ;;  %655 = vperm.xlu2 %4274, %v579_v24   ;;  %v4174_v23 = vunpack.c.l.bf16 %v4242_v9 }
  0x4d   : > { %785 = vperm.xlu1 %4273, %v605_v25  }
  0x4e   : > { %780 = vperm.xlu0 %4272, %v604_v26   ;;  %800 = vperm.xlu2 %4274, %v608_v27   ;;  %v3512_v26 = vld [vmem:[%s6295_s8] sm:$0xff]  ;;  %v430_v27 = vmul.f32 %v4488_v45, %v4146_v13 }
  0x50   : > { %v4552_v41 = vadd.f32 %v4508_v56, %v430_v27 }
  0x52   : > { %v526_v8 = vmax.f32 %v4552_v41, 0.0  ;;  %v4623_v41 = vld [vmem:[%s4481_s16 + $0x48] sm:$0xff]  }
  0x55   : > { %810 = vperm.xlu1 %4273, %v610_v28   ;;  %v617_v28 = vld [vmem:[%s6288_s1 + $0x168] sm:$0xff] }
  0x56   : > { %805 = vperm.xlu0 %4272, %v609_v29   ;;  %815 = vperm.xlu2 %4274, %v611_v30   ;;  %v3513_v29 = vld [vmem:[%s6295_s8 + $0x8] sm:$0xff] }
  0x5d   : > { %725 = vperm.xlu1 %4273, %v593_v31   ;;  %v553_v31 = vmax.f32 %v507_v18, 0.0  ;;  %v4590_v18 = vmul.f32 %v4488_v45, %v4178_v63 }
  0x5e   : > { %720 = vperm.xlu0 %4272, %v592_v32   ;;  %660 = vperm.xlu2 %4274, %v580_v33   ;;  %v445_v32 = vmul.f32 %v4488_v45, %v4175_v19  ;;  %v4150_v33 = vunpack.c.l.bf16 %v4236_v12 }
  0x65   : > { %790 = vperm.xlu1 %4273, %v606_v34  }
  0x66   : > { %665 = vperm.xlu0 %4272, %v581_v35   ;;  %795 = vperm.xlu2 %4274, %v607_v36   ;;  %v433_v35 = vmul.f32 %v4488_v45, %v4151_v21  ;;  %v551_v36 = vmax.f32 %v505_v22, 0.0  ;;  %v4203_v21 = vunpack.c.h.bf16 %v4249_v7  ;;  %v3988_v22 = vld [vmem:[%s6291_s4 + $0x4] sm:$0x3] }
  0x68   : > { %v4466_v37 = vpop.permute.xlu2 %680  ;;  %v483_v52 = vadd.f32 %v4508_v56, %v433_v35 }
  0x69   : > { %v860_v24 = vmul.f32 %v4466_v37, %v538_v10  ;;  %v444_v37 = vmul.f32 %v4488_v45, %v4174_v23  ;;  %v940_v23 = vld [vmem:[%s6291_s4] sm:$0x3] }
  0x6a   : > { %v529_v13 = vmax.f32 %v483_v52, 0.0 }
  0x6b   : > { %v494_v54 = vadd.f32 %v4508_v56, %v444_v37  ;;  %v1438_v37 = vsel %vm1278_vm0, %v940_v23, 0 }
  0x6c   : > { %1447 = vmatpush.bf16.msrb.mxu1 %v1438_v37 }
  0x6d   : > { %730 = vperm.xlu1 %4273, %v594_v38   ;;  %v906_v38 = vpack.c.bf16 %v860_v24, %v860_v24 }
  0x6e   : > { %820 = vperm.xlu0 %4272, %v612_v39   ;;  %735 = vperm.xlu2 %4274, %v595_v40   ;;  %v4147_v40 = vunpack.c.h.bf16 %v4145_v4 }
  0x6f   : > { %v996_v55 = vunpack.c.l.b16 %v906_v38 }
  0x70   : > { %v686_v42 = vpop.permute.xlu2 %685  ;;  %v431_v61 = vmul.f32 %v4488_v45, %v4147_v40  ;;  %v3519_v40 = vld [vmem:[%s6295_s8 + $0x38] sm:$0xff] }
  0x71   : > { %v861_v25 = vmul.f32 %v686_v42, %v539_v11  ;;  %v540_v11 = vmax.f32 %v494_v54, 0.0 }
  0x73   : > { %v907_v39 = vpack.c.bf16 %v861_v25, %v861_v25 }
  0x75   : > { %675 = vperm.xlu1 %4273, %v583_v47   ;;  %v997_v57 = vunpack.c.l.b16 %v907_v39  ;;  %v3517_v39 = vld [vmem:[%s6295_s8 + $0x28] sm:$0xff] }
  0x76   : > { %670 = vperm.xlu0 %4272, %v582_v49   ;;  %825 = vperm.xlu2 %4274, %v613_v50   ;;  %v495_v49 = vadd.f32 %v4508_v56, %v445_v32  ;;  %v432_v50 = vmul.f32 %v4488_v45, %v4150_v33  ;;  %v4202_v32 = vunpack.c.l.bf16 %v4249_v7 }
  0x77   : > { %v4582_v12 = vpack.c.b16 %v997_v57, %v996_v55  ;;  %v4154_v57 = vunpack.c.l.bf16 %v4575_v5 }
  0x78   : > { %v4511_v58 = vpop.permute.xlu2 %620  ;;  %v541_v4 = vmax.f32 %v495_v49, 0.0  ;;  %v4578_v6 = vadd.f32 %v4508_v56, %v432_v50  ;;  %v458_v54 = vmul.f32 %v4488_v45, %v4202_v32 }
  0x79   : > { %6379 = vst [vmem:[#allocation2_spill] sm:$0xff] %v4582_v12 }
  0x7a   : > { %v528_v27 = vmax.f32 %v4578_v6, 0.0 }
  0x7d   : > { %835 = vperm.xlu1 %4273, %v615_v1   ;;  %v3516_v1 = vld [vmem:[%s6295_s8 + $0x20] sm:$0xff] }
  0x7e   : > { %830 = vperm.xlu0 %4272, %v614_v2   ;;  %840 = vperm.xlu2 %4274, %v616_v3  }
  0x7f   : > { %v751_v14 = vpop.permute.xlu1 %750 }
  0x80   : > { %v741_v16 = vpop.permute.xlu0 %740  ;;  %v4533_v17 = vpop.permute.xlu2 %635  ;;  %v874_v30 = vmul.f32 %v751_v14, %v552_v15  ;;  %v481_v15 = vadd.f32 %v4508_v56, %v431_v61 }
  0x81   : > { %v872_v34 = vmul.f32 %v741_v16, %v550_v20  ;;  %v4155_v20 = vunpack.c.h.bf16 %v4575_v5  ;;  %v851_v49 = vmul.f32 %v4533_v17, %v529_v13  ;;  %v4640_v17 = vshrl.u32 %v4582_v12, 16 }
  0x82   : > { %v920_v43 = vpack.c.bf16 %v874_v30, %v874_v30  ;;  %v527_v35 = vmax.f32 %v481_v15, 0.0  ;;  %v4179_v5 = vunpack.c.h.bf16 %v4557_v48  ;;  %v3521_v48 = vld [vmem:[%s6295_s8 + $0x48] sm:$0xff] }
  0x83   : > { %v918_v51 = vpack.c.bf16 %v872_v34, %v872_v34  ;;  %v3518_v34 = vld [vmem:[%s6295_s8 + $0x30] sm:$0xff]  ;;  %v435_v55 = vmul.f32 %v4488_v45, %v4155_v20  ;;  %6385 = vst [vmem:[#allocation8_spill] sm:$0xff] %v4640_v17 }
  0x84   : > { %v1010_v2 = vunpack.c.l.b16 %v920_v43  ;;  %v447_v32 = vmul.f32 %v4488_v45, %v4179_v5 }
  0x85   : > { %3555 = vperm.xlu1 %4273, %v3512_v26   ;;  %v1008_v9 = vunpack.c.l.b16 %v918_v51  ;;  %v485_v13 = vadd.f32 %v4508_v56, %v435_v55 }
  0x86   : > { %845 = vperm.xlu0 %4272, %v617_v28   ;;  %3560 = vperm.xlu2 %4274, %v3513_v29   ;;  %v1661_v28 = vsel %vm1278_vm0, %v3988_v22, 0  ;;  %v3520_v22 = vld [vmem:[%s6295_s8 + $0x40] sm:$0xff] }
  0x87   : > { %v756_v42 = vpop.permute.xlu1 %755  ;;  %1670 = vmatpush.bf16.msrb.mxu2 %v1661_v28 }
  0x88   : > { %v875_v44 = vmul.f32 %v756_v42, %v553_v31  ;;  %v746_v46 = vpop.permute.xlu0 %745  ;;  %v4554_v47 = vpop.permute.xlu2 %700 }
  0x89   : > { %v873_v53 = vmul.f32 %v746_v46, %v551_v36  ;;  %v4613_v36 = vshll.u32 %v4582_v12, 16  ;;  %v848_v46 = vmul.f32 %v4511_v58, %v526_v8  ;;  %v4182_v58 = vunpack.c.l.bf16 %v4623_v41 }
  0x8a   : > { %v921_v59 = vpack.c.bf16 %v875_v44, %v875_v44  ;;  %v459_v44 = vmul.f32 %v4488_v45, %v4203_v21 }
  0x8b   : > { %v919_v62 = vpack.c.bf16 %v873_v53, %v873_v53  ;;  %6383 = vst [vmem:[#allocation6_spill] sm:$0xff] %v4613_v36  ;;  %v894_v7 = vpack.c.bf16 %v848_v46, %v848_v46  ;;  %v448_v21 = vmul.f32 %v4488_v45, %v4182_v58 }
  0x8c   : > { %v1011_v3 = vunpack.c.l.b16 %v921_v59  ;;  %v509_v63 = vadd.f32 %v4508_v56, %v459_v44 }
  0x8d   : > { %v1009_v10 = vunpack.c.l.b16 %v919_v62  ;;  %3570 = vperm.xlu1 %4273, %v3515_v60   ;;  %v6297_v62 = vrot.slane %v4613_v36, 1 }
  0x8e   : > { %v4584_v14 = vpack.c.b16 %v1011_v3, %v1010_v2  ;;  %3565 = vperm.xlu0 %4272, %v3514_v0   ;;  %3575 = vperm.xlu2 %4274, %v3516_v1   ;;  %v4032_v0 = vld [vmem:[%s6291_s4 + $0x8] sm:$0x3]  ;;  %v897_v1 = vpack.c.bf16 %v851_v49, %v851_v49  ;;  %v531_v49 = vmax.f32 %v485_v13, 0.0  ;;  %v3523_v13 = vld [vmem:[%s6295_s8 + $0x58] sm:$0xff] }
  0x8f   : > { %v4587_v16 = vpack.c.b16 %v1009_v10, %v1008_v9  ;;  %v696_v19 = vpop.permute.xlu1 %695  ;;  %v2155_v6 = vsel %vm1278_vm0, %v4032_v0, 0  ;;  %v508_v10 = vadd.f32 %v4508_v56, %v458_v54  ;;  %v1101_v23 = vor.u32 %v4640_v17, %v6297_v62 }
  0x90   : > { %6380 = vst [vmem:[#allocation3_spill] sm:$0xff] %v4584_v14  ;;  %v863_v24 = vmul.f32 %v696_v19, %v541_v4  ;;  %v691_v25 = vpop.permute.xlu0 %690  ;;  %v4599_v26 = vpop.permute.xlu2 %645  ;;  %v4607_v31 = vshll.u32 %v4584_v14, 16  ;;  %2164 = vmatpush.bf16.msrb.mxu0 %v2155_v6  ;;  %v434_v19 = vmul.f32 %v4488_v45, %v4154_v57  ;;  %v4699_v54 = vadd.f32 %v4508_v56, %v448_v21  ;;  %v3524_v6 = vld [vmem:[%s6295_s8 + $0x60] sm:$0xff] }
  0x91   : > { %6381 = vst [vmem:[#allocation4_spill] sm:$0xff] %v4587_v16  ;;  %v862_v29 = vmul.f32 %v691_v25, %v540_v11  ;;  %v4604_v30 = vshll.u32 %v4587_v16, 16  ;;  %v4627_v43 = vshrl.u32 %v4587_v16, 16  ;;  %v496_v11 = vadd.f32 %v4508_v56, %v4590_v18  ;;  %v3522_v18 = vld [vmem:[%s6295_s8 + $0x50] sm:$0xff]  ;;  %v4681_v25 = vld [vmem:[%s4481_s16 + $0x18] sm:$0xff]  }
  0x92   : > { %6382 = vst [vmem:[#allocation5_spill] sm:$0xff] %v4607_v31  ;;  %v909_v33 = vpack.c.bf16 %v863_v24, %v863_v24  ;;  %v1153_v53 = vrot.slane %v4607_v31, 1  ;;  %v554_v37 = vmax.f32 %v508_v10, 0.0  ;;  %v484_v44 = vadd.f32 %v4508_v56, %v434_v19 }
  0x93   : > { %v908_v38 = vpack.c.bf16 %v862_v29, %v862_v29  ;;  %v6298_v42 = vrot.slane %v4604_v30, 1  ;;  %6384 = vst [vmem:[#allocation7_spill] sm:$0xff] %v4627_v43  ;;  %v555_v29 = vmax.f32 %v509_v63, 0.0  ;;  %v542_v46 = vmax.f32 %v496_v11, 0.0 }
  0x94   : > { %v999_v50 = vunpack.c.l.b16 %v909_v33  ;;  %v984_v33 = vunpack.c.l.b16 %v894_v7  ;;  %v530_v7 = vmax.f32 %v484_v44, 0.0 }
  0x95   : > { %v998_v51 = vunpack.c.l.b16 %v908_v38  ;;  %3585 = vperm.xlu1 %4273, %v3518_v34   ;;  %v1149_v52 = vor.u32 %v4627_v43, %v6298_v42  ;;  %v4250_v38 = vld [vmem:[%s4481_s16 + $0x78] sm:$0xff]   ;;  %v864_v10 = vmul.f32 %v4554_v47, %v542_v46 }
  0x96   : > { %3580 = vperm.xlu0 %4272, %v3517_v39   ;;  %3590 = vperm.xlu2 %4274, %v3519_v40   ;;  %v4159_v40 = vunpack.c.h.bf16 %v4681_v25 }
  0x97   : > { %v4643_v59 = vpack.c.b16 %v999_v50, %v998_v51  ;;  %v631_v60 = vpop.permute.xlu1 %630  ;;  %v1154_v61 = vsel %vm1046_vm1, %v1149_v52, %v1153_v53  ;;  %v4696_v52 = vld [vmem:[%s4481_s16 + $0x90] sm:$0xff]  }
  0x98   : > { %v850_v2 = vmul.f32 %v631_v60, %v528_v27  ;;  %v626_v3 = vpop.permute.xlu0 %625  ;;  %v4653_v4 = vpop.permute.xlu2 %710  ;;  %3958 = vmatmul.msk.bf16.vlgmr.msra.gmra.mxu2 %vm1214_vm2, %v1154_v61  ;;  %v987_v27 = vunpack.c.l.b16 %v897_v1  ;;  %v497_v60 = vadd.f32 %v4508_v56, %v447_v32  ;;  %v4207_v61 = vunpack.c.h.bf16 %v4250_v38 }
  0x99   : > { %6386 = vst [vmem:[#allocation9_spill] sm:$0xff] %v4643_v59  ;;  %v849_v8 = vmul.f32 %v626_v3, %v527_v35  ;;  %v4659_v9 = vshll.u32 %v4643_v59, 16  ;;  %v437_v5 = vmul.f32 %v4488_v45, %v4159_v40  ;;  %v544_v32 = vmax.f32 %v4699_v54, 0.0 }
  0x9a   : > { %v896_v15 = vpack.c.bf16 %v850_v2, %v850_v2  ;;  %v4206_v2 = vunpack.c.l.bf16 %v4250_v38 }
  0x9b   : > { %6387 = vst [vmem:[#allocation10_spill] sm:$0xff] %v4659_v9  ;;  %v895_v20 = vpack.c.bf16 %v849_v8, %v849_v8  ;;  %v1105_v24 = vrot.slane %v4659_v9, 1  ;;  %v4218_v8 = vunpack.c.l.bf16 %v4696_v52 }
  0x9c   : > { %v986_v28 = vunpack.c.l.b16 %v896_v15  ;;  %v3525_v15 = vld [vmem:[%s6295_s8 + $0x68] sm:$0xff] }
  0x9d   : > { %v985_v34 = vunpack.c.l.b16 %v895_v20  ;;  %3600 = vperm.xlu1 %4273, %v3521_v48   ;;  %v1106_v35 = vsel %vm1046_vm1, %v1101_v23, %v1105_v24  ;;  %v853_v20 = vmul.f32 %v4599_v26, %v531_v49  ;;  %v4722_v23 = vld [vmem:[%s4481_s16 + $0x98] sm:$0xff]   ;;  %v466_v26 = vmul.f32 %v4488_v45, %v4218_v8  ;;  %v3528_v8 = vld [vmem:[%s6295_s8 + $0x80] sm:$0xff] }
  0x9e   : > { %v4688_v39 = vpack.c.b16 %v987_v27, %v986_v28  ;;  %3595 = vperm.xlu0 %4272, %v3520_v22   ;;  %3605 = vperm.xlu2 %4274, %v3522_v18   ;;  %v543_v22 = vmax.f32 %v497_v60, 0.0  ;;  %v461_v18 = vmul.f32 %v4488_v45, %v4207_v61  ;;  %v4223_v44 = vunpack.c.h.bf16 %v4722_v23 }
  0x9f   : > { %v4692_v50 = vpack.c.b16 %v985_v34, %v984_v33  ;;  %3952 = vmatmul.msk.bf16.vlgmr.msra.gmra.mxu1 %vm1214_vm2, %v1106_v35  ;;  %v766_v51 = vpop.permute.xlu1 %765  ;;  %v4731_v33 = vadd.f32 %v4508_v56, %v437_v5  ;;  %v4158_v34 = vunpack.c.l.bf16 %v4681_v25  ;;  %v910_v35 = vpack.c.bf16 %v864_v10, %v864_v10 }
  0xa0   : > { %v877_v55 = vmul.f32 %v766_v51, %v555_v29  ;;  %v761_v58 = vpop.permute.xlu0 %760  ;;  %v4701_v57 = vpop.permute.xlu2 %655  ;;  %v1055_v1 = vshll.u32 %v4688_v39, 16  ;;  %v460_v29 = vmul.f32 %v4488_v45, %v4206_v2  ;;  %v899_v46 = vpack.c.bf16 %v853_v20, %v853_v20 }
  0xa1   : > { %v876_v63 = vmul.f32 %v761_v58, %v554_v37  ;;  %v1050_v0 = vshll.u32 %v4692_v50, 16  ;;  %v1048_v48 = vshrl.u32 %v4692_v50, 16  ;;  %v4183_v25 = vunpack.c.h.bf16 %v4623_v41  ;;  %v3527_v41 = vld [vmem:[%s6295_s8 + $0x78] sm:$0xff] }
  0xa2   : > { %v923_v3 = vpack.c.bf16 %v877_v55, %v877_v55  ;;  %v4726_v28 = vrot.slane %v1055_v1, 1  ;;  %v511_v55 = vadd.f32 %v4508_v56, %v461_v18  ;;  %v4746_v60 = vshrl.u32 %v4584_v14, 16 }
  0xa3   : > { %v922_v11 = vpack.c.bf16 %v876_v63, %v876_v63  ;;  %v1052_v19 = vrot.slane %v1050_v0, 1  ;;  %v510_v63 = vadd.f32 %v4508_v56, %v460_v29  ;;  %v533_v0 = vmax.f32 %v4731_v33, 0.0 }
  0xa4   : > { %v1013_v21 = vunpack.c.l.b16 %v923_v3  ;;  %6389 = vst [vmem:[#allocation12_spill] sm:$0xff] %v4746_v60  ;;  %v4754_v3 = vadd.f32 %v4508_v56, %v466_v26  ;;  %v436_v5 = vmul.f32 %v4488_v45, %v4158_v34  ;;  %v1157_v10 = vor.u32 %v4746_v60, %v1153_v53  ;;  %v4251_v53 = vld [vmem:[%s4481_s16 + $0x80] sm:$0xff]  }
  0xa5   : > { %v1012_v47 = vunpack.c.l.b16 %v922_v11  ;;  %3615 = vperm.xlu1 %4273, %v3524_v6   ;;  %v1053_v27 = vor.u32 %v1052_v19, %v1048_v48  ;;  %v557_v19 = vmax.f32 %v511_v55, 0.0  ;;  %v449_v20 = vmul.f32 %v4488_v45, %v4183_v25 }
  0xa6   : > { %3610 = vperm.xlu0 %4272, %v3523_v13   ;;  %3620 = vperm.xlu2 %4274, %v3525_v15   ;;  %v469_v13 = vmul.f32 %v4488_v45, %v4223_v44  ;;  %v989_v15 = vunpack.c.l.b16 %v899_v46  ;;  %v562_v33 = vmax.f32 %v4754_v3, 0.0  ;;  %v486_v26 = vadd.f32 %v4508_v56, %v436_v5 }
  0xa7   : > { %v4735_v37 = vpack.c.b16 %v1013_v21, %v1012_v47  ;;  %v641_v38 = vpop.permute.xlu1 %640  ;;  %v1058_v40 = vsel %vm1046_vm1, %v1053_v27, %v4726_v28  ;;  %v4773_v21 = vld [vmem:[%s4481_s16 + $0x20] sm:$0xff]   ;;  %v556_v27 = vmax.f32 %v510_v63, 0.0  ;;  %v1059_v34 = vshrl.u32 %v4688_v39, 16 }
  0xa8   : > { %v852_v49 = vmul.f32 %v641_v38, %v530_v7  ;;  %v706_v51 = vpop.permute.xlu0 %705  ;;  %v4740_v54 = vpop.permute.xlu2 %800  ;;  %3946 = vmatmul.msk.bf16.vlgmr.msra.gmra.mxu0 %vm1214_vm2, %v1058_v40  ;;  %v3526_v7 = vld [vmem:[%s6295_s8 + $0x70] sm:$0xff]  ;;  %v4788_v40 = vadd.f32 %v4508_v56, %v469_v13  ;;  %v4791_v44 = vshrl.u32 %v4643_v59, 16  ;;  %v4162_v46 = vunpack.c.l.bf16 %v4773_v21 }
  0xa9   : > { %6388 = vst [vmem:[#allocation11_spill] sm:$0xff] %v4735_v37  ;;  %v865_v58 = vmul.f32 %v706_v51, %v543_v22  ;;  %v4749_v61 = vshll.u32 %v4735_v37, 16  ;;  %v1000_v22 = vunpack.c.l.b16 %v910_v35  ;;  %v499_v55 = vadd.f32 %v4508_v56, %v449_v20 }
  0xaa   : > { %v898_v2 = vpack.c.bf16 %v852_v49, %v852_v49  ;;  %6392 = vst [vmem:[#allocation15_spill] sm:$0xff] %v4791_v44  ;;  %v866_v63 = vmul.f32 %v4653_v4, %v544_v32  ;;  %v4210_v5 = vunpack.c.l.bf16 %v4251_v53  ;;  %v532_v13 = vmax.f32 %v486_v26, 0.0  ;;  %v3529_v32 = vld [vmem:[%s6295_s8 + $0x88] sm:$0xff] }
  0xab   : > { %6390 = vst [vmem:[#allocation13_spill] sm:$0xff] %v4749_v61  ;;  %v911_v6 = vpack.c.bf16 %v865_v58, %v865_v58  ;;  %v1161_v11 = vrot.slane %v4749_v61, 1  ;;  %v4211_v58 = vunpack.c.h.bf16 %v4251_v53 }
  0xac   : > { %v988_v48 = vunpack.c.l.b16 %v898_v2 }
  0xad   : > { %v1001_v18 = vunpack.c.l.b16 %v911_v6  ;;  %3630 = vperm.xlu1 %4273, %v3527_v41   ;;  %v1162_v47 = vsel %vm1046_vm1, %v1157_v10, %v1161_v11  ;;  %v1109_v10 = vor.u32 %v4791_v44, %v1105_v24  ;;  %v4825_v24 = vrot.slane %v1055_v1, 2 }
  0xae   : > { %v4779_v29 = vpack.c.b16 %v989_v15, %v988_v48  ;;  %3625 = vperm.xlu0 %4272, %v3526_v7   ;;  %3635 = vperm.xlu2 %4274, %v3528_v8   ;;  %v3530_v8 = vld [vmem:[%s6295_s8 + $0x90] sm:$0xff]  ;;  %v4810_v15 = vrot.slane %v1059_v34, 1  ;;  %v3531_v48 = vld [vmem:[%s6295_s8 + $0x98] sm:$0xff]  ;;  %v463_v53 = vmul.f32 %v4488_v45, %v4211_v58 }
  0xaf   : > { %v4784_v38 = vpack.c.b16 %v1001_v18, %v1000_v22  ;;  %3959 = vmatmul.msk.bf16.gmra.mxu2 %vm1214_vm2, %v1162_v47  ;;  %v776_v35 = vpop.permute.xlu1 %775  ;;  %v4821_v22 = vld [vmem:[%s4481_s16 + $0x88] sm:$0xff]   ;;  %v855_v18 = vmul.f32 %v4701_v57, %v533_v0  ;;  %v438_v57 = vmul.f32 %v4488_v45, %v4162_v46  ;;  %v4222_v0 = vunpack.c.l.bf16 %v4722_v23 }
  0xb0   : > { %v879_v49 = vmul.f32 %v776_v35, %v557_v19  ;;  %v771_v51 = vpop.permute.xlu0 %770  ;;  %v4796_v25 = vshll.u32 %v4779_v29, 16  ;;  %v4802_v7 = vpop.permute.xlu2 %815  ;;  %v4215_v1 = vunpack.c.h.bf16 %v4821_v22  ;;  %v912_v46 = vpack.c.bf16 %v866_v63, %v866_v63 }
  0xb1   : > { %6391 = vst [vmem:[#allocation14_spill] sm:$0xff] %v4784_v38  ;;  %v878_v2 = vmul.f32 %v771_v51, %v556_v27  ;;  %v4800_v41 = vshll.u32 %v4784_v38, 16  ;;  %v545_v27 = vmax.f32 %v499_v55, 0.0  ;;  %v462_v51 = vmul.f32 %v4488_v45, %v4210_v5 }
  0xb2   : > { %v925_v6 = vpack.c.bf16 %v879_v49, %v879_v49  ;;  %v1065_v20 = vrot.slane %v4796_v25, 1  ;;  %v1061_v49 = vor.u32 %v1059_v34, %v4726_v28  ;;  %v4219_v34 = vunpack.c.h.bf16 %v4696_v52 }
  0xb3   : > { %6393 = vst [vmem:[#allocation16_spill] sm:$0xff] %v4800_v41  ;;  %v924_v4 = vpack.c.bf16 %v878_v2, %v878_v2  ;;  %v1113_v19 = vrot.slane %v4800_v41, 1  ;;  %v565_v2 = vmax.f32 %v4788_v40, 0.0  ;;  %v901_v5 = vpack.c.bf16 %v855_v18, %v855_v18 }
  0xb4   : > { %v1015_v47 = vunpack.c.l.b16 %v925_v6  ;;  %v1066_v28 = vsel %vm1046_vm1, %v1061_v49, %v1065_v20  ;;  %v513_v23 = vadd.f32 %v4508_v56, %v463_v53  ;;  %v512_v52 = vadd.f32 %v4508_v56, %v462_v51 }
  0xb5   : > { %v1014_v26 = vunpack.c.l.b16 %v924_v4  ;;  %3645 = vperm.xlu1 %4273, %v3530_v8   ;;  %v1114_v35 = vsel %vm1046_vm1, %v1109_v10, %v1113_v19  ;;  %v4850_v4 = vshrl.u32 %v4735_v37, 16  ;;  %v4857_v63 = vadd.f32 %v4508_v56, %v438_v57 }
  0xb6   : > { %3640 = vperm.xlu0 %4272, %v3529_v32   ;;  %3650 = vperm.xlu2 %4274, %v3531_v48   ;;  %v465_v18 = vmul.f32 %v4488_v45, %v4215_v1  ;;  %v467_v57 = vmul.f32 %v4488_v45, %v4219_v34  ;;  %v4877_v1 = vld [vmem:[%s4481_s16 + $0x58] sm:$0xff]   ;;  %v558_v42 = vmax.f32 %v512_v52, 0.0 }
  0xb7   : > { %v4838_v55 = vpack.c.b16 %v1015_v47, %v1014_v26  ;;  %3953 = vmatmul.msk.bf16.gmra.mxu1 %vm1214_vm2, %v1114_v35  ;;  %v651_v58 = vpop.permute.xlu1 %650  ;;  %6395 = vst [vmem:[#allocation18_spill] sm:$0xff] %v4850_v4  ;;  %v468_v47 = vmul.f32 %v4488_v45, %v4222_v0  ;;  %v3532_v26 = vld [vmem:[%s6295_s8 + $0xa0] sm:$0xff]  ;;  %v3534_v35 = vld [vmem:[%s6295_s8 + $0xb0] sm:$0xff]  ;;  %v1165_v49 = vor.u32 %v4850_v4, %v1161_v11  ;;  %v1002_v0 = vunpack.c.l.b16 %v912_v46 }
  0xb8   : > { %v854_v6 = vmul.f32 %v651_v58, %v532_v13  ;;  %v716_v8 = vpop.permute.xlu0 %715  ;;  %3947 = vmatmul.msk.bf16.gmra.mxu0 %vm1214_vm2, %v1066_v28  ;;  %v3533_v13 = vld [vmem:[%s6295_s8 + $0xa8] sm:$0xff]  ;;  %v991_v58 = vunpack.c.l.b16 %v901_v5  ;;  %v4887_v34 = vadd.f32 %v4508_v56, %v465_v18  ;;  %v4191_v46 = vunpack.c.h.bf16 %v4877_v1 }
  0xb9   : > { %6394 = vst [vmem:[#allocation17_spill] sm:$0xff] %v4838_v55  ;;  %v867_v10 = vmul.f32 %v716_v8, %v545_v27  ;;  %v4853_v32 = vshll.u32 %v4838_v55, 16  ;;  %v4245_v27 = vld [vmem:[%s4481_s16 + $0x50] sm:$0xff]   ;;  %v559_v8 = vmax.f32 %v513_v23, 0.0  ;;  %v4891_v5 = vshrl.u32 %v4779_v29, 16 }
  0xba   : > { %v900_v48 = vpack.c.bf16 %v854_v6, %v854_v6  ;;  %v4879_v6 = vpop.permute.xlu2 %660  ;;  %v4187_v11 = vunpack.c.h.bf16 %v4245_v27  ;;  %v4896_v23 = vmul.f32 %v4740_v54, %v562_v33  ;;  %v517_v18 = vadd.f32 %v4508_v56, %v467_v57 }
  0xbb   : > { %6396 = vst [vmem:[#allocation19_spill] sm:$0xff] %v4853_v32  ;;  %v913_v53 = vpack.c.bf16 %v867_v10, %v867_v10  ;;  %v6299_v51 = vrot.slane %v4853_v32, 1  ;;  %v4186_v3 = vunpack.c.l.bf16 %v4245_v27  ;;  %v887_v54 = vmul.f32 %v4802_v7, %v565_v2 }
  0xbc   : > { %v990_v28 = vunpack.c.l.b16 %v900_v48  ;;  %v2001_v7 = vrot.slane %v4891_v5, 1  ;;  %v1069_v61 = vor.u32 %v4891_v5, %v1065_v20  ;;  %v534_v4 = vmax.f32 %v4857_v63, 0.0 }
  0xbd   : > { %v1003_v10 = vunpack.c.l.b16 %v913_v53  ;;  %3660 = vperm.xlu1 %4273, %v3533_v13   ;;  %v1170_v62 = vsel %vm1046_vm1, %v1165_v49, %v6299_v51  ;;  %v518_v13 = vadd.f32 %v4508_v56, %v468_v47  ;;  %v4010_v47 = vld [vmem:[%s6291_s4 + $0x6] sm:$0x3] }
  0xbe   : > { %v4884_v40 = vpack.c.b16 %v991_v58, %v990_v28  ;;  %3655 = vperm.xlu0 %4272, %v3532_v26   ;;  %3665 = vperm.xlu2 %4274, %v3534_v35   ;;  %v4904_v35 = vshrl.u32 %v4784_v38, 16  ;;  %v3536_v58 = vld [vmem:[%s6295_s8 + $0xc0] sm:$0xff]  ;;  %v3535_v28 = vld [vmem:[%s6295_s8 + $0xb8] sm:$0xff] }
  0xbf   : > { %v4898_v48 = vpack.c.b16 %v1003_v10, %v1002_v0  ;;  %3960 = vmatmul.msk.bf16.gmra.mxu2 %vm1214_vm2, %v1170_v62  ;;  %v786_v52 = vpop.permute.xlu1 %785  ;;  %v451_v62 = vmul.f32 %v4488_v45, %v4187_v11  ;;  %v930_v11 = vpack.c.bf16 %v4896_v23, %v4896_v23 }
  0xc0   : > { %v881_v53 = vmul.f32 %v786_v52, %v559_v8  ;;  %v781_v26 = vpop.permute.xlu0 %780  ;;  %6397 = vst [vmem:[#allocation20_spill] sm:$0xff] %v4904_v35  ;;  %v4907_v49 = vshll.u32 %v4884_v40, 16  ;;  %v1117_v27 = vor.u32 %v4904_v35, %v1113_v19  ;;  %v3537_v8 = vld [vmem:[%s6295_s8 + $0xc8] sm:$0xff]  ;;  %v2002_v19 = vrot.slane %v4796_v25, 2 }
  0xc1   : > { %v880_v33 = vmul.f32 %v781_v26, %v558_v42  ;;  %v4911_v0 = vshll.u32 %v4898_v48, 16  ;;  %v1839_v42 = vsel %vm1278_vm0, %v4010_v47, 0  ;;  %v563_v26 = vmax.f32 %v517_v18, 0.0  ;;  %v4948_v18 = vld [vmem:[%s4481_s16 + $0xa0] sm:$0xff]  }
  0xc2   : > { %v927_v57 = vpack.c.bf16 %v881_v53, %v881_v53  ;;  %1848 = vmatpush.bf16.msrb.mxu3 %v1839_v42  ;;  %v564_v53 = vmax.f32 %v518_v13, 0.0  ;;  %v450_v42 = vmul.f32 %v4488_v45, %v4186_v3  ;;  %v4944_v13 = vpop.permute.xlu2 %795  ;;  %v6400_v3 = vrot.slane %v4907_v49, 1 }
  0xc3   : > { %6398 = vst [vmem:[#allocation21_spill] sm:$0xff] %v4911_v0  ;;  %v926_v2 = vpack.c.bf16 %v880_v33, %v880_v33  ;;  %v6302_v10 = vrot.slane %v4911_v0, 1  ;;  %v453_v33 = vmul.f32 %v4488_v45, %v4191_v46  ;;  %v501_v46 = vadd.f32 %v4508_v56, %v451_v62 }
  0xc4   : > { %v1017_v52 = vunpack.c.l.b16 %v927_v57  ;;  %v933_v57 = vpack.c.bf16 %v887_v54, %v887_v54  ;;  %v4957_v23 = vshrl.u32 %v4884_v40, 16  ;;  %v4959_v54 = vor.u32 %v2002_v19, %v2001_v7 }
  0xc5   : > { %v1016_v47 = vunpack.c.l.b16 %v926_v2  ;;  %3675 = vperm.xlu1 %4273, %v3536_v58   ;;  %v1122_v51 = vsel %vm1046_vm1, %v1117_v27, %v6302_v10  ;;  %v1074_v27 = vsel %vm1046_vm1, %v1069_v61, %v6400_v3  ;;  %v4963_v62 = vshrl.u32 %v4838_v55, 16 }
  0xc6   : > { %3670 = vperm.xlu0 %4272, %v3535_v28   ;;  %3680 = vperm.xlu2 %4274, %v3537_v8   ;;  %v4214_v8 = vunpack.c.l.bf16 %v4821_v22  ;;  %v500_v61 = vadd.f32 %v4508_v56, %v450_v42  ;;  %v4227_v7 = vunpack.c.h.bf16 %v4948_v18  ;;  %v547_v22 = vmax.f32 %v501_v46, 0.0 }
  0xc7   : > { %v4950_v58 = vpack.c.b16 %v1017_v52, %v1016_v47  ;;  %3954 = vmatmul.msk.bf16.gmra.mxu1 %vm1214_vm2, %v1122_v51  ;;  %v811_v20 = vpop.permute.xlu1 %810  ;;  %6401 = vst [vmem:[#allocation23_spill] sm:$0xff] %v4963_v62  ;;  %v4163_v51 = vunpack.c.h.bf16 %v4773_v21  ;;  %v6404_v21 = vor.u32 %v4825_v24, %v4810_v15  ;;  %v2005_v46 = vrot.slane %v4957_v23, 1 }
  0xc8   : > { %v886_v2 = vmul.f32 %v811_v20, %v564_v53  ;;  %v806_v28 = vpop.permute.xlu0 %805  ;;  %3948 = vmatmul.msk.bf16.gmra.mxu0 %vm1214_vm2, %v1074_v27  ;;  %v3539_v53 = vld [vmem:[%s6295_s8 + $0xd8] sm:$0xff]  ;;  %v6403_v20 = vrot.slane %v4853_v32, 1  ;;  %v3538_v27 = vld [vmem:[%s6295_s8 + $0xd0] sm:$0xff]  ;;  %v1023_v10 = vunpack.c.l.b16 %v933_v57  ;;  %v464_v24 = vmul.f32 %v4488_v45, %v4214_v8 }
  0xc9   : > { %6399 = vst [vmem:[#allocation22_spill] sm:$0xff] %v4950_v58  ;;  %v885_v52 = vmul.f32 %v806_v28, %v563_v26  ;;  %v4968_v47 = vshll.u32 %v4950_v58, 16  ;;  %v4983_v26 = vsel %vm1997_vm3, %v6404_v21, %v4959_v54  ;;  %v1020_v21 = vunpack.c.l.b16 %v930_v11 }
  0xca   : > { %v932_v19 = vpack.c.bf16 %v886_v2, %v886_v2  ;;  %v1173_v3 = vor.u32 %v4963_v62, %v6403_v20  ;;  %v3540_v2 = vld [vmem:[%s6295_s8 + $0xe0] sm:$0xff]  ;;  %v2006_v20 = vrot.slane %v4907_v49, 2  ;;  %v546_v55 = vmax.f32 %v500_v61, 0.0  ;;  %v5010_v61 = vpop.permute.xlu2 %735 }
  0xcb   : > { %6402 = vst [vmem:[#allocation24_spill] sm:$0xff] %v4968_v47  ;;  %v931_v42 = vpack.c.bf16 %v885_v52, %v885_v52  ;;  %v6313_v28 = vrot.slane %v4968_v47, 1  ;;  %v439_v52 = vmul.f32 %v4488_v45, %v4163_v51  ;;  %v471_v57 = vmul.f32 %v4488_v45, %v4227_v7 }
  0xcc   : > { %v1022_v15 = vunpack.c.l.b16 %v932_v19  ;;  %v4190_v8 = vunpack.c.l.bf16 %v4877_v1  ;;  %v561_v51 = vmax.f32 %v4887_v34, 0.0  ;;  %v5013_v63 = vadd.f32 %v4508_v56, %v453_v33 }
  0xcd   : > { %v1021_v32 = vunpack.c.l.b16 %v931_v42  ;;  %3690 = vperm.xlu1 %4273, %v3539_v53   ;;  %v1178_v62 = vsel %vm1046_vm1, %v1173_v3, %v6313_v28  ;;  %v5008_v53 = vor.u32 %v2006_v20, %v2005_v46  ;;  %v514_v7 = vadd.f32 %v4508_v56, %v464_v24  ;;  %v3541_v20 = vld [vmem:[%s6295_s8 + $0xe8] sm:$0xff] }
  0xce   : > { %v5000_v37 = vpack.c.b16 %v1023_v10, %v1022_v15  ;;  %3685 = vperm.xlu0 %4272, %v3538_v27   ;;  %3695 = vperm.xlu2 %4274, %v3540_v2   ;;  %v489_v1 = vadd.f32 %v4508_v56, %v439_v52  ;;  %v856_v27 = vmul.f32 %v4879_v6, %v534_v4  ;;  %v3542_v2 = vld [vmem:[%s6295_s8 + $0xf0] sm:$0xff] }
  0xcf   : > { %v5005_v11 = vpack.c.b16 %v1021_v32, %v1020_v21  ;;  %3961 = vmatmul.msk.bf16.gmra.mxu2 %vm1214_vm2, %v1178_v62  ;;  %v726_v19 = vpop.permute.xlu1 %725  ;;  %v4226_v62 = vunpack.c.l.bf16 %v4948_v18  ;;  %v3543_v18 = vld [vmem:[%s6295_s8 + $0xf8] sm:$0xff]  ;;  %v5043_v15 = vsel %vm1997_vm3, %v4959_v54, %v5008_v53  ;;  %v883_v24 = vmul.f32 %v4944_v13, %v561_v51 }
  0xd0   : > { %6405 = vst [vmem:[#allocation25_spill] sm:$0xff] %v5000_v37  ;;  %v869_v10 = vmul.f32 %v726_v19, %v547_v22  ;;  %v721_v3 = vpop.permute.xlu0 %720  ;;  %v5021_v34 = vshll.u32 %v5000_v37, 16  ;;  %v521_v22 = vadd.f32 %v4508_v56, %v471_v57  ;;  %v560_v21 = vmax.f32 %v514_v7, 0.0 }
  0xd1   : > { %6406 = vst [vmem:[#allocation26_spill] sm:$0xff] %v5005_v11  ;;  %v868_v42 = vmul.f32 %v721_v3, %v546_v55  ;;  %v5018_v32 = vshll.u32 %v5005_v11, 16  ;;  %v452_v55 = vmul.f32 %v4488_v45, %v4190_v8  ;;  %v5038_v6 = vshrl.u32 %v5005_v11, 16  ;;  %v4240_v8 = vld [vmem:[%s4481_s16 + $0x28] sm:$0xff]  }
  0xd2   : > { %6407 = vst [vmem:[#allocation27_spill] sm:$0xff] %v5021_v34  ;;  %v915_v33 = vpack.c.bf16 %v869_v10, %v869_v10  ;;  %v535_v57 = vmax.f32 %v489_v1, 0.0  ;;  %v6315_v3 = vrot.slane %v5021_v34, 1  ;;  %v902_v28 = vpack.c.bf16 %v856_v27, %v856_v27 }
  0xd3   : > { %v914_v46 = vpack.c.bf16 %v868_v42, %v868_v42  ;;  %v6314_v4 = vrot.slane %v5018_v32, 1  ;;  %6408 = vst [vmem:[#allocation28_spill] sm:$0xff] %v5038_v6  ;;  %v470_v42 = vmul.f32 %v4488_v45, %v4226_v62  ;;  %v502_v54 = vadd.f32 %v4508_v56, %v452_v55 }
  0xd4   : > { %v1005_v52 = vunpack.c.l.b16 %v915_v33  ;;  %v549_v13 = vmax.f32 %v5013_v63, 0.0  ;;  %v4167_v33 = vunpack.c.h.bf16 %v4240_v8  ;;  %v4166_v62 = vunpack.c.l.bf16 %v4240_v8  ;;  %v5071_v8 = vld [vmem:[%s4481_s16 + $0xb0] sm:$0xff]  }
  0xd5   : > { %v1004_v19 = vunpack.c.l.b16 %v914_v46  ;;  %3705 = vperm.xlu1 %4273, %v3542_v2   ;;  %v1197_v10 = vor.u32 %v5038_v6, %v6314_v4  ;;  %v929_v2 = vpack.c.bf16 %v883_v24, %v883_v24  ;;  %v567_v46 = vmax.f32 %v521_v22, 0.0  ;;  %v3545_v22 = vld [vmem:[%s6295_s8 + $0x108] sm:$0xff] }
  0xd6   : > { %3700 = vperm.xlu0 %4272, %v3541_v20   ;;  %3710 = vperm.xlu2 %4274, %v3543_v18   ;;  %v5061_v55 = vshrl.u32 %v4898_v48, 16  ;;  %v520_v20 = vadd.f32 %v4508_v56, %v470_v42  ;;  %v992_v18 = vunpack.c.l.b16 %v902_v28  ;;  %v3546_v56 = vld [vmem:[%s6295_s8 + $0x110] sm:$0xff]  ;;  %v6411_v28 = vrot.slane %v4911_v0, 1  ;;  %v5086_v42 = vld [vmem:[%s6289_s2] ss:$0 sm:$0xff] }
  0xd7   : > { %v5054_v51 = vpack.c.b16 %v1005_v52, %v1004_v19  ;;  %v791_v7 = vpop.permute.xlu1 %790  ;;  %v1202_v1 = vsel %vm1046_vm1, %v1197_v10, %v6315_v3  ;;  %v826_v52 = vpop.permute.xlu2 %825  ;;  %v4256_v3 = vld [vmem:[%s4481_s16 + $0xa8] sm:$0xff]   ;;  %v4234_v14 = vunpack.c.l.bf16 %v5071_v8 }
  0xd8   : > { %v882_v4 = vmul.f32 %v791_v7, %v560_v21  ;;  %v666_v45 = vpop.permute.xlu0 %665  ;;  %3964 = vmatmul.msk.bf16.vlgmr.msra.gmra.mxu3 %vm1214_vm2, %v1202_v1  ;;  %6409 = vst [vmem:[#allocation29_spill] sm:$0xff] %v5061_v55  ;;  %v548_v21 = vmax.f32 %v502_v54, 0.0  ;;  %v441_v54 = vmul.f32 %v5086_v42, %v4167_v33  ;;  %v1019_v7 = vunpack.c.l.b16 %v929_v2  ;;  %v5107_v2 = vld [vmem:[%s6290_s3] ss:$0 sm:$0xff] }
  0xd9   : > { %v857_v27 = vmul.f32 %v666_v45, %v535_v57  ;;  %v5064_v63 = vshll.u32 %v5054_v51, 16  ;;  %v3544_v57 = vld [vmem:[%s6295_s8 + $0x100] sm:$0xff]  ;;  %v871_v1 = vmul.f32 %v5010_v61, %v549_v13  ;;  %v889_v6 = vmul.f32 %v826_v52, %v567_v46 }
  0xda   : > { %v928_v24 = vpack.c.bf16 %v882_v4, %v882_v4  ;;  %v1125_v4 = vor.u32 %v5061_v55, %v6411_v28  ;;  %v566_v31 = vmax.f32 %v520_v20, 0.0  ;;  %v5102_v13 = vshrl.u32 %v4950_v58, 16 }
  0xdb   : > { %6410 = vst [vmem:[#allocation30_spill] sm:$0xff] %v5064_v63  ;;  %v903_v19 = vpack.c.bf16 %v857_v27, %v857_v27  ;;  %v6326_v10 = vrot.slane %v5064_v63, 1  ;;  %v440_v27 = vmul.f32 %v5086_v42, %v4166_v62  ;;  %v491_v46 = vadd.f32 %v5107_v2, %v441_v54  ;;  %v3548_v54 = vld [vmem:[%s6295_s8 + $0x120] sm:$0xff] }
  0xdc   : > { %v1018_v45 = vunpack.c.l.b16 %v928_v24  ;;  %6413 = vst [vmem:[#allocation32_spill] sm:$0xff] %v5102_v13  ;;  %v4231_v62 = vunpack.c.h.bf16 %v4256_v3  ;;  %v917_v20 = vpack.c.bf16 %v871_v1, %v871_v1  ;;  %v6416_v1 = vrot.slane %v4968_v47, 1 }
  0xdd   : > { %v993_v11 = vunpack.c.l.b16 %v903_v19  ;;  %3720 = vperm.xlu1 %4273, %v3545_v22   ;;  %v1130_v28 = vsel %vm1046_vm1, %v1125_v4, %v6326_v10  ;;  %v935_v22 = vpack.c.bf16 %v889_v6, %v889_v6 }
  0xde   : > { %v5095_v60 = vpack.c.b16 %v1019_v7, %v1018_v45  ;;  %3715 = vperm.xlu0 %4272, %v3544_v57   ;;  %3725 = vperm.xlu2 %4274, %v3546_v56   ;;  %v4230_v56 = vunpack.c.l.bf16 %v4256_v3  ;;  %v6415_v7 = vrot.slane %v4907_v49, 1  ;;  %v1181_v45 = vor.u32 %v5102_v13, %v6416_v1  ;;  %v3547_v3 = vld [vmem:[%s6295_s8 + $0x118] sm:$0xff] }
  0xdf   : > { %v5098_v33 = vpack.c.b16 %v993_v11, %v992_v18  ;;  %3955 = vmatmul.msk.bf16.gmra.mxu1 %vm1214_vm2, %v1130_v28  ;;  %v731_v61 = vpop.permute.xlu1 %730  ;;  %v490_v18 = vadd.f32 %v5107_v2, %v440_v27  ;;  %v3549_v27 = vld [vmem:[%s6295_s8 + $0x128] sm:$0xff]  ;;  %v1821_v10 = vunpack.c.l.b16 %v935_v22 }
  0xe0   : > { %v870_v52 = vmul.f32 %v731_v61, %v548_v21  ;;  %v821_v24 = vpop.permute.xlu0 %820  ;;  %v5111_v11 = vshll.u32 %v5095_v60, 16  ;;  %v1077_v21 = vor.u32 %v4957_v23, %v6415_v7  ;;  %v537_v61 = vmax.f32 %v491_v46, 0.0 }
  0xe1   : > { %6412 = vst [vmem:[#allocation31_spill] sm:$0xff] %v5098_v33  ;;  %v888_v19 = vmul.f32 %v821_v24, %v566_v31  ;;  %v5115_v57 = vshll.u32 %v5098_v33, 16  ;;  %v1007_v24 = vunpack.c.l.b16 %v917_v20  ;;  %v472_v46 = vmul.f32 %v5086_v42, %v4230_v56 }
  0xe2   : > { %v916_v4 = vpack.c.bf16 %v870_v52, %v870_v52  ;;  %v6332_v6 = vrot.slane %v5111_v11, 1  ;;  %v473_v52 = vmul.f32 %v5086_v42, %v4231_v62  ;;  %v474_v62 = vmul.f32 %v5086_v42, %v4234_v14 }
  0xe3   : > { %6414 = vst [vmem:[#allocation33_spill] sm:$0xff] %v5115_v57  ;;  %v934_v31 = vpack.c.bf16 %v888_v19, %v888_v19  ;;  %v6331_v28 = vrot.slane %v5115_v57, 1  ;;  %v536_v19 = vmax.f32 %v490_v18, 0.0  ;;  %v5156_v14 = vshrl.u32 %v5054_v51, 16 }
  0xe4   : > { %v1006_v7 = vunpack.c.l.b16 %v916_v4  ;;  %v1186_v1 = vsel %vm1046_vm1, %v1181_v45, %v6332_v6  ;;  %v5189_v43 = vshrl.u32 %v5095_v60, 16 }
  0xe5   : > { %v1024_v47 = vunpack.c.l.b16 %v934_v31  ;;  %3735 = vperm.xlu1 %4273, %v3548_v54   ;;  %v1082_v13 = vsel %vm1046_vm1, %v1077_v21, %v6331_v28  ;;  %3962 = vmatmul.msk.bf16.gmra.mxu2 %vm1214_vm2, %v1186_v1  ;;  %v5152_v54 = vshrl.u32 %v5000_v37, 16  ;;  %v523_v21 = vadd.f32 %v5107_v2, %v473_v52  ;;  %6417 = vst [vmem:[#allocation34_spill] sm:$0xff] %v5156_v14 }
  0xe6   : > { %v5144_v20 = vpack.c.b16 %v1007_v24, %v1006_v7  ;;  %3730 = vperm.xlu0 %4272, %v3547_v3   ;;  %3740 = vperm.xlu2 %4274, %v3549_v27   ;;  %v4235_v3 = vunpack.c.h.bf16 %v5071_v8  ;;  %v522_v27 = vadd.f32 %v5107_v2, %v472_v46  ;;  %v3551_v24 = vld [vmem:[%s6295_s8 + $0x138] sm:$0xff]  ;;  %v6418_v7 = vrot.slane %v5064_v63, 1  ;;  %v3550_v46 = vld [vmem:[%s6295_s8 + $0x130] sm:$0xff] }
  0xe7   : > { %v5146_v4 = vpack.c.b16 %v1024_v47, %v1024_v47  ;;  %v5148_v18 = vpack.c.b16 %v1821_v10, %v1024_v47  ;;  %3949 = vmatmul.msk.bf16.gmra.mxu0 %vm1214_vm2, %v1082_v13  ;;  %v676_v22 = vpop.permute.xlu1 %675  ;;  %v4076_v47 = vld [vmem:[%s6291_s4 + $0xc] sm:$0x3] }
  0xe8   : > { %v859_v45 = vmul.f32 %v676_v22, %v537_v61  ;;  %v671_v56 = vpop.permute.xlu0 %670  ;;  %v5159_v31 = vshll.u32 %v5144_v20, 16  ;;  %v2597_v61 = vsel %vm1278_vm0, %v4076_v47, 0  ;;  %v1133_v8 = vor.u32 %v5156_v14, %v6418_v7 }
  0xe9   : > { %v858_v10 = vmul.f32 %v671_v56, %v536_v19  ;;  %v1207_v13 = vshll.u32 %v5146_v4, 16  ;;  %2606 = vmatpush.bf16.msra.mxu2 %v2597_v61  ;;  %v524_v19 = vadd.f32 %v5107_v2, %v474_v62  ;;  %v6419_v56 = vrot.slane %v5021_v34, 1 }
  0xea   : > { %v905_v52 = vpack.c.bf16 %v859_v45, %v859_v45  ;;  %v1137_v1 = vrot.slane %v5159_v31, 1  ;;  %v3552_v45 = vld [vmem:[%s6295_s8 + $0x140] sm:$0xf]  ;;  %v569_v61 = vmax.f32 %v523_v21, 0.0  ;;  %v475_v62 = vmul.f32 %v5086_v42, %v4235_v3  ;;  %v4098_v42 = vld [vmem:[%s6291_s4 + $0xe] sm:$0x3] }
  0xeb   : > { %v904_v22 = vpack.c.bf16 %v858_v10, %v858_v10  ;;  %v1205_v47 = vor.u32 %v5152_v54, %v6419_v56  ;;  %v1209_v28 = vrot.slane %v1207_v13, 1  ;;  %v568_v58 = vmax.f32 %v522_v27, 0.0 }
  0xec   : > { %v995_v7 = vunpack.c.l.b16 %v905_v52  ;;  %v1138_v6 = vsel %vm1046_vm1, %v1133_v8, %v1137_v1  ;;  %v570_v34 = vmax.f32 %v524_v19, 0.0  ;;  %v6421_v27 = vrot.slane %v5111_v11, 1 }
  0xed   : > { %v994_v10 = vunpack.c.l.b16 %v904_v22  ;;  %3750 = vperm.xlu1 %4273, %v3551_v24   ;;  %v1210_v37 = vsel %vm1046_vm1, %v1205_v47, %v1209_v28  ;;  %v525_v24 = vadd.f32 %v5107_v2, %v475_v62  ;;  %v2916_v8 = vsel %vm1278_vm0, %v4098_v42, 0 }
  0xee   : > { %3745 = vperm.xlu0 %4272, %v3550_v46   ;;  %3755 = vperm.xlu2 %4274, %v3552_v45   ;;  %v1189_v52 = vor.u32 %v5189_v43, %v6421_v27  ;;  %v5207_v19 = vshrl.u32 %v5098_v33, 16  ;;  %v841_v45 = vpop.permute.xlu2 %840  ;;  %v6424_v47 = vrot.slane %v5115_v57, 1  ;;  %v6425_v62 = vrot.slane %v5018_v32, 1 }
  0xef   : > { %v5191_v16 = vpack.c.b16 %v995_v7, %v994_v10  ;;  %3956 = vmatmul.msk.bf16.gmra.mxu1 %vm1214_vm2, %v1138_v6  ;;  %3965 = vmatmul.msk.bf16.gmra.mxu3 %vm1214_vm2, %v1210_v37  ;;  %v836_v21 = vpop.permute.xlu1 %835  ;;  %v4054_v6 = vld [vmem:[%s6291_s4 + $0xa] sm:$0x3] }
  0xf0   : > { %v891_v3 = vmul.f32 %v836_v21, %v569_v61  ;;  %v831_v13 = vpop.permute.xlu0 %830  ;;  %6422 = vst [vmem:[#allocation36_spill] sm:$0xff] %v5207_v19  ;;  %2925 = vmatpush.bf16.msra.mxu3 %v2916_v8  ;;  %v2419_v46 = vsel %vm1278_vm0, %v4054_v6, 0  ;;  %v1085_v7 = vor.u32 %v5207_v19, %v6424_v47  ;;  %v1194_v10 = vsel %vm1046_vm1, %v1189_v52, %v6425_v62  ;;  %v4120_v8 = vld [vmem:[%s6291_s4 + $0x10] sm:$0x3] }
  0xf1   : > { %6420 = vst [vmem:[#allocation35_spill] sm:$0xff] %v5191_v16  ;;  %v890_v37 = vmul.f32 %v831_v13, %v568_v58  ;;  %v5210_v22 = vshll.u32 %v5191_v16, 16  ;;  %2428 = vmatpush.bf16.msra.mxu1 %v2419_v46  ;;  %v892_v21 = vmul.f32 %v841_v45, %v570_v34  ;;  %v5232_v52 = vshrl.u32 %v5144_v20, 16 }
  0xf2   : > { %v937_v56 = vpack.c.bf16 %v891_v3, %v891_v3  ;;  %v571_v3 = vmax.f32 %v525_v24, 0.0  ;;  %v3180_v34 = vsel %vm1278_vm0, %v4120_v8, 0  ;;  %v2762_v8 = vrot.slane %v4957_v23, 2 }
  0xf3   : > { %6423 = vst [vmem:[#allocation37_spill] sm:$0xff] %v5210_v22  ;;  %v936_v2 = vpack.c.bf16 %v890_v37, %v890_v37  ;;  %v1089_v61 = vrot.slane %v5210_v22, 1  ;;  %v938_v37 = vpack.c.bf16 %v892_v21, %v892_v21  ;;  %3189 = vmatpush.bf16.msra.mxu0 %v3180_v34  ;;  %v1141_v24 = vor.u32 %v5232_v52, %v1137_v1 }
  0xf4   : > { %v2579_v58 = vunpack.c.l.b16 %v937_v56  ;;  %v1211_v56 = vshrl.u32 %v5146_v4, 16  ;;  %v1556_v1 = vrot.slane %v4692_v50, 1  ;;  %v1557_v21 = vrot.slane %v4688_v39, 1 }
  0xf5   : > { %v5220_v42 = vunpack.c.l.b16 %v936_v2  ;;  %v1090_v13 = vsel %vm1046_vm1, %v1085_v7, %v1089_v61  ;;  %3963 = vmatmul.msk.bf16.gmra.mxu2 %vm1214_vm2, %v1194_v10  ;;  %v5237_v2 = vunpack.c.l.b16 %v938_v37 }
  0xf6   : > { %v1213_v7 = vor.u32 %v1211_v56, %v1209_v28  ;;  %v2760_v28 = vrot.slane %v4796_v25, 3  ;;  %v1558_v37 = vsel %vm1555_vm4, %v1556_v1, %v1557_v21 }
  0xf7   : > { %v5225_v27 = vpack.c.b16 %v2579_v58, %v5220_v42  ;;  %3950 = vmatmul.msk.bf16.gmra.mxu0 %vm1214_vm2, %v1090_v13  ;;  %v6426_v58 = vrot.slane %v4604_v30, 1  ;;  %v2759_v13 = vrot.slane %v4891_v5, 2  ;;  %v6430_v5 = vrot.slane %v4613_v36, 1 }
  0xf8   : > { %v846_v6 = vpop.permute.xlu0 %845 }
  0xf9   : > { %v893_v46 = vmul.f32 %v846_v6, %v571_v3  ;;  %v1146_v62 = vsel %vm1046_vm1, %v1141_v24, %v6426_v58  ;;  %v5251_v3 = vshrl.u32 %v5191_v16, 16  ;;  %v2763_v6 = vrot.slane %v4907_v49, 3 }
  0xfa   : > { %v1559_v49 = vrot.slane %v4779_v29, 1  ;;  %v1563_v58 = vrot.slane %v5098_v33, 1 }
  0xfb   : > { %v939_v45 = vpack.c.bf16 %v893_v46, %v893_v46  ;;  %6428 = vst [vmem:[#allocation39_spill] sm:$0xff] %v5251_v3  ;;  %v1093_v34 = vor.u32 %v5251_v3, %v1089_v61  ;;  %v2761_v46 = vor.u32 %v2760_v28, %v2759_v13  ;;  %v5258_v24 = vor.u32 %v2763_v6, %v2762_v8 }
  0xfc   : > { %v1560_v23 = vsel %vm1555_vm4, %v1557_v21, %v1559_v49  ;;  %v1561_v61 = vrot.slane %v4884_v40, 1  ;;  %v2009_v21 = vrot.slane %v5207_v19, 1  ;;  %v2010_v13 = vrot.slane %v5115_v57, 2 }
  0xfd   : > { %v2756_v47 = vunpack.c.l.b16 %v939_v45  ;;  %6429 = vst [vmem:[#allocation40_spill] sm:$0xff] %v5258_v24  ;;  %v1098_v45 = vsel %vm1046_vm1, %v1093_v34, %v6430_v5  ;;  %v5266_v25 = vsel %vm2758_vm5, %v2761_v46, %v5258_v24  ;;  %v1565_v46 = vrot.slane %v5191_v16, 1 }
  0xfe   : > { %v1562_v56 = vsel %vm1555_vm4, %v1559_v49, %v1561_v61  ;;  %v1564_v1 = vsel %vm1555_vm4, %v1561_v61, %v1563_v58  ;;  %v2011_v28 = vor.u32 %v2010_v13, %v2009_v21  ;;  %v2013_v49 = vrot.slane %v5251_v3, 1 }
  0xff   : > { %v5243_v10 = vpack.c.b16 %v2756_v47, %v5237_v2  ;;  %3957 = vmatmul.msk.bf16.gmra.mxu1 %vm1214_vm2, %v1146_v62  ;;  %3966 = vmatmul.msk.bf16.gmra.mxu3 %vm1214_vm2, %v1213_v7  ;;  %v6347_v61 = vshrl.u32 %v5148_v18, 16 }
 0x100   : > { %v2012_v34 = vsel %vm1997_vm3, %v5008_v53, %v2011_v28 }
 0x101   : > { %6427 = vst [vmem:[#allocation38_spill] sm:$0xff] %v5243_v10 }
 0x105   : > { %3989 = vmatmul.msk.bf16.vlgmr.msrb.gmra.mxu2 %vm1214_vm2, %v1558_v37 }
 0x107   : > { %3951 = vmatmul.msk.bf16.gmra.mxu0 %vm1214_vm2, %v1098_v45  ;;  %v1566_v45 = vsel %vm1555_vm4, %v1563_v58, %v1565_v46  ;;  %v2830_v58 = vrot.slane %v6347_v61, 2 }
 0x10f   : > { %3967 = vmatmul.msk.bf16.vlgmr.msrb.gmra.mxu1 %vm1214_vm2, %v4692_v50  ;;  %4011 = vmatmul.msk.bf16.vlgmr.msrb.gmra.mxu3 %vm1214_vm2, %v1560_v23 }
 0x115   : > { %3990 = vmatmul.msk.bf16.gmra.mxu2 %vm1214_vm2, %v1560_v23  ;;  %v2014_v23 = vrot.slane %v5210_v22, 2 }
 0x117   : > { %4033 = vmatmul.msk.bf16.vlgmr.msrb.gmra.mxu0 %vm1214_vm2, %v4983_v26  ;;  %v2015_v21 = vor.u32 %v2014_v23, %v2013_v49  ;;  %v1567_v49 = vrot.slane %v4582_v12, 1  ;;  %v2582_v23 = vpack.c.b16 %v5237_v2, %v5237_v2  ;;  %v5360_v2 = vrot.slane %v5148_v18, 2 }
 0x119   : > { %6437 = vst [vmem:[#allocation47_spill] sm:$0xff] %v5360_v2 }
 0x11b   : > { %v5282_v47 = vpop.f32.mrf.mxu2 }
 0x11c   : > { %v5284_v7 = vpop.f32.mrf.mxu1 }
 0x11f   : > { %3968 = vmatmul.msk.bf16.gmra.mxu1 %vm1214_vm2, %v4688_v39  ;;  %4012 = vmatmul.msk.bf16.gmra.mxu3 %vm1214_vm2, %v1562_v56 }
 0x123   : > { %v5289_v50 = vpop.f32.mrf.mxu2 }
 0x124   : > { %v5294_v62 = vpop.f32.mrf.mxu1 }
 0x125   : > { %3991 = vmatmul.msk.bf16.gmra.mxu2 %vm1214_vm2, %v1562_v56  ;;  %v5291_v26 = vpop.f32.mrf.mxu0  ;;  %v6346_v56 = vshll.u32 %v5148_v18, 16 }
 0x127   : > { %4034 = vmatmul.msk.bf16.gmra.mxu0 %vm1214_vm2, %v5043_v15  ;;  %v2831_v13 = vrot.slane %v6346_v56, 3  ;;  %v2017_v56 = vrot.slane %v4640_v17, 1  ;;  %v3112_v17 = vrot.slane %v5225_v27, 3 }
 0x129   : > { %v5335_v22 = vor.u32 %v2831_v13, %v2830_v58  ;;  %v5352_v58 = vpack.c.b16 %v5220_v42, %v5220_v42  ;;  %v5357_v13 = vrot.slane %v2582_v23, 2  ;;  %v2838_v42 = vshll.u32 %v5225_v27, 16 }
 0x12b   : > { %6433 = vst [vmem:[#allocation43_spill] sm:$0xff] %v5335_v22  ;;  %v6356_v23 = vrot.slane %v5352_v58, 2  ;;  %v2840_v19 = vrot.slane %v2838_v42, 3  ;;  %v2847_v42 = vshll.u32 %v5243_v10, 16 }
 0x12c   : > { %6435 = vst [vmem:[#allocation45_spill] sm:$0xff] %v5352_v58 }
 0x12d   : > { %v5304_v8 = vpop.f32.mrf.mxu0  ;;  %6436 = vst [vmem:[#allocation46_spill] sm:$0xff] %v5357_v13 }
 0x12f   : > { %3969 = vmatmul.msk.bf16.gmra.mxu1 %vm1214_vm2, %v4779_v29  ;;  %4013 = vmatmul.msk.bf16.gmra.mxu3 %vm1214_vm2, %v1564_v1 }
 0x132   : > { %v5302_v15 = vpop.f32.mrf.mxu2 }
 0x134   : > { %v5307_v6 = vpop.f32.mrf.mxu1 }
 0x135   : > { %3992 = vmatmul.msk.bf16.gmra.mxu2 %vm1214_vm2, %v1564_v1  ;;  %v5315_v5 = vpop.f32.mrf.mxu0 }
 0x137   : > { %4035 = vmatmul.msk.bf16.gmra.mxu0 %vm1214_vm2, %v2012_v34  ;;  %v2016_v34 = vsel %vm1997_vm3, %v2011_v28, %v2015_v21  ;;  %v1568_v28 = vsel %vm1555_vm4, %v1565_v46, %v1567_v49  ;;  %v2835_v46 = vshrl.u32 %v5225_v27, 16 }
 0x139   : > { %v2837_v57 = vrot.slane %v2835_v46, 2  ;;  %v2844_v46 = vshrl.u32 %v5243_v10, 16 }
 0x13a   : > { %v5312_v37 = vpop.f32.mrf.mxu2 }
 0x13b   : > { %6431 = vst [vmem:[#allocation41_spill] sm:$0xff] %v5312_v37 }
 0x13c   : > { %v5323_v53 = vpop.f32.mrf.mxu1 }
 0x13d   : > { %v5338_v3 = vpop.f32.mrf.mxu0 }
 0x13f   : > { %3970 = vmatmul.msk.bf16.gmra.mxu1 %vm1214_vm2, %v4884_v40  ;;  %4014 = vmatmul.msk.bf16.gmra.mxu3 %vm1214_vm2, %v1566_v45 }
 0x142   : > { %v5327_v1 = vpop.f32.mrf.mxu2 }
 0x143   : > { %6432 = vst [vmem:[#allocation42_spill] sm:$0xff] %v5327_v1 }
 0x144   : > { %v5340_v24 = vpop.f32.mrf.mxu1 }
 0x145   : > { %3993 = vmatmul.msk.bf16.gmra.mxu2 %vm1214_vm2, %v1566_v45  ;;  %v2018_v45 = vrot.slane %v4613_v36, 2  ;;  %v5362_v61 = vpop.f32.mrf.mxu0  ;;  %v2583_v36 = vrot.slane %v5225_v27, 2 }
 0x147   : > { %4036 = vmatmul.msk.bf16.gmra.mxu0 %vm1214_vm2, %v2016_v34  ;;  %v2019_v34 = vor.u32 %v2018_v45, %v2017_v56  ;;  %v5374_v45 = vsel %vm2313_vm6, %v5360_v2, %v2583_v36  ;;  %v5378_v37 = vsel %vm2313_vm6, %v2583_v36, %v5357_v13  ;;  %v2846_v13 = vrot.slane %v2844_v46, 2 }
 0x148   : > { %6438 = vst [vmem:[#allocation48_spill] sm:$0xff] %v5374_v45  ;;  %v2022_v46 = vrot.slane %v4659_v9, 2  ;;  %v1573_v9 = vrot.slane %v4898_v48, 1 }
 0x149   : > { %6439 = vst [vmem:[#allocation49_spill] sm:$0xff] %v5378_v37  ;;  %v2020_v36 = vsel %vm1997_vm3, %v2015_v21, %v2019_v34  ;;  %v2021_v21 = vrot.slane %v4791_v44, 1 }
 0x14a   : > { %v5342_v1 = vpop.f32.mrf.mxu2 }
 0x14b   : > { %6434 = vst [vmem:[#allocation44_spill] sm:$0xff] %v5342_v1  ;;  %v6354_v1 = vrot.slane %v5148_v18, 3 }
 0x14c   : > { %v5370_v56 = vpop.f32.mrf.mxu1 }
 0x14d   : > { %v5384_v27 = vsel %vm3074_vm7, %v6354_v1, %v3112_v17  ;;  %v5404_v37 = vpop.f32.mrf.mxu0 }
 0x14e   : > { %6440 = vst [vmem:[#allocation50_spill] sm:$0xff] %v5384_v27  ;;  %v2849_v27 = vrot.slane %v2847_v42, 3 }
 0x14f   : > { %3971 = vmatmul.msk.bf16.gmra.mxu1 %vm1214_vm2, %v5098_v33  ;;  %4015 = vmatmul.msk.bf16.gmra.mxu3 %vm1214_vm2, %v1568_v28  ;;  %v5390_v33 = vsel %vm2313_vm6, %v5360_v2, %v6356_v23  ;;  %v1569_v23 = vrot.slane %v4643_v59, 1 }
 0x150   : > { %6441 = vst [vmem:[#allocation51_spill] sm:$0xff] %v5390_v33  ;;  %v6358_v33 = vrot.slane %v5243_v10, 3  ;;  %v5416_v42 = vor.u32 %v2849_v27, %v2846_v13 }
 0x152   : > { %v5394_v45 = vpop.f32.mrf.mxu2  ;;  %6445 = vst [vmem:[#allocation55_spill] sm:$0xff] %v5416_v42 }
 0x153   : > { %6442 = vst [vmem:[#allocation52_spill] sm:$0xff] %v5394_v45 }
 0x155   : > { %3994 = vmatmul.msk.bf16.gmra.mxu2 %vm1214_vm2, %v1568_v28  ;;  %v2841_v28 = vor.u32 %v2840_v19, %v2837_v57  ;;  %v5411_v57 = vsel %vm3074_vm7, %v3112_v17, %v6358_v33  ;;  %v1570_v19 = vsel %vm1555_vm4, %v1567_v49, %v1569_v23  ;;  %v2023_v49 = vor.u32 %v2022_v46, %v2021_v21 }
 0x156   : > { %6444 = vst [vmem:[#allocation54_spill] sm:$0xff] %v5411_v57  ;;  %v2025_v46 = vrot.slane %v4904_v35, 1 }
 0x157   : > { %4037 = vmatmul.msk.bf16.gmra.mxu0 %vm1214_vm2, %v2020_v36  ;;  %v5400_v1 = vsel %vm2758_vm5, %v5335_v22, %v2841_v28  ;;  %v5427_v17 = vsel %vm2758_vm5, %v2841_v28, %v5416_v42  ;;  %v2024_v13 = vsel %vm1997_vm3, %v2019_v34, %v2023_v49  ;;  %v1571_v22 = vrot.slane %v4784_v38, 1 }
 0x158   : > { %6443 = vst [vmem:[#allocation53_spill] sm:$0xff] %v5400_v1 }
 0x159   : > { %6448 = vst [vmem:[#allocation58_spill] sm:$0xff] %v5427_v17  ;;  %v1572_v21 = vsel %vm1555_vm4, %v1569_v23, %v1571_v22 }
 0x15a   : > { %v5421_v36 = vpop.f32.mrf.mxu2 }
 0x15b   : > { %6446 = vst [vmem:[#allocation56_spill] sm:$0xff] %v5421_v36  ;;  %v5423_v1 = vpop.f32.mrf.mxu3  ;;  %v2034_v36 = vrot.slane %v5064_v63, 2 }
 0x15c   : > { %v5406_v2 = vpop.f32.mrf.mxu1  ;;  %6447 = vst [vmem:[#allocation57_spill] sm:$0xff] %v5423_v1 }
 0x15f   : > { %3972 = vmatmul.msk.bf16.gmra.mxu1 %vm1214_vm2, %v5191_v16  ;;  %4016 = vmatmul.msk.bf16.gmra.mxu3 %vm1214_vm2, %v1570_v19 }
 0x163   : > { %v5438_v57 = vpop.f32.mrf.mxu3 }
 0x164   : > { %v5429_v33 = vpop.f32.mrf.mxu0  ;;  %v5431_v10 = vpop.f32.mrf.mxu1  ;;  %6450 = vst [vmem:[#allocation60_spill] sm:$0xff] %v5438_v57 }
 0x165   : > { %3995 = vmatmul.msk.bf16.gmra.mxu2 %vm1214_vm2, %v1570_v19  ;;  %v2026_v19 = vrot.slane %v4800_v41, 2 }
 0x167   : > { %4038 = vmatmul.msk.bf16.gmra.mxu0 %vm1214_vm2, %v2024_v13  ;;  %v2027_v42 = vor.u32 %v2026_v19, %v2025_v46  ;;  %v1574_v46 = vsel %vm1555_vm4, %v1571_v22, %v1573_v9  ;;  %v2029_v19 = vrot.slane %v5061_v55, 1 }
 0x168   : > { %v5436_v27 = vpop.f32.mrf.mxu2 }
 0x169   : > { %6449 = vst [vmem:[#allocation59_spill] sm:$0xff] %v5436_v27  ;;  %v2028_v23 = vsel %vm1997_vm3, %v2023_v49, %v2027_v42 }
 0x16c   : > { %v5441_v1 = vpop.f32.mrf.mxu0  ;;  %v5443_v28 = vpop.f32.mrf.mxu1 }
 0x16f   : > { %3973 = vmatmul.msk.bf16.gmra.mxu1 %vm1214_vm2, %v4582_v12  ;;  %4017 = vmatmul.msk.bf16.gmra.mxu3 %vm1214_vm2, %v1572_v21 }
 0x170   : > { %v5451_v34 = vpop.f32.mrf.mxu2 }
 0x171   : > { %6451 = vst [vmem:[#allocation61_spill] sm:$0xff] %v5451_v34 }
 0x172   : > { %v5453_v13 = vpop.f32.mrf.mxu3 }
 0x173   : > { %6452 = vst [vmem:[#allocation62_spill] sm:$0xff] %v5453_v13 }
 0x174   : > { %v5455_v17 = vpop.f32.mrf.mxu0  ;;  %v5457_v57 = vpop.f32.mrf.mxu1 }
 0x175   : > { %3996 = vmatmul.msk.bf16.gmra.mxu2 %vm1214_vm2, %v1572_v21  ;;  %v2030_v21 = vrot.slane %v4911_v0, 2 }
 0x177   : > { %4039 = vmatmul.msk.bf16.gmra.mxu0 %vm1214_vm2, %v2028_v23 }
 0x178   : > { %v5462_v41 = vpop.f32.mrf.mxu2 }
 0x179   : > { %6453 = vst [vmem:[#allocation63_spill] sm:$0xff] %v5462_v41 }
 0x17a   : > { %v5464_v35 = vpop.f32.mrf.mxu3 }
 0x17b   : > { %6454 = vst [vmem:[#allocation64_spill] sm:$0xff] %v5464_v35  ;;  %v2031_v35 = vor.u32 %v2030_v21, %v2029_v19  ;;  %v2033_v21 = vrot.slane %v5156_v14, 1 }
 0x17c   : > { %v5467_v44 = vpop.f32.mrf.mxu0  ;;  %v5469_v13 = vpop.f32.mrf.mxu1 }
 0x17d   : > { %v2032_v22 = vsel %vm1997_vm3, %v2027_v42, %v2031_v35 }
 0x17f   : > { %3974 = vmatmul.msk.bf16.gmra.mxu1 %vm1214_vm2, %v4643_v59  ;;  %4018 = vmatmul.msk.bf16.gmra.mxu3 %vm1214_vm2, %v1574_v46  ;;  %v1575_v59 = vrot.slane %v5054_v51, 1 }
 0x180   : > { %v5477_v49 = vpop.f32.mrf.mxu2 }
 0x181   : > { %6455 = vst [vmem:[#allocation65_spill] sm:$0xff] %v5477_v49  ;;  %v1576_v19 = vsel %vm1555_vm4, %v1573_v9, %v1575_v59 }
 0x182   : > { %v5479_v23 = vpop.f32.mrf.mxu3 }
 0x183   : > { %6456 = vst [vmem:[#allocation66_spill] sm:$0xff] %v5479_v23 }
 0x184   : > { %v5481_v41 = vpop.f32.mrf.mxu0  ;;  %v5483_v34 = vpop.f32.mrf.mxu1 }
 0x185   : > { %3997 = vmatmul.msk.bf16.gmra.mxu2 %vm1214_vm2, %v1574_v46 }
 0x187   : > { %4040 = vmatmul.msk.bf16.gmra.mxu0 %vm1214_vm2, %v2032_v22  ;;  %v2035_v22 = vor.u32 %v2034_v36, %v2033_v21 }
 0x188   : > { %v1672_v0 = vpop.f32.mrf.mxu2 }
 0x189   : > { %v2036_v9 = vsel %vm1997_vm3, %v2031_v35, %v2035_v22  ;;  %v2038_v35 = vrot.slane %v5159_v31, 2 }
 0x18a   : > { %v1393_v55 = vpop.f32.mrf.mxu3 }
 0x18c   : > { %v5489_v27 = vpop.f32.mrf.mxu0  ;;  %v1449_v49 = vpop.f32.mrf.mxu1 }
 0x18d   : > { %v1450_v23 = vadd.f32 %v1449_v49, %v5291_v26 }
 0x18f   : > { %3975 = vmatmul.msk.bf16.gmra.mxu1 %vm1214_vm2, %v4784_v38  ;;  %4019 = vmatmul.msk.bf16.gmra.mxu3 %vm1214_vm2, %v1576_v19  ;;  %v1776_v42 = vadd.f32 %v1672_v0, %v1450_v23  ;;  %v1577_v0 = vrot.slane %v5144_v20, 1 }
 0x190   : > { %v1674_v55 = vpop.f32.mrf.mxu2 }
 0x192   : > { %v1850_v46 = vpop.f32.mrf.mxu3 }
 0x193   : > { %v1954_v12 = vadd.f32 %v1850_v46, %v1776_v42 }
 0x194   : > { %v1451_v45 = vpop.f32.mrf.mxu1  ;;  %v2166_v16 = vpop.f32.mrf.mxu0 }
 0x195   : > { %v1452_v26 = vadd.f32 %v1451_v45, %v5304_v8  ;;  %v5499_v49 = vadd.f32 %v2166_v16, %v1954_v12  ;;  %3998 = vmatmul.msk.bf16.gmra.mxu2 %vm1214_vm2, %v1576_v19  ;;  %v1578_v12 = vsel %vm1555_vm4, %v1575_v59, %v1577_v0  ;;  %v2037_v16 = vrot.slane %v5232_v52, 1 }
 0x197   : > { %4041 = vmatmul.msk.bf16.gmra.mxu0 %vm1214_vm2, %v2036_v9  ;;  %v1777_v63 = vadd.f32 %v1674_v55, %v1452_v26 }
 0x198   : > { %v1677_v14 = vpop.f32.mrf.mxu2 }
 0x19a   : > { %v1852_v38 = vpop.f32.mrf.mxu3 }
 0x19b   : > { %v1955_v23 = vadd.f32 %v1852_v38, %v1777_v63  ;;  %v2039_v63 = vor.u32 %v2038_v35, %v2037_v16  ;;  %v6459_v16 = vld [vmem:[#allocation4_spill] sm:$0xff] }
 0x19c   : > { %v1454_v36 = vpop.f32.mrf.mxu1  ;;  %v2168_v21 = vpop.f32.mrf.mxu0  ;;  %v1579_v35 = vrot.slane %v6459_v16, 1 }
 0x19d   : > { %v1455_v42 = vadd.f32 %v1454_v36, %v5315_v5  ;;  %v5506_v46 = vadd.f32 %v2168_v21, %v1955_v23  ;;  %v2040_v59 = vsel %vm1997_vm3, %v2035_v22, %v2039_v63 }
 0x19f   : > { %6457 = vst [vmem:[#allocation67_spill] sm:$0xff] %v5506_v46  ;;  %3976 = vmatmul.msk.bf16.gmra.mxu1 %vm1214_vm2, %v4898_v48  ;;  %4020 = vmatmul.msk.bf16.gmra.mxu3 %vm1214_vm2, %v1578_v12  ;;  %v1778_v8 = vadd.f32 %v1677_v14, %v1455_v42 }
 0x1a0   : > { %v1679_v45 = vpop.f32.mrf.mxu2 }
 0x1a2   : > { %v1855_v38 = vpop.f32.mrf.mxu3 }
 0x1a3   : > { %v1956_v19 = vadd.f32 %v1855_v38, %v1778_v8 }
 0x1a4   : > { %v1456_v55 = vpop.f32.mrf.mxu1  ;;  %v2171_v5 = vpop.f32.mrf.mxu0 }
 0x1a5   : > { %v1457_v26 = vadd.f32 %v1456_v55, %v5338_v3  ;;  %v5515_v9 = vadd.f32 %v2171_v5, %v1956_v19  ;;  %3999 = vmatmul.msk.bf16.gmra.mxu2 %vm1214_vm2, %v1578_v12  ;;  %v1580_v3 = vsel %vm1555_vm4, %v1577_v0, %v1579_v35  ;;  %v2042_v55 = vrot.slane %v4604_v30, 2 }
 0x1a7   : > { %6458 = vst [vmem:[#allocation68_spill] sm:$0xff] %v5515_v9  ;;  %4042 = vmatmul.msk.bf16.gmra.mxu0 %vm1214_vm2, %v2040_v59  ;;  %v1779_v23 = vadd.f32 %v1679_v45, %v1457_v26  ;;  %v6461_v45 = vld [vmem:[#allocation7_spill] sm:$0xff] }
 0x1a8   : > { %v1682_v36 = vpop.f32.mrf.mxu2  ;;  %v2041_v19 = vrot.slane %v6461_v45, 1 }
 0x1aa   : > { %v1857_v21 = vpop.f32.mrf.mxu3 }
 0x1ab   : > { %v1957_v14 = vadd.f32 %v1857_v21, %v1779_v23 }
 0x1ac   : > { %v1459_v42 = vpop.f32.mrf.mxu1  ;;  %v2173_v46 = vpop.f32.mrf.mxu0 }
 0x1ad   : > { %v1460_v8 = vadd.f32 %v1459_v42, %v5362_v61  ;;  %v5522_v38 = vadd.f32 %v2173_v46, %v1957_v14  ;;  %v2043_v61 = vor.u32 %v2042_v55, %v2041_v19 }
 0x1af   : > { %6460 = vst [vmem:[#allocation4_spill] sm:$0xff] %v5522_v38  ;;  %3977 = vmatmul.msk.bf16.gmra.mxu1 %vm1214_vm2, %v5054_v51  ;;  %4021 = vmatmul.msk.bf16.gmra.mxu3 %vm1214_vm2, %v1580_v3  ;;  %v1780_v22 = vadd.f32 %v1682_v36, %v1460_v8  ;;  %v2044_v0 = vsel %vm1997_vm3, %v2039_v63, %v2043_v61  ;;  %v6463_v8 = vld [vmem:[#allocation3_spill] sm:$0xff] }
 0x1b0   : > { %v1684_v12 = vpop.f32.mrf.mxu2  ;;  %v1581_v38 = vrot.slane %v6463_v8, 1 }
 0x1b2   : > { %v1860_v5 = vpop.f32.mrf.mxu3 }
 0x1b3   : > { %v1958_v26 = vadd.f32 %v1860_v5, %v1780_v22 }
 0x1b4   : > { %v1461_v59 = vpop.f32.mrf.mxu1  ;;  %v2176_v23 = vpop.f32.mrf.mxu0 }
 0x1b5   : > { %v1462_v46 = vadd.f32 %v1461_v59, %v5404_v37  ;;  %v5531_v21 = vadd.f32 %v2176_v23, %v1958_v26  ;;  %4000 = vmatmul.msk.bf16.gmra.mxu2 %vm1214_vm2, %v1580_v3  ;;  %v1582_v37 = vsel %vm1555_vm4, %v1579_v35, %v1581_v38  ;;  %v6465_v26 = vld [vmem:[#allocation12_spill] sm:$0xff]  ;;  %v6466_v59 = vld [vmem:[#allocation5_spill] sm:$0xff] }
 0x1b6   : > { %v2045_v3 = vrot.slane %v6465_v26, 1  ;;  %v2046_v63 = vrot.slane %v6466_v59, 2 }
 0x1b7   : > { %6462 = vst [vmem:[#allocation7_spill] sm:$0xff] %v5531_v21  ;;  %4043 = vmatmul.msk.bf16.gmra.mxu0 %vm1214_vm2, %v2044_v0  ;;  %v1781_v36 = vadd.f32 %v1684_v12, %v1462_v46 }
 0x1b8   : > { %v1687_v14 = vpop.f32.mrf.mxu2  ;;  %v2047_v0 = vor.u32 %v2046_v63, %v2045_v3 }
 0x1ba   : > { %v1862_v42 = vpop.f32.mrf.mxu3  ;;  %v2048_v35 = vsel %vm1997_vm3, %v2043_v61, %v2047_v0 }
 0x1bb   : > { %v1959_v9 = vadd.f32 %v1862_v42, %v1781_v36 }
 0x1bc   : > { %v1464_v22 = vpop.f32.mrf.mxu1  ;;  %v2178_v5 = vpop.f32.mrf.mxu0 }
 0x1bd   : > { %v1465_v19 = vadd.f32 %v1464_v22, %v5429_v33  ;;  %v5538_v55 = vadd.f32 %v2178_v5, %v1959_v9 }
 0x1bf   : > { %6464 = vst [vmem:[#allocation3_spill] sm:$0xff] %v5538_v55  ;;  %3978 = vmatmul.msk.bf16.gmra.mxu1 %vm1214_vm2, %v5144_v20  ;;  %4022 = vmatmul.msk.bf16.gmra.mxu3 %vm1214_vm2, %v1582_v37  ;;  %v1782_v12 = vadd.f32 %v1687_v14, %v1465_v19  ;;  %v6468_v14 = vld [vmem:[#allocation11_spill] sm:$0xff] }
 0x1c0   : > { %v1689_v23 = vpop.f32.mrf.mxu2  ;;  %v1583_v19 = vrot.slane %v6468_v14, 1 }
 0x1c2   : > { %v1865_v46 = vpop.f32.mrf.mxu3 }
 0x1c3   : > { %v1960_v36 = vadd.f32 %v1865_v46, %v1782_v12 }
 0x1c4   : > { %v1466_v42 = vpop.f32.mrf.mxu1  ;;  %v2181_v33 = vpop.f32.mrf.mxu0 }
 0x1c5   : > { %v1467_v9 = vadd.f32 %v1466_v42, %v5441_v1  ;;  %v5547_v22 = vadd.f32 %v2181_v33, %v1960_v36  ;;  %4001 = vmatmul.msk.bf16.gmra.mxu2 %vm1214_vm2, %v1582_v37  ;;  %v1584_v1 = vsel %vm1555_vm4, %v1581_v38, %v1583_v19  ;;  %v6470_v36 = vld [vmem:[#allocation18_spill] sm:$0xff]  ;;  %v6471_v42 = vld [vmem:[#allocation13_spill] sm:$0xff] }
 0x1c6   : > { %v2049_v37 = vrot.slane %v6470_v36, 1  ;;  %v2050_v61 = vrot.slane %v6471_v42, 2 }
 0x1c7   : > { %6467 = vst [vmem:[#allocation12_spill] sm:$0xff] %v5547_v22  ;;  %4044 = vmatmul.msk.bf16.gmra.mxu0 %vm1214_vm2, %v2048_v35  ;;  %v1783_v5 = vadd.f32 %v1689_v23, %v1467_v9 }
 0x1c8   : > { %v1692_v55 = vpop.f32.mrf.mxu2  ;;  %v2051_v9 = vor.u32 %v2050_v61, %v2049_v37 }
 0x1ca   : > { %v1867_v21 = vpop.f32.mrf.mxu3  ;;  %v2052_v38 = vsel %vm1997_vm3, %v2047_v0, %v2051_v9 }
 0x1cb   : > { %v1961_v59 = vadd.f32 %v1867_v21, %v1783_v5 }
 0x1cc   : > { %v1469_v3 = vpop.f32.mrf.mxu1  ;;  %v2183_v63 = vpop.f32.mrf.mxu0 }
 0x1cd   : > { %v1470_v12 = vadd.f32 %v1469_v3, %v5455_v17  ;;  %v5554_v46 = vadd.f32 %v2183_v63, %v1961_v59 }
 0x1cf   : > { %6469 = vst [vmem:[#allocation11_spill] sm:$0xff] %v5554_v46  ;;  %3979 = vmatmul.msk.bf16.gmra.mxu1 %vm1214_vm2, %v6459_v16  ;;  %4023 = vmatmul.msk.bf16.gmra.mxu3 %vm1214_vm2, %v1584_v1  ;;  %v1784_v23 = vadd.f32 %v1692_v55, %v1470_v12  ;;  %v6473_v55 = vld [vmem:[#allocation17_spill] sm:$0xff] }
 0x1d0   : > { %v1694_v33 = vpop.f32.mrf.mxu2  ;;  %v1585_v12 = vrot.slane %v6473_v55, 1 }
 0x1d2   : > { %v1870_v21 = vpop.f32.mrf.mxu3 }
 0x1d3   : > { %v1962_v35 = vadd.f32 %v1870_v21, %v1784_v23 }
 0x1d4   : > { %v1471_v5 = vpop.f32.mrf.mxu1  ;;  %v2186_v17 = vpop.f32.mrf.mxu0 }
 0x1d5   : > { %v1472_v59 = vadd.f32 %v1471_v5, %v5467_v44  ;;  %v5563_v3 = vadd.f32 %v2186_v17, %v1962_v35  ;;  %4002 = vmatmul.msk.bf16.gmra.mxu2 %vm1214_vm2, %v1584_v1  ;;  %v1586_v44 = vsel %vm1555_vm4, %v1583_v19, %v1585_v12  ;;  %v6475_v35 = vld [vmem:[#allocation23_spill] sm:$0xff] }
 0x1d6   : > { %v2053_v1 = vrot.slane %v6475_v35, 1  ;;  %v6476_v5 = vld [vmem:[#allocation19_spill] sm:$0xff] }
 0x1d7   : > { %6472 = vst [vmem:[#allocation18_spill] sm:$0xff] %v5563_v3  ;;  %4045 = vmatmul.msk.bf16.gmra.mxu0 %vm1214_vm2, %v2052_v38  ;;  %v1785_v63 = vadd.f32 %v1694_v33, %v1472_v59  ;;  %v2054_v0 = vrot.slane %v6476_v5, 2 }
 0x1d8   : > { %v1697_v46 = vpop.f32.mrf.mxu2 }
 0x1d9   : > { %v2055_v59 = vor.u32 %v2054_v0, %v2053_v1 }
 0x1da   : > { %v1872_v22 = vpop.f32.mrf.mxu3 }
 0x1db   : > { %v1963_v42 = vadd.f32 %v1872_v22, %v1785_v63  ;;  %v2056_v19 = vsel %vm1997_vm3, %v2051_v9, %v2055_v59 }
 0x1dc   : > { %v1474_v37 = vpop.f32.mrf.mxu1  ;;  %v2188_v61 = vpop.f32.mrf.mxu0 }
 0x1dd   : > { %v1475_v23 = vadd.f32 %v1474_v37, %v5481_v41  ;;  %v5570_v21 = vadd.f32 %v2188_v61, %v1963_v42 }
 0x1df   : > { %6474 = vst [vmem:[#allocation17_spill] sm:$0xff] %v5570_v21  ;;  %3980 = vmatmul.msk.bf16.gmra.mxu1 %vm1214_vm2, %v6463_v8  ;;  %4024 = vmatmul.msk.bf16.gmra.mxu3 %vm1214_vm2, %v1586_v44  ;;  %v1786_v33 = vadd.f32 %v1697_v46, %v1475_v23  ;;  %v6478_v46 = vld [vmem:[#allocation22_spill] sm:$0xff] }
 0x1e0   : > { %v1699_v17 = vpop.f32.mrf.mxu2  ;;  %v1587_v23 = vrot.slane %v6478_v46, 1 }
 0x1e2   : > { %v1875_v22 = vpop.f32.mrf.mxu3 }
 0x1e3   : > { %v1964_v38 = vadd.f32 %v1875_v22, %v1786_v33 }
 0x1e4   : > { %v1476_v63 = vpop.f32.mrf.mxu1  ;;  %v2191_v41 = vpop.f32.mrf.mxu0 }
 0x1e5   : > { %v1477_v42 = vadd.f32 %v1476_v63, %v5489_v27  ;;  %v5579_v37 = vadd.f32 %v2191_v41, %v1964_v38  ;;  %4003 = vmatmul.msk.bf16.gmra.mxu2 %vm1214_vm2, %v1586_v44  ;;  %v1588_v27 = vsel %vm1555_vm4, %v1585_v12, %v1587_v23  ;;  %v6480_v38 = vld [vmem:[#allocation32_spill] sm:$0xff] }
 0x1e6   : > { %v2057_v44 = vrot.slane %v6480_v38, 1  ;;  %v6481_v63 = vld [vmem:[#allocation24_spill] sm:$0xff] }
 0x1e7   : > { %6477 = vst [vmem:[#allocation23_spill] sm:$0xff] %v5579_v37  ;;  %4046 = vmatmul.msk.bf16.gmra.mxu0 %vm1214_vm2, %v2056_v19  ;;  %v1787_v61 = vadd.f32 %v1699_v17, %v1477_v42  ;;  %v2058_v9 = vrot.slane %v6481_v63, 2 }
 0x1e8   : > { %v1702_v21 = vpop.f32.mrf.mxu2 }
 0x1e9   : > { %v2059_v42 = vor.u32 %v2058_v9, %v2057_v44 }
 0x1ea   : > { %v1877_v3 = vpop.f32.mrf.mxu3 }
 0x1eb   : > { %v1965_v5 = vadd.f32 %v1877_v3, %v1787_v61  ;;  %v2060_v12 = vsel %vm1997_vm3, %v2055_v59, %v2059_v42  ;;  %v2062_v59 = vrot.slane %v5111_v11, 2 }
 0x1ec   : > { %v1479_v1 = vpop.f32.mrf.mxu1  ;;  %v2193_v0 = vpop.f32.mrf.mxu0 }
 0x1ed   : > { %v1480_v33 = vadd.f32 %v1479_v1, %v5284_v7  ;;  %v5586_v22 = vadd.f32 %v2193_v0, %v1965_v5 }
 0x1ef   : > { %6479 = vst [vmem:[#allocation22_spill] sm:$0xff] %v5586_v22  ;;  %3981 = vmatmul.msk.bf16.gmra.mxu1 %vm1214_vm2, %v6468_v14  ;;  %4025 = vmatmul.msk.bf16.gmra.mxu3 %vm1214_vm2, %v1588_v27  ;;  %v1788_v17 = vadd.f32 %v1702_v21, %v1480_v33  ;;  %v1589_v21 = vrot.slane %v5095_v60, 1 }
 0x1f0   : > { %v1704_v41 = vpop.f32.mrf.mxu2 }
 0x1f2   : > { %v1880_v3 = vpop.f32.mrf.mxu3 }
 0x1f3   : > { %v1966_v19 = vadd.f32 %v1880_v3, %v1788_v17 }
 0x1f4   : > { %v1481_v61 = vpop.f32.mrf.mxu1  ;;  %v2196_v7 = vpop.f32.mrf.mxu0 }
 0x1f5   : > { %v1482_v5 = vadd.f32 %v1481_v61, %v5294_v62  ;;  %v5595_v1 = vadd.f32 %v2196_v7, %v1966_v19  ;;  %4004 = vmatmul.msk.bf16.gmra.mxu2 %vm1214_vm2, %v1588_v27  ;;  %v1590_v62 = vsel %vm1555_vm4, %v1587_v23, %v1589_v21  ;;  %v2061_v27 = vrot.slane %v5189_v43, 1 }
 0x1f7   : > { %4047 = vmatmul.msk.bf16.gmra.mxu0 %vm1214_vm2, %v2060_v12  ;;  %v1789_v0 = vadd.f32 %v1704_v41, %v1482_v5  ;;  %v2063_v61 = vor.u32 %v2062_v59, %v2061_v27  ;;  %v6484_v27 = vld [vmem:[#allocation26_spill] sm:$0xff] }
 0x1f8   : > { %v1707_v22 = vpop.f32.mrf.mxu2  ;;  %v1591_v59 = vrot.slane %v6484_v27, 1 }
 0x1f9   : > { %v2064_v23 = vsel %vm1997_vm3, %v2059_v42, %v2063_v61 }
 0x1fa   : > { %v1882_v37 = vpop.f32.mrf.mxu3 }
 0x1fb   : > { %v1967_v33 = vadd.f32 %v1882_v37, %v1789_v0 }
 0x1fc   : > { %v1484_v44 = vpop.f32.mrf.mxu1  ;;  %v2198_v9 = vpop.f32.mrf.mxu0 }
 0x1fd   : > { %v1485_v17 = vadd.f32 %v1484_v44, %v5307_v6  ;;  %v5602_v3 = vadd.f32 %v2198_v9, %v1967_v33 }
 0x1ff   : > { %6482 = vst [vmem:[#allocation32_spill] sm:$0xff] %v5602_v3  ;;  %3982 = vmatmul.msk.bf16.gmra.mxu1 %vm1214_vm2, %v6473_v55  ;;  %4026 = vmatmul.msk.bf16.gmra.mxu3 %vm1214_vm2, %v1590_v62  ;;  %v1790_v41 = vadd.f32 %v1707_v22, %v1485_v17 }
 0x200   : > { %v1709_v19 = vpop.f32.mrf.mxu2 }
 0x202   : > { %v1885_v37 = vpop.f32.mrf.mxu3 }
 0x203   : > { %v1968_v7 = vadd.f32 %v1885_v37, %v1790_v41 }
 0x204   : > { %v1486_v5 = vpop.f32.mrf.mxu1  ;;  %v2201_v6 = vpop.f32.mrf.mxu0 }
 0x205   : > { %v1487_v12 = vadd.f32 %v1486_v5, %v5323_v53  ;;  %v5611_v0 = vadd.f32 %v2201_v6, %v1968_v7  ;;  %4005 = vmatmul.msk.bf16.gmra.mxu2 %vm1214_vm2, %v1590_v62  ;;  %v1592_v53 = vsel %vm1555_vm4, %v1589_v21, %v1591_v59  ;;  %v2066_v5 = vrot.slane %v5018_v32, 2 }
 0x207   : > { %6483 = vst [vmem:[#allocation24_spill] sm:$0xff] %v5611_v0  ;;  %4048 = vmatmul.msk.bf16.gmra.mxu0 %vm1214_vm2, %v2064_v23  ;;  %v1791_v33 = vadd.f32 %v1709_v19, %v1487_v12  ;;  %v6486_v19 = vld [vmem:[#allocation28_spill] sm:$0xff] }
 0x208   : > { %v1712_v44 = vpop.f32.mrf.mxu2  ;;  %v2065_v7 = vrot.slane %v6486_v19, 1 }
 0x20a   : > { %v1887_v9 = vpop.f32.mrf.mxu3 }
 0x20b   : > { %v1969_v22 = vadd.f32 %v1887_v9, %v1791_v33 }
 0x20c   : > { %v1489_v17 = vpop.f32.mrf.mxu1  ;;  %v2203_v3 = vpop.f32.mrf.mxu0 }
 0x20d   : > { %v1490_v41 = vadd.f32 %v1489_v17, %v5340_v24  ;;  %v5618_v37 = vadd.f32 %v2203_v3, %v1969_v22  ;;  %v2067_v24 = vor.u32 %v2066_v5, %v2065_v7 }
 0x20f   : > { %6485 = vst [vmem:[#allocation26_spill] sm:$0xff] %v5618_v37  ;;  %3983 = vmatmul.msk.bf16.gmra.mxu1 %vm1214_vm2, %v6478_v46  ;;  %4027 = vmatmul.msk.bf16.gmra.mxu3 %vm1214_vm2, %v1592_v53  ;;  %v1792_v42 = vadd.f32 %v1712_v44, %v1490_v41  ;;  %v2068_v21 = vsel %vm1997_vm3, %v2063_v61, %v2067_v24  ;;  %v6487_v41 = vld [vmem:[#allocation25_spill] sm:$0xff] }
 0x210   : > { %v1714_v62 = vpop.f32.mrf.mxu2  ;;  %v1593_v37 = vrot.slane %v6487_v41, 1 }
 0x212   : > { %v1890_v6 = vpop.f32.mrf.mxu3 }
 0x213   : > { %v1970_v12 = vadd.f32 %v1890_v6, %v1792_v42 }
 0x214   : > { %v1491_v23 = vpop.f32.mrf.mxu1  ;;  %v2206_v33 = vpop.f32.mrf.mxu0 }
 0x215   : > { %v1492_v3 = vadd.f32 %v1491_v23, %v5370_v56  ;;  %v5627_v9 = vadd.f32 %v2206_v33, %v1970_v12  ;;  %4006 = vmatmul.msk.bf16.gmra.mxu2 %vm1214_vm2, %v1592_v53  ;;  %v1594_v56 = vsel %vm1555_vm4, %v1591_v59, %v1593_v37  ;;  %v2069_v53 = vrot.slane %v5152_v54, 1  ;;  %v6489_v12 = vld [vmem:[#allocation27_spill] sm:$0xff] }
 0x216   : > { %v2070_v61 = vrot.slane %v6489_v12, 2 }
 0x217   : > { %4049 = vmatmul.msk.bf16.gmra.mxu0 %vm1214_vm2, %v2068_v21  ;;  %v1793_v44 = vadd.f32 %v1714_v62, %v1492_v3 }
 0x218   : > { %v1717_v22 = vpop.f32.mrf.mxu2  ;;  %v2071_v3 = vor.u32 %v2070_v61, %v2069_v53 }
 0x21a   : > { %v1892_v17 = vpop.f32.mrf.mxu3  ;;  %v2072_v59 = vsel %vm1997_vm3, %v2067_v24, %v2071_v3  ;;  %v6491_v24 = vshll.u32 %v5148_v18, 16 }
 0x21b   : > { %v1971_v0 = vadd.f32 %v1892_v17, %v1793_v44 }
 0x21c   : > { %v1494_v42 = vpop.f32.mrf.mxu1  ;;  %v2208_v6 = vpop.f32.mrf.mxu0 }
 0x21d   : > { %v1495_v7 = vadd.f32 %v1494_v42, %v5406_v2  ;;  %v5634_v5 = vadd.f32 %v2208_v6, %v1971_v0 }
 0x21f   : > { %6488 = vst [vmem:[#allocation28_spill] sm:$0xff] %v5634_v5  ;;  %3984 = vmatmul.msk.bf16.gmra.mxu1 %vm1214_vm2, %v5095_v60  ;;  %4028 = vmatmul.msk.bf16.gmra.mxu3 %vm1214_vm2, %v1594_v56  ;;  %v1794_v62 = vadd.f32 %v1717_v22, %v1495_v7  ;;  %v1825_v22 = vrot.slane %v5148_v18, 1 }
 0x220   : > { %v1719_v23 = vpop.f32.mrf.mxu2 }
 0x222   : > { %v1895_v33 = vpop.f32.mrf.mxu3 }
 0x223   : > { %v1972_v21 = vadd.f32 %v1895_v33, %v1794_v62 }
 0x224   : > { %v1496_v44 = vpop.f32.mrf.mxu1  ;;  %v2211_v2 = vpop.f32.mrf.mxu0 }
 0x225   : > { %v1497_v0 = vadd.f32 %v1496_v44, %v5431_v10  ;;  %v5643_v17 = vadd.f32 %v2211_v2, %v1972_v21  ;;  %4007 = vmatmul.msk.bf16.gmra.mxu2 %vm1214_vm2, %v1594_v56  ;;  %v1826_v10 = vsel %vm1555_vm4, %v1593_v37, %v1825_v22  ;;  %v6490_v56 = vshrl.u32 %v5148_v18, 16 }
 0x226   : > { %v2079_v44 = vrot.slane %v6491_v24, 2  ;;  %v1595_v2 = vrot.slane %v5146_v4, 1 }
 0x227   : > { %4050 = vmatmul.msk.bf16.gmra.mxu0 %vm1214_vm2, %v2072_v59  ;;  %v1795_v42 = vadd.f32 %v1719_v23, %v1497_v0  ;;  %v2076_v21 = vrot.slane %v6490_v56, 1 }
 0x228   : > { %v1722_v6 = vpop.f32.mrf.mxu2 }
 0x229   : > { %v2080_v0 = vor.u32 %v2079_v44, %v2076_v21  ;;  %v1827_v21 = vrot.slane %v5352_v58, 1  ;;  %v2083_v44 = vshrl.u32 %v5352_v58, 16 }
 0x22a   : > { %v1897_v5 = vpop.f32.mrf.mxu3 }
 0x22b   : > { %v1973_v7 = vadd.f32 %v1897_v5, %v1795_v42  ;;  %v2081_v24 = vsel %vm1997_vm3, %v2071_v3, %v2080_v0  ;;  %v1828_v3 = vsel %vm1555_vm4, %v1825_v22, %v1827_v21 }
 0x22c   : > { %v1499_v53 = vpop.f32.mrf.mxu1  ;;  %v2213_v61 = vpop.f32.mrf.mxu0 }
 0x22d   : > { %v1500_v62 = vadd.f32 %v1499_v53, %v5443_v28  ;;  %v5650_v33 = vadd.f32 %v2213_v61, %v1973_v7  ;;  %v1596_v53 = vsel %vm1555_vm4, %v1593_v37, %v1595_v2 }
 0x22f   : > { %3985 = vmatmul.msk.bf16.gmra.mxu1 %vm1214_vm2, %v6484_v27  ;;  %4029 = vmatmul.msk.bf16.gmra.mxu3 %vm1214_vm2, %v1826_v10  ;;  %v1796_v5 = vadd.f32 %v1722_v6, %v1500_v62 }
 0x230   : > { %v1724_v23 = vpop.f32.mrf.mxu2 }
 0x232   : > { %v1900_v28 = vpop.f32.mrf.mxu3 }
 0x233   : > { %v1974_v59 = vadd.f32 %v1900_v28, %v1796_v5  ;;  %v2086_v5 = vshll.u32 %v5352_v58, 16 }
 0x234   : > { %v1501_v42 = vpop.f32.mrf.mxu1  ;;  %v2216_v7 = vpop.f32.mrf.mxu0 }
 0x235   : > { %v1502_v61 = vadd.f32 %v1501_v42, %v5457_v57  ;;  %v5663_v56 = vadd.f32 %v2216_v7, %v1974_v59  ;;  %4008 = vmatmul.msk.bf16.gmra.mxu2 %vm1214_vm2, %v1596_v53  ;;  %v2085_v7 = vrot.slane %v2083_v44, 1  ;;  %v2088_v53 = vrot.slane %v2086_v5, 2 }
 0x237   : > { %6492 = vst [vmem:[#allocation25_spill] sm:$0xff] %v5663_v56  ;;  %4051 = vmatmul.msk.bf16.gmra.mxu0 %vm1214_vm2, %v2081_v24  ;;  %v1797_v6 = vadd.f32 %v1724_v23, %v1502_v61  ;;  %v2089_v58 = vor.u32 %v2088_v53, %v2085_v7  ;;  %v2315_v53 = vrot.slane %v4779_v29, 2 }
 0x238   : > { %v1727_v62 = vpop.f32.mrf.mxu2 }
 0x239   : > { %v2090_v22 = vsel %vm1997_vm3, %v2080_v0, %v2089_v58  ;;  %v2317_v0 = vrot.slane %v4884_v40, 2 }
 0x23a   : > { %v1902_v10 = vpop.f32.mrf.mxu3 }
 0x23b   : > { %v1975_v37 = vadd.f32 %v1902_v10, %v1797_v6 }
 0x23c   : > { %v1504_v28 = vpop.f32.mrf.mxu1  ;;  %v2218_v57 = vpop.f32.mrf.mxu0 }
 0x23d   : > { %v1505_v59 = vadd.f32 %v1504_v28, %v5469_v13  ;;  %v5672_v42 = vadd.f32 %v2218_v57, %v1975_v37 }
 0x23f   : > { %3986 = vmatmul.msk.bf16.gmra.mxu1 %vm1214_vm2, %v6487_v41  ;;  %4030 = vmatmul.msk.bf16.gmra.mxu3 %vm1214_vm2, %v1828_v3  ;;  %v1798_v23 = vadd.f32 %v1727_v62, %v1505_v59 }
 0x240   : > { %v1729_v61 = vpop.f32.mrf.mxu2 }
 0x242   : > { %v1905_v24 = vpop.f32.mrf.mxu3 }
 0x243   : > { %v1976_v6 = vadd.f32 %v1905_v24, %v1798_v23 }
 0x244   : > { %v1506_v10 = vpop.f32.mrf.mxu1  ;;  %v2221_v56 = vpop.f32.mrf.mxu0 }
 0x245   : > { %v1507_v13 = vadd.f32 %v1506_v10, %v5483_v34  ;;  %v5679_v37 = vadd.f32 %v2221_v56, %v1976_v6  ;;  %4009 = vmatmul.msk.bf16.gmra.mxu2 %vm1214_vm2, %v1595_v2  ;;  %v2318_v6 = vsel %vm2313_vm6, %v2315_v53, %v2317_v0 }
 0x247   : > { %4052 = vmatmul.msk.bf16.gmra.mxu0 %vm1214_vm2, %v2090_v22  ;;  %v1799_v44 = vadd.f32 %v1729_v61, %v1507_v13 }
 0x248   : > { %v1732_v5 = vpop.f32.mrf.mxu2 }
 0x24a   : > { %v1907_v28 = vpop.f32.mrf.mxu3 }
 0x24b   : > { %v1977_v62 = vadd.f32 %v1907_v28, %v1799_v44  ;;  %v2314_v28 = vrot.slane %v4688_v39, 2 }
 0x24c   : > { %v1509_v57 = vpop.f32.mrf.mxu1  ;;  %v2223_v59 = vpop.f32.mrf.mxu0 }
 0x24d   : > { %v1510_v3 = vadd.f32 %v1509_v57, %v5282_v47  ;;  %v5685_v7 = vadd.f32 %v2223_v59, %v1977_v62 }
 0x24f   : > { %3987 = vmatmul.msk.bf16.gmra.mxu1 %vm1214_vm2, %v5146_v4  ;;  %4031 = vmatmul.msk.bf16.gmra.mxu3 %vm1214_vm2, %v1827_v21  ;;  %v1800_v34 = vadd.f32 %v1732_v5, %v1510_v3  ;;  %v6493_v3 = vld [vmem:[#allocation31_spill] sm:$0xff] }
 0x250   : > { %v1734_v2 = vpop.f32.mrf.mxu2 }
 0x252   : > { %v1910_v56 = vpop.f32.mrf.mxu3 }
 0x253   : > { %v1978_v23 = vadd.f32 %v1910_v56, %v1800_v34  ;;  %v2319_v34 = vrot.slane %v6493_v3, 2  ;;  %v3076_v56 = vrot.slane %v4884_v40, 3 }
 0x254   : > { %v1511_v61 = vpop.f32.mrf.mxu1  ;;  %v2226_v24 = vpop.f32.mrf.mxu0 }
 0x255   : > { %v1512_v47 = vadd.f32 %v1511_v61, %v5289_v50  ;;  %v5694_v10 = vadd.f32 %v2226_v24, %v1978_v23  ;;  %4077 = vmatmul.msk.bf16.vlgmr.msra.gmra.mxu2 %vm1214_vm2, %v2318_v6  ;;  %v2316_v50 = vsel %vm2313_vm6, %v2314_v28, %v2315_v53  ;;  %v3075_v24 = vrot.slane %v4779_v29, 3  ;;  %v6494_v53 = vld [vmem:[#allocation41_spill] sm:$0xff] }
 0x257   : > { %4053 = vmatmul.msk.bf16.gmra.mxu0 %vm1214_vm2, %v2089_v58  ;;  %v1801_v4 = vadd.f32 %v1734_v2, %v1512_v47 }
 0x258   : > { %v1737_v21 = vpop.f32.mrf.mxu2 }
 0x25a   : > { %v1912_v13 = vpop.f32.mrf.mxu3 }
 0x25b   : > { %v1979_v22 = vadd.f32 %v1912_v13, %v1801_v4 }
 0x25c   : > { %v1514_v44 = vpop.f32.mrf.mxu1  ;;  %v2228_v5 = vpop.f32.mrf.mxu0 }
 0x25d   : > { %v1515_v62 = vadd.f32 %v1514_v44, %v5302_v15  ;;  %v5700_v57 = vadd.f32 %v2228_v5, %v1979_v22  ;;  %v2320_v15 = vsel %vm2313_vm6, %v2317_v0, %v2319_v34  ;;  %v6496_v22 = vld [vmem:[#allocation33_spill] sm:$0xff] }
 0x25e   : > { %v2767_v44 = vrot.slane %v6496_v22, 3 }
 0x25f   : > { %4055 = vmatmul.msk.bf16.vlgmr.msra.gmra.mxu1 %vm1214_vm2, %v2316_v50  ;;  %4099 = vmatmul.msk.bf16.vlgmr.msra.gmra.mxu3 %vm1214_vm2, %v5266_v25  ;;  %v1802_v58 = vadd.f32 %v1737_v21, %v1515_v62  ;;  %v3077_v25 = vsel %vm3074_vm7, %v3075_v24, %v3076_v56  ;;  %v6495_v21 = vld [vmem:[#allocation36_spill] sm:$0xff] }
 0x260   : > { %v1739_v59 = vpop.f32.mrf.mxu2  ;;  %v2766_v13 = vrot.slane %v6495_v21, 2  ;;  %v3078_v21 = vrot.slane %v6493_v3, 3 }
 0x262   : > { %v1915_v2 = vpop.f32.mrf.mxu3  ;;  %v2768_v0 = vor.u32 %v2767_v44, %v2766_v13 }
 0x263   : > { %v1980_v23 = vadd.f32 %v1915_v2, %v1802_v58  ;;  %v6497_v58 = vld [vmem:[#allocation42_spill] sm:$0xff] }
 0x264   : > { %v1516_v39 = vpop.f32.mrf.mxu1  ;;  %v2231_v61 = vpop.f32.mrf.mxu0 }
 0x265   : > { %v1517_v47 = vadd.f32 %v1516_v39, %v6494_v53  ;;  %v5711_v4 = vadd.f32 %v2231_v61, %v1980_v23  ;;  %4078 = vmatmul.msk.bf16.gmra.mxu2 %vm1214_vm2, %v2320_v15  ;;  %v6499_v39 = vld [vmem:[#allocation40_spill] sm:$0xff] }
 0x266   : > { %v2769_v61 = vsel %vm2758_vm5, %v6499_v39, %v2768_v0 }
 0x267   : > { %4121 = vmatmul.msk.bf16.vlgmr.msra.gmra.mxu0 %vm1214_vm2, %v3077_v25  ;;  %v1803_v40 = vadd.f32 %v1739_v59, %v1517_v47  ;;  %v6500_v59 = vld [vmem:[#allocation35_spill] sm:$0xff] }
 0x268   : > { %v1742_v5 = vpop.f32.mrf.mxu2  ;;  %v2321_v47 = vrot.slane %v6500_v59, 2 }
 0x26a   : > { %v1917_v28 = vpop.f32.mrf.mxu3 }
 0x26b   : > { %v1981_v62 = vadd.f32 %v1917_v28, %v1803_v40  ;;  %v2322_v40 = vsel %vm2313_vm6, %v2319_v34, %v2321_v47  ;;  %v6501_v28 = vld [vmem:[#allocation44_spill] sm:$0xff] }
 0x26c   : > { %v1519_v29 = vpop.f32.mrf.mxu1  ;;  %v2233_v50 = vpop.f32.mrf.mxu0 }
 0x26d   : > { %v1520_v2 = vadd.f32 %v1519_v29, %v6497_v58  ;;  %v5719_v23 = vadd.f32 %v2233_v50, %v1981_v62  ;;  %v6504_v58 = vld [vmem:[#allocation37_spill] sm:$0xff] }
 0x26f   : > { %6498 = vst [vmem:[#allocation27_spill] sm:$0xff] %v5719_v23  ;;  %4056 = vmatmul.msk.bf16.gmra.mxu1 %vm1214_vm2, %v2318_v6  ;;  %4100 = vmatmul.msk.bf16.gmra.mxu3 %vm1214_vm2, %v2769_v61  ;;  %v1804_v24 = vadd.f32 %v1742_v5, %v1520_v2  ;;  %v3079_v6 = vsel %vm3074_vm7, %v3076_v56, %v3078_v21  ;;  %v6503_v5 = vld [vmem:[#allocation39_spill] sm:$0xff]  ;;  %v2771_v2 = vrot.slane %v6504_v58, 3 }
 0x270   : > { %v1744_v53 = vpop.f32.mrf.mxu2  ;;  %v2770_v50 = vrot.slane %v6503_v5, 2 }
 0x272   : > { %v1920_v25 = vpop.f32.mrf.mxu3 }
 0x273   : > { %v1982_v13 = vadd.f32 %v1920_v25, %v1804_v24  ;;  %v2772_v24 = vor.u32 %v2771_v2, %v2770_v50  ;;  %v3080_v50 = vrot.slane %v6500_v59, 3  ;;  %v6511_v59 = vld [vmem:[#allocation6_spill] sm:$0xff] }
 0x274   : > { %v1521_v22 = vpop.f32.mrf.mxu1  ;;  %v2236_v44 = vpop.f32.mrf.mxu0 }
 0x275   : > { %v1522_v62 = vadd.f32 %v1521_v22, %v6501_v28  ;;  %v5729_v29 = vadd.f32 %v2236_v44, %v1982_v13  ;;  %4079 = vmatmul.msk.bf16.gmra.mxu2 %vm1214_vm2, %v2322_v40  ;;  %v6505_v22 = vld [vmem:[#allocation52_spill] sm:$0xff]  ;;  %v2773_v28 = vsel %vm2758_vm5, %v2768_v0, %v2772_v24 }
 0x277   : > { %6502 = vst [vmem:[#allocation31_spill] sm:$0xff] %v5729_v29  ;;  %4122 = vmatmul.msk.bf16.gmra.mxu0 %vm1214_vm2, %v3079_v6  ;;  %v1805_v3 = vadd.f32 %v1744_v53, %v1522_v62  ;;  %v6507_v53 = vld [vmem:[#allocation2_spill] sm:$0xff] }
 0x278   : > { %v1747_v39 = vpop.f32.mrf.mxu2  ;;  %v2323_v62 = vrot.slane %v6507_v53, 2 }
 0x27a   : > { %v1922_v61 = vpop.f32.mrf.mxu3 }
 0x27b   : > { %v1983_v25 = vadd.f32 %v1922_v61, %v1805_v3  ;;  %v2324_v61 = vsel %vm2313_vm6, %v2321_v47, %v2323_v62 }
 0x27c   : > { %v1524_v34 = vpop.f32.mrf.mxu1  ;;  %v2238_v23 = vpop.f32.mrf.mxu0 }
 0x27d   : > { %v1525_v13 = vadd.f32 %v1524_v34, %v6505_v22  ;;  %v5737_v44 = vadd.f32 %v2238_v23, %v1983_v25  ;;  %v6508_v23 = vld [vmem:[#allocation56_spill] sm:$0xff] }
 0x27e   : > { %v6510_v22 = vld [vmem:[#allocation8_spill] sm:$0xff] }
 0x27f   : > { %6506 = vst [vmem:[#allocation41_spill] sm:$0xff] %v5737_v44  ;;  %4057 = vmatmul.msk.bf16.gmra.mxu1 %vm1214_vm2, %v2320_v15  ;;  %4101 = vmatmul.msk.bf16.gmra.mxu3 %vm1214_vm2, %v2773_v28  ;;  %v1806_v56 = vadd.f32 %v1747_v39, %v1525_v13  ;;  %v3081_v15 = vsel %vm3074_vm7, %v3078_v21, %v3080_v50  ;;  %v2774_v13 = vrot.slane %v6510_v22, 2  ;;  %v2775_v28 = vrot.slane %v6511_v59, 3 }
 0x280   : > { %v1749_v5 = vpop.f32.mrf.mxu2 }
 0x281   : > { %v2776_v29 = vor.u32 %v2775_v28, %v2774_v13  ;;  %v6515_v28 = vld [vmem:[#allocation61_spill] sm:$0xff] }
 0x282   : > { %v1925_v6 = vpop.f32.mrf.mxu3 }
 0x283   : > { %v1984_v58 = vadd.f32 %v1925_v6, %v1806_v56 }
 0x284   : > { %v1526_v2 = vpop.f32.mrf.mxu1  ;;  %v2241_v3 = vpop.f32.mrf.mxu0 }
 0x285   : > { %v1527_v25 = vadd.f32 %v1526_v2, %v6508_v23  ;;  %v5746_v34 = vadd.f32 %v2241_v3, %v1984_v58  ;;  %4080 = vmatmul.msk.bf16.gmra.mxu2 %vm1214_vm2, %v2324_v61  ;;  %v6512_v2 = vld [vmem:[#allocation59_spill] sm:$0xff]  ;;  %v2777_v23 = vsel %vm2758_vm5, %v2772_v24, %v2776_v29 }
 0x286   : > { %v6517_v24 = vld [vmem:[#allocation15_spill] sm:$0xff] }
 0x287   : > { %6509 = vst [vmem:[#allocation36_spill] sm:$0xff] %v5746_v34  ;;  %4123 = vmatmul.msk.bf16.gmra.mxu0 %vm1214_vm2, %v3081_v15  ;;  %v1807_v0 = vadd.f32 %v1749_v5, %v1527_v25  ;;  %v6514_v25 = vld [vmem:[#allocation9_spill] sm:$0xff] }
 0x288   : > { %v1752_v39 = vpop.f32.mrf.mxu2  ;;  %v2325_v15 = vrot.slane %v6514_v25, 2 }
 0x28a   : > { %v1927_v56 = vpop.f32.mrf.mxu3  ;;  %v2326_v13 = vsel %vm2313_vm6, %v2323_v62, %v2325_v15 }
 0x28b   : > { %v1985_v6 = vadd.f32 %v1927_v56, %v1807_v0 }
 0x28c   : > { %v1529_v44 = vpop.f32.mrf.mxu1  ;;  %v2243_v47 = vpop.f32.mrf.mxu0 }
 0x28d   : > { %v1530_v58 = vadd.f32 %v1529_v44, %v6512_v2  ;;  %v5754_v3 = vadd.f32 %v2243_v47, %v1985_v6  ;;  %v3082_v44 = vrot.slane %v6507_v53, 3  ;;  %v6518_v2 = vld [vmem:[#allocation10_spill] sm:$0xff] }
 0x28f   : > { %6513 = vst [vmem:[#allocation33_spill] sm:$0xff] %v5754_v3  ;;  %4058 = vmatmul.msk.bf16.gmra.mxu1 %vm1214_vm2, %v2322_v40  ;;  %4102 = vmatmul.msk.bf16.gmra.mxu3 %vm1214_vm2, %v2777_v23  ;;  %v1808_v21 = vadd.f32 %v1752_v39, %v1530_v58  ;;  %v3083_v40 = vsel %vm3074_vm7, %v3080_v50, %v3082_v44  ;;  %v2778_v39 = vrot.slane %v6517_v24, 2  ;;  %v2779_v58 = vrot.slane %v6518_v2, 3 }
 0x290   : > { %v1754_v5 = vpop.f32.mrf.mxu2 }
 0x291   : > { %v2780_v62 = vor.u32 %v2779_v58, %v2778_v39  ;;  %v3084_v39 = vrot.slane %v6514_v25, 3 }
 0x292   : > { %v1930_v22 = vpop.f32.mrf.mxu3 }
 0x293   : > { %v1986_v59 = vadd.f32 %v1930_v22, %v1808_v21 }
 0x294   : > { %v1531_v0 = vpop.f32.mrf.mxu1  ;;  %v2246_v56 = vpop.f32.mrf.mxu0 }
 0x295   : > { %v1532_v6 = vadd.f32 %v1531_v0, %v6515_v28  ;;  %v5763_v47 = vadd.f32 %v2246_v56, %v1986_v59  ;;  %4081 = vmatmul.msk.bf16.gmra.mxu2 %vm1214_vm2, %v2326_v13  ;;  %v6519_v0 = vld [vmem:[#allocation63_spill] sm:$0xff]  ;;  %v2781_v28 = vsel %vm2758_vm5, %v2776_v29, %v2780_v62  ;;  %v3085_v29 = vsel %vm3074_vm7, %v3082_v44, %v3084_v39 }
 0x297   : > { %6516 = vst [vmem:[#allocation42_spill] sm:$0xff] %v5763_v47  ;;  %4124 = vmatmul.msk.bf16.gmra.mxu0 %vm1214_vm2, %v3083_v40  ;;  %v1809_v23 = vadd.f32 %v1754_v5, %v1532_v6  ;;  %v6521_v40 = vld [vmem:[#allocation14_spill] sm:$0xff] }
 0x298   : > { %v1757_v21 = vpop.f32.mrf.mxu2  ;;  %v2327_v5 = vrot.slane %v6521_v40, 2 }
 0x29a   : > { %v1932_v22 = vpop.f32.mrf.mxu3 }
 0x29b   : > { %v1987_v3 = vadd.f32 %v1932_v22, %v1809_v23  ;;  %v2328_v22 = vsel %vm2313_vm6, %v2325_v15, %v2327_v5 }
 0x29c   : > { %v1534_v53 = vpop.f32.mrf.mxu1  ;;  %v2248_v34 = vpop.f32.mrf.mxu0 }
 0x29d   : > { %v1535_v59 = vadd.f32 %v1534_v53, %v6519_v0  ;;  %v5771_v56 = vadd.f32 %v2248_v34, %v1987_v3  ;;  %v6522_v34 = vld [vmem:[#allocation65_spill] sm:$0xff]  ;;  %v6524_v0 = vld [vmem:[#allocation16_spill] sm:$0xff] }
 0x29f   : > { %6520 = vst [vmem:[#allocation40_spill] sm:$0xff] %v5771_v56  ;;  %4059 = vmatmul.msk.bf16.gmra.mxu1 %vm1214_vm2, %v2324_v61  ;;  %4103 = vmatmul.msk.bf16.gmra.mxu3 %vm1214_vm2, %v2781_v28  ;;  %v1810_v50 = vadd.f32 %v1757_v21, %v1535_v59  ;;  %v6523_v61 = vld [vmem:[#allocation20_spill] sm:$0xff]  ;;  %v2783_v59 = vrot.slane %v6524_v0, 3 }
 0x2a0   : > { %v1759_v24 = vpop.f32.mrf.mxu2  ;;  %v2782_v21 = vrot.slane %v6523_v61, 2 }
 0x2a2   : > { %v1935_v6 = vpop.f32.mrf.mxu3 }
 0x2a3   : > { %v1988_v2 = vadd.f32 %v1935_v6, %v1810_v50  ;;  %v2784_v6 = vor.u32 %v2783_v59, %v2782_v21 }
 0x2a4   : > { %v1536_v58 = vpop.f32.mrf.mxu1  ;;  %v2251_v23 = vpop.f32.mrf.mxu0 }
 0x2a5   : > { %v1537_v3 = vadd.f32 %v1536_v58, %v6522_v34  ;;  %v5780_v53 = vadd.f32 %v2251_v23, %v1988_v2  ;;  %4082 = vmatmul.msk.bf16.gmra.mxu2 %vm1214_vm2, %v2328_v22  ;;  %v6525_v58 = vld [vmem:[#allocation57_spill] sm:$0xff]  ;;  %v2785_v34 = vsel %vm2758_vm5, %v2780_v62, %v2784_v6 }
 0x2a6   : > { %v6528_v62 = vld [vmem:[#allocation29_spill] sm:$0xff] }
 0x2a7   : > { %4125 = vmatmul.msk.bf16.gmra.mxu0 %vm1214_vm2, %v3085_v29  ;;  %v1811_v25 = vadd.f32 %v1759_v24, %v1537_v3  ;;  %v2329_v24 = vrot.slane %v4898_v48, 2  ;;  %v3086_v29 = vrot.slane %v6521_v40, 3 }
 0x2a8   : > { %v1762_v28 = vpop.f32.mrf.mxu2 }
 0x2aa   : > { %v1937_v50 = vpop.f32.mrf.mxu3 }
 0x2ab   : > { %v1989_v56 = vadd.f32 %v1937_v50, %v1811_v25  ;;  %v2330_v25 = vsel %vm2313_vm6, %v2327_v5, %v2329_v24 }
 0x2ac   : > { %v1539_v15 = vpop.f32.mrf.mxu1  ;;  %v2253_v47 = vpop.f32.mrf.mxu0 }
 0x2ad   : > { %v1540_v2 = vadd.f32 %v1539_v15, %v6525_v58  ;;  %v5788_v23 = vadd.f32 %v2253_v47, %v1989_v56  ;;  %v6527_v47 = vld [vmem:[#allocation60_spill] sm:$0xff]  ;;  %v6529_v15 = vld [vmem:[#allocation21_spill] sm:$0xff] }
 0x2ae   : > { %v2787_v58 = vrot.slane %v6529_v15, 3 }
 0x2af   : > { %6526 = vst [vmem:[#allocation35_spill] sm:$0xff] %v5788_v23  ;;  %4060 = vmatmul.msk.bf16.gmra.mxu1 %vm1214_vm2, %v2326_v13  ;;  %4104 = vmatmul.msk.bf16.gmra.mxu3 %vm1214_vm2, %v2785_v34  ;;  %v1812_v44 = vadd.f32 %v1762_v28, %v1540_v2  ;;  %v3087_v13 = vsel %vm3074_vm7, %v3084_v39, %v3086_v29  ;;  %v2786_v28 = vrot.slane %v6528_v62, 2 }
 0x2b0   : > { %v1764_v61 = vpop.f32.mrf.mxu2 }
 0x2b2   : > { %v1940_v3 = vpop.f32.mrf.mxu3 }
 0x2b3   : > { %v1990_v21 = vadd.f32 %v1940_v3, %v1812_v44  ;;  %v2788_v44 = vor.u32 %v2787_v58, %v2786_v28 }
 0x2b4   : > { %v1541_v0 = vpop.f32.mrf.mxu1  ;;  %v2256_v59 = vpop.f32.mrf.mxu0 }
 0x2b5   : > { %v1542_v56 = vadd.f32 %v1541_v0, %v6527_v47  ;;  %v5797_v50 = vadd.f32 %v2256_v59, %v1990_v21  ;;  %4083 = vmatmul.msk.bf16.gmra.mxu2 %vm1214_vm2, %v2330_v25  ;;  %v6530_v0 = vld [vmem:[#allocation62_spill] sm:$0xff]  ;;  %v2789_v47 = vsel %vm2758_vm5, %v2784_v6, %v2788_v44 }
 0x2b6   : > { %v6533_v6 = vld [vmem:[#allocation34_spill] sm:$0xff] }
 0x2b7   : > { %4126 = vmatmul.msk.bf16.gmra.mxu0 %vm1214_vm2, %v3087_v13  ;;  %v1813_v40 = vadd.f32 %v1764_v61, %v1542_v56  ;;  %v2331_v61 = vrot.slane %v5054_v51, 2  ;;  %v3088_v13 = vrot.slane %v4898_v48, 3 }
 0x2b8   : > { %v1767_v2 = vpop.f32.mrf.mxu2 }
 0x2ba   : > { %v1942_v34 = vpop.f32.mrf.mxu3 }
 0x2bb   : > { %v1991_v3 = vadd.f32 %v1942_v34, %v1813_v40  ;;  %v2332_v40 = vsel %vm2313_vm6, %v2329_v24, %v2331_v61 }
 0x2bc   : > { %v1544_v5 = vpop.f32.mrf.mxu1  ;;  %v2258_v23 = vpop.f32.mrf.mxu0 }
 0x2bd   : > { %v1545_v21 = vadd.f32 %v1544_v5, %v6530_v0  ;;  %v5805_v59 = vadd.f32 %v2258_v23, %v1991_v3  ;;  %v6532_v23 = vld [vmem:[#allocation64_spill] sm:$0xff]  ;;  %v6534_v5 = vld [vmem:[#allocation30_spill] sm:$0xff] }
 0x2be   : > { %v2791_v0 = vrot.slane %v6534_v5, 3 }
 0x2bf   : > { %6531 = vst [vmem:[#allocation44_spill] sm:$0xff] %v5805_v59  ;;  %4061 = vmatmul.msk.bf16.gmra.mxu1 %vm1214_vm2, %v2328_v22  ;;  %4105 = vmatmul.msk.bf16.gmra.mxu3 %vm1214_vm2, %v2789_v47  ;;  %v1814_v39 = vadd.f32 %v1767_v2, %v1545_v21  ;;  %v3089_v22 = vsel %vm3074_vm7, %v3086_v29, %v3088_v13  ;;  %v2790_v2 = vrot.slane %v6533_v6, 2 }
 0x2c0   : > { %v1769_v62 = vpop.f32.mrf.mxu2 }
 0x2c2   : > { %v1945_v56 = vpop.f32.mrf.mxu3 }
 0x2c3   : > { %v1992_v28 = vadd.f32 %v1945_v56, %v1814_v39  ;;  %v2792_v39 = vor.u32 %v2791_v0, %v2790_v2 }
 0x2c4   : > { %v1546_v15 = vpop.f32.mrf.mxu1  ;;  %v2261_v58 = vpop.f32.mrf.mxu0 }
 0x2c5   : > { %v1547_v34 = vadd.f32 %v1546_v15, %v6532_v23  ;;  %v5814_v3 = vadd.f32 %v2261_v58, %v1992_v28  ;;  %4084 = vmatmul.msk.bf16.gmra.mxu2 %vm1214_vm2, %v2332_v40  ;;  %v6535_v15 = vld [vmem:[#allocation66_spill] sm:$0xff]  ;;  %v2793_v23 = vsel %vm2758_vm5, %v2788_v44, %v2792_v39  ;;  %v2794_v44 = vrot.slane %v5232_v52, 2 }
 0x2c7   : > { %4127 = vmatmul.msk.bf16.gmra.mxu0 %vm1214_vm2, %v3089_v22  ;;  %v1815_v48 = vadd.f32 %v1769_v62, %v1547_v34  ;;  %v2333_v62 = vrot.slane %v5144_v20, 2  ;;  %v3090_v22 = vrot.slane %v5054_v51, 3 }
 0x2c8   : > { %v1772_v21 = vpop.f32.mrf.mxu2 }
 0x2ca   : > { %v1947_v47 = vpop.f32.mrf.mxu3 }
 0x2cb   : > { %v1993_v56 = vadd.f32 %v1947_v47, %v1815_v48  ;;  %v2334_v48 = vsel %vm2313_vm6, %v2331_v61, %v2333_v62 }
 0x2cc   : > { %v1549_v24 = vpop.f32.mrf.mxu1  ;;  %v2263_v59 = vpop.f32.mrf.mxu0 }
 0x2cd   : > { %v1550_v28 = vadd.f32 %v1549_v24, %v6535_v15  ;;  %v5822_v58 = vadd.f32 %v2263_v59, %v1993_v56 }
 0x2cf   : > { %4062 = vmatmul.msk.bf16.gmra.mxu1 %vm1214_vm2, %v2330_v25  ;;  %4106 = vmatmul.msk.bf16.gmra.mxu3 %vm1214_vm2, %v2793_v23  ;;  %v1816_v29 = vadd.f32 %v1772_v21, %v1550_v28  ;;  %v3091_v25 = vsel %vm3074_vm7, %v3088_v13, %v3090_v22  ;;  %v2795_v21 = vrot.slane %v5159_v31, 3  ;;  %v2335_v31 = vrot.slane %v6459_v16, 2 }
 0x2d0   : > { %v1774_v6 = vpop.f32.mrf.mxu2 }
 0x2d1   : > { %v2796_v51 = vor.u32 %v2795_v21, %v2794_v44 }
 0x2d2   : > { %v1950_v34 = vpop.f32.mrf.mxu3 }
 0x2d3   : > { %v1994_v2 = vadd.f32 %v1950_v34, %v1816_v29  ;;  %v2797_v61 = vsel %vm2758_vm5, %v2792_v39, %v2796_v51  ;;  %v3092_v29 = vrot.slane %v5144_v20, 3  ;;  %v5846_v34 = vld [vmem:[%s6292_s5] ss:$0 sm:$0xff]  ;;  %v5849_v39 = vsel %vm2313_vm6, %v2333_v62, %v2335_v31 }
 0x2d4   : > { %v1551_v5 = vpop.f32.mrf.mxu1  ;;  %v2266_v0 = vpop.f32.mrf.mxu0  ;;  %v5864_v62 = vld [vmem:[%s6294_s7] ss:$0 sm:$0xff] }
 0x2d5   : > { %v5830_v59 = vadd.f32 %v2266_v0, %v1994_v2  ;;  %4085 = vmatmul.msk.bf16.gmra.mxu2 %vm1214_vm2, %v2334_v48  ;;  %v3093_v20 = vsel %vm3074_vm7, %v3090_v22, %v3092_v29 }
 0x2d7   : > { %6536 = vst [vmem:[#allocation39_spill] sm:$0xff] %v5830_v59  ;;  %4128 = vmatmul.msk.bf16.gmra.mxu0 %vm1214_vm2, %v3091_v25  ;;  %v5855_v25 = vld [vmem:[%s6293_s6] ss:$0 sm:$0xff] }
 0x2d8   : > { %v2608_v47 = vpop.f32.mrf.mxu2 }
 0x2da   : > { %v1952_v56 = vpop.f32.mrf.mxu3 }
 0x2db   : > { %v2799_v56 = vrot.slane %v4604_v30, 3 }
 0x2dc   : > { %v2268_v24 = vpop.f32.mrf.mxu0  ;;  %v2430_v15 = vpop.f32.mrf.mxu1 }
 0x2dd   : > { %v2534_v28 = vadd.f32 %v2430_v15, %v5499_v49 }
 0x2df   : > { %4063 = vmatmul.msk.bf16.gmra.mxu1 %vm1214_vm2, %v2332_v40  ;;  %4107 = vmatmul.msk.bf16.gmra.mxu3 %vm1214_vm2, %v2797_v61  ;;  %v2712_v23 = vadd.f32 %v2608_v47, %v2534_v28  ;;  %v6537_v40 = vld [vmem:[#allocation67_spill] sm:$0xff]  ;;  %v2798_v47 = vrot.slane %v6461_v45, 2 }
 0x2e0   : > { %v2610_v13 = vpop.f32.mrf.mxu2 }
 0x2e2   : > { %v2927_v52 = vpop.f32.mrf.mxu3 }
 0x2e3   : > { %v3031_v6 = vadd.f32 %v2927_v52, %v2712_v23 }
 0x2e4   : > { %v2432_v49 = vpop.f32.mrf.mxu1  ;;  %v3191_v2 = vpop.f32.mrf.mxu0 }
 0x2e5   : > { %v2535_v5 = vadd.f32 %v2432_v49, %v6537_v40  ;;  %v3295_v0 = vadd.f32 %v3191_v2, %v3031_v6  ;;  %4086 = vmatmul.msk.bf16.gmra.mxu2 %vm1214_vm2, %v5849_v39  ;;  %v2800_v6 = vor.u32 %v2799_v56, %v2798_v47  ;;  %v6538_v2 = vld [vmem:[#allocation68_spill] sm:$0xff] }
 0x2e7   : > { %v3340_v44 = vadd.f32 %v5846_v34, %v3295_v0  ;;  %4129 = vmatmul.msk.bf16.gmra.mxu0 %vm1214_vm2, %v3093_v20  ;;  %v2713_v15 = vadd.f32 %v2610_v13, %v2535_v5  ;;  %v3556_v20 = vpop.permute.xlu1 %3555  ;;  %v2801_v45 = vsel %vm2758_vm5, %v2796_v51, %v2800_v6  ;;  %v2337_v5 = vrot.slane %v6463_v8, 2 }
 0x2e8   : > { %v2613_v21 = vpop.f32.mrf.mxu2 }
 0x2e9   : > { %v3385_v24 = vmul.f32 %v5855_v25, %v3340_v44 }
 0x2ea   : > { %v2929_v28 = vpop.f32.mrf.mxu3 }
 0x2eb   : > { %v3430_v22 = vadd.f32 %v5864_v62, %v3385_v24  ;;  %v3032_v61 = vadd.f32 %v2929_v28, %v2713_v15 }
 0x2ec   : > { %v2435_v23 = vpop.f32.mrf.mxu1  ;;  %v3193_v52 = vpop.f32.mrf.mxu0 }
 0x2ed   : > { %v3471_v49 = vmax.f32 %v3430_v22, 0.0  ;;  %v2536_v40 = vadd.f32 %v2435_v23, %v6538_v2  ;;  %v3296_v0 = vadd.f32 %v3193_v52, %v3032_v61  ;;  %v5888_v22 = vsel %vm2313_vm6, %v2335_v31, %v2337_v5  ;;  %v6539_v52 = vld [vmem:[#allocation4_spill] sm:$0xff] }
 0x2ee   : > { %v3094_v61 = vrot.slane %v6459_v16, 3 }
 0x2ef   : > { %v3758_v59 = vmul.f32 %v3556_v20, %v3471_v49  ;;  %v3341_v30 = vadd.f32 %v5846_v34, %v3296_v0  ;;  %4064 = vmatmul.msk.bf16.gmra.mxu1 %vm1214_vm2, %v2334_v48  ;;  %4108 = vmatmul.msk.bf16.gmra.mxu3 %vm1214_vm2, %v2801_v45  ;;  %v2714_v47 = vadd.f32 %v2613_v21, %v2536_v40  ;;  %v3561_v21 = vpop.permute.xlu2 %3560  ;;  %v2802_v40 = vrot.slane %v6465_v26, 2  ;;  %v6540_v0 = vld [vmem:[#allocation5_spill] sm:$0xff] }
 0x2f0   : > { %v2615_v13 = vpop.f32.mrf.mxu2  ;;  %v3095_v2 = vsel %vm3074_vm7, %v3092_v29, %v3094_v61  ;;  %v2803_v20 = vrot.slane %v6540_v0, 3 }
 0x2f1   : > { %v3799_v44 = vpack.c.bf16 %v3758_v59, %v3758_v59  ;;  %v3386_v51 = vmul.f32 %v5855_v25, %v3341_v30 }
 0x2f2   : > { %v2932_v56 = vpop.f32.mrf.mxu3 }
 0x2f3   : > { %3841 = vst.msk [vmem:[%s5880_s10] sm:$0xf] %vm3840_vm8, %v3799_v44  ;;  %v3431_v48 = vadd.f32 %v5864_v62, %v3386_v51  ;;  %v3033_v24 = vadd.f32 %v2932_v56, %v2714_v47  ;;  %v2804_v56 = vor.u32 %v2803_v20, %v2802_v40  ;;  %v2339_v40 = vrot.slane %v6468_v14, 2 }
 0x2f4   : > { %v2437_v15 = vpop.f32.mrf.mxu1  ;;  %v3196_v28 = vpop.f32.mrf.mxu0 }
 0x2f5   : > { %v3472_v23 = vmax.f32 %v3431_v48, 0.0  ;;  %v2537_v49 = vadd.f32 %v2437_v15, %v6539_v52  ;;  %v3297_v59 = vadd.f32 %v3196_v28, %v3033_v24  ;;  %4087 = vmatmul.msk.bf16.gmra.mxu2 %vm1214_vm2, %v5888_v22  ;;  %v6541_v28 = vld [vmem:[#allocation7_spill] sm:$0xff] }
 0x2f7   : > { %v3759_v45 = vmul.f32 %v3561_v21, %v3472_v23  ;;  %v3342_v31 = vadd.f32 %v5846_v34, %v3297_v59  ;;  %4130 = vmatmul.msk.bf16.gmra.mxu0 %vm1214_vm2, %v3095_v2  ;;  %v2715_v51 = vadd.f32 %v2615_v13, %v2537_v49  ;;  %v3566_v59 = vpop.permute.xlu0 %3565  ;;  %v2805_v21 = vsel %vm2758_vm5, %v2800_v6, %v2804_v56 }
 0x2f8   : > { %v2618_v16 = vpop.f32.mrf.mxu2 }
 0x2f9   : > { %v3800_v30 = vpack.c.bf16 %v3759_v45, %v3759_v45  ;;  %v3387_v44 = vmul.f32 %v5855_v25, %v3342_v31 }
 0x2fa   : > { %v2934_v47 = vpop.f32.mrf.mxu3 }
 0x2fb   : > { %3842 = vst.msk [vmem:[%s5880_s10 + $0x4] sm:$0xf] %vm3840_vm8, %v3800_v30  ;;  %v3432_v29 = vadd.f32 %v5864_v62, %v3387_v44  ;;  %v3034_v48 = vadd.f32 %v2934_v47, %v2715_v51  ;;  %v3096_v30 = vrot.slane %v6463_v8, 3 }
 0x2fc   : > { %v2440_v26 = vpop.f32.mrf.mxu1  ;;  %v3198_v24 = vpop.f32.mrf.mxu0 }
 0x2fd   : > { %v3473_v15 = vmax.f32 %v3432_v29, 0.0  ;;  %v2538_v23 = vadd.f32 %v2440_v26, %v6541_v28  ;;  %v3298_v52 = vadd.f32 %v3198_v24, %v3034_v48  ;;  %v6542_v48 = vld [vmem:[#allocation3_spill] sm:$0xff]  ;;  %v3097_v8 = vsel %vm3074_vm7, %v3094_v61, %v3096_v30  ;;  %v6543_v28 = vld [vmem:[#allocation13_spill] sm:$0xff] }
 0x2ff   : > { %v3760_v2 = vmul.f32 %v3566_v59, %v3473_v15  ;;  %v3343_v13 = vadd.f32 %v5846_v34, %v3298_v52  ;;  %4065 = vmatmul.msk.bf16.gmra.mxu1 %vm1214_vm2, %v5849_v39  ;;  %4109 = vmatmul.msk.bf16.gmra.mxu3 %vm1214_vm2, %v2805_v21  ;;  %v2716_v45 = vadd.f32 %v2618_v16, %v2538_v23  ;;  %v3571_v16 = vpop.permute.xlu1 %3570  ;;  %v2806_v15 = vrot.slane %v6470_v36, 2 }
 0x300   : > { %v2620_v49 = vpop.f32.mrf.mxu2  ;;  %v5916_v39 = vsel %vm2313_vm6, %v2337_v5, %v2339_v40  ;;  %v2807_v23 = vrot.slane %v6543_v28, 3 }
 0x301   : > { %v3801_v0 = vpack.c.bf16 %v3760_v2, %v3760_v2  ;;  %v3388_v20 = vmul.f32 %v5855_v25, %v3343_v13 }
 0x302   : > { %v2937_v31 = vpop.f32.mrf.mxu3 }
 0x303   : > { %3843 = vst.msk [vmem:[%s5880_s10 + $0x8] sm:$0xf] %vm3840_vm8, %v3801_v0  ;;  %v3433_v6 = vadd.f32 %v5864_v62, %v3388_v20  ;;  %v3035_v44 = vadd.f32 %v2937_v31, %v2716_v45  ;;  %v2808_v20 = vor.u32 %v2807_v23, %v2806_v15 }
 0x304   : > { %v2442_v51 = vpop.f32.mrf.mxu1  ;;  %v3201_v47 = vpop.f32.mrf.mxu0 }
 0x305   : > { %v3474_v29 = vmax.f32 %v3433_v6, 0.0  ;;  %v2539_v26 = vadd.f32 %v2442_v51, %v6542_v48  ;;  %v3299_v24 = vadd.f32 %v3201_v47, %v3035_v44  ;;  %4088 = vmatmul.msk.bf16.gmra.mxu2 %vm1214_vm2, %v5916_v39  ;;  %v6544_v44 = vld [vmem:[#allocation12_spill] sm:$0xff]  ;;  %v2809_v48 = vsel %vm2758_vm5, %v2804_v56, %v2808_v20 }
 0x307   : > { %v3761_v52 = vmul.f32 %v3571_v16, %v3474_v29  ;;  %v3344_v59 = vadd.f32 %v5846_v34, %v3299_v24  ;;  %4131 = vmatmul.msk.bf16.gmra.mxu0 %vm1214_vm2, %v3097_v8  ;;  %v2717_v13 = vadd.f32 %v2620_v49, %v2539_v26  ;;  %v3576_v29 = vpop.permute.xlu2 %3575  ;;  %v2341_v16 = vrot.slane %v6473_v55, 2 }
 0x308   : > { %v2623_v5 = vpop.f32.mrf.mxu2 }
 0x309   : > { %v3802_v21 = vpack.c.bf16 %v3761_v52, %v3761_v52  ;;  %v3389_v2 = vmul.f32 %v5855_v25, %v3344_v59  ;;  %v3098_v52 = vrot.slane %v6468_v14, 3 }
 0x30a   : > { %v2939_v0 = vpop.f32.mrf.mxu3 }
 0x30b   : > { %3844 = vst.msk [vmem:[%s5880_s10 + $0xc] sm:$0xf] %vm3840_vm8, %v3802_v21  ;;  %v3434_v61 = vadd.f32 %v5864_v62, %v3389_v2  ;;  %v3036_v45 = vadd.f32 %v2939_v0, %v2717_v13  ;;  %v6545_v0 = vld [vmem:[#allocation11_spill] sm:$0xff]  ;;  %v3099_v14 = vsel %vm3074_vm7, %v3096_v30, %v3098_v52 }
 0x30c   : > { %v2445_v36 = vpop.f32.mrf.mxu1  ;;  %v3203_v31 = vpop.f32.mrf.mxu0 }
 0x30d   : > { %v3475_v6 = vmax.f32 %v3434_v61, 0.0  ;;  %v2540_v51 = vadd.f32 %v2445_v36, %v6544_v44  ;;  %v3300_v47 = vadd.f32 %v3203_v31, %v3036_v45  ;;  %v2810_v36 = vrot.slane %v6475_v35, 2  ;;  %v6546_v31 = vld [vmem:[#allocation19_spill] sm:$0xff] }
 0x30f   : > { %v3762_v24 = vmul.f32 %v3576_v29, %v3475_v6  ;;  %v3345_v49 = vadd.f32 %v5846_v34, %v3300_v47  ;;  %4066 = vmatmul.msk.bf16.gmra.mxu1 %vm1214_vm2, %v5888_v22  ;;  %4110 = vmatmul.msk.bf16.gmra.mxu3 %vm1214_vm2, %v2809_v48  ;;  %v2718_v28 = vadd.f32 %v2623_v5, %v2540_v51  ;;  %v3581_v5 = vpop.permute.xlu0 %3580  ;;  %v2811_v6 = vrot.slane %v6546_v31, 3 }
 0x310   : > { %v2625_v26 = vpop.f32.mrf.mxu2  ;;  %v5943_v22 = vsel %vm2313_vm6, %v2339_v40, %v2341_v16  ;;  %v3100_v31 = vrot.slane %v6473_v55, 3 }
 0x311   : > { %v3803_v8 = vpack.c.bf16 %v3762_v24, %v3762_v24  ;;  %v3390_v15 = vmul.f32 %v5855_v25, %v3345_v49  ;;  %v2812_v49 = vor.u32 %v2811_v6, %v2810_v36 }
 0x312   : > { %v2942_v23 = vpop.f32.mrf.mxu3  ;;  %v3101_v55 = vsel %vm3074_vm7, %v3098_v52, %v3100_v31 }
 0x313   : > { %3845 = vst.msk [vmem:[%s5880_s10 + $0x10] sm:$0xf] %vm3840_vm8, %v3803_v8  ;;  %v3435_v56 = vadd.f32 %v5864_v62, %v3390_v15  ;;  %v3037_v59 = vadd.f32 %v2942_v23, %v2718_v28  ;;  %v6547_v23 = vld [vmem:[#allocation18_spill] sm:$0xff] }
 0x314   : > { %v2447_v21 = vpop.f32.mrf.mxu1  ;;  %v3206_v2 = vpop.f32.mrf.mxu0 }
 0x315   : > { %v3476_v13 = vmax.f32 %v3435_v56, 0.0  ;;  %v2541_v61 = vadd.f32 %v2447_v21, %v6545_v0  ;;  %v3301_v45 = vadd.f32 %v3206_v2, %v3037_v59  ;;  %4089 = vmatmul.msk.bf16.gmra.mxu2 %vm1214_vm2, %v5943_v22  ;;  %v3586_v21 = vpop.permute.xlu1 %3585  ;;  %v2813_v2 = vsel %vm2758_vm5, %v2808_v20, %v2812_v49 }
 0x317   : > { %v3763_v44 = vmul.f32 %v3581_v5, %v3476_v13  ;;  %v3346_v51 = vadd.f32 %v5846_v34, %v3301_v45  ;;  %4132 = vmatmul.msk.bf16.gmra.mxu0 %vm1214_vm2, %v3099_v14  ;;  %v2719_v48 = vadd.f32 %v2625_v26, %v2541_v61  ;;  %v2343_v61 = vrot.slane %v6478_v46, 2 }
 0x318   : > { %v2628_v40 = vpop.f32.mrf.mxu2 }
 0x319   : > { %v3804_v47 = vpack.c.bf16 %v3763_v44, %v3763_v44  ;;  %v3391_v29 = vmul.f32 %v5855_v25, %v3346_v51 }
 0x31a   : > { %v2944_v24 = vpop.f32.mrf.mxu3 }
 0x31b   : > { %3846 = vst.msk [vmem:[%s5880_s10 + $0x14] sm:$0xf] %vm3840_vm8, %v3804_v47  ;;  %v3436_v30 = vadd.f32 %v5864_v62, %v3391_v29  ;;  %v3038_v8 = vadd.f32 %v2944_v24, %v2719_v48  ;;  %v6548_v29 = vld [vmem:[#allocation17_spill] sm:$0xff] }
 0x31c   : > { %v2450_v35 = vpop.f32.mrf.mxu1  ;;  %v3208_v15 = vpop.f32.mrf.mxu0 }
 0x31d   : > { %v3477_v28 = vmax.f32 %v3436_v30, 0.0  ;;  %v2542_v56 = vadd.f32 %v2450_v35, %v6547_v23  ;;  %v3302_v59 = vadd.f32 %v3208_v15, %v3038_v8  ;;  %v2814_v30 = vrot.slane %v6480_v38, 2 }
 0x31e   : > { %v2815_v8 = vrot.slane %v6481_v63, 3 }
 0x31f   : > { %v3764_v13 = vmul.f32 %v3586_v21, %v3477_v28  ;;  %v3347_v26 = vadd.f32 %v5846_v34, %v3302_v59  ;;  %4067 = vmatmul.msk.bf16.gmra.mxu1 %vm1214_vm2, %v5916_v39  ;;  %4111 = vmatmul.msk.bf16.gmra.mxu3 %vm1214_vm2, %v2813_v2  ;;  %v2720_v14 = vadd.f32 %v2628_v40, %v2542_v56  ;;  %v3591_v40 = vpop.permute.xlu2 %3590 }
 0x320   : > { %v2630_v0 = vpop.f32.mrf.mxu2  ;;  %v5970_v39 = vsel %vm2313_vm6, %v2341_v16, %v2343_v61  ;;  %v2816_v21 = vor.u32 %v2815_v8, %v2814_v30 }
 0x321   : > { %v3805_v45 = vpack.c.bf16 %v3764_v13, %v3764_v13  ;;  %v3392_v5 = vmul.f32 %v5855_v25, %v3347_v26  ;;  %v6549_v26 = vld [vmem:[#allocation23_spill] sm:$0xff] }
 0x322   : > { %v2947_v36 = vpop.f32.mrf.mxu3 }
 0x323   : > { %3847 = vst.msk [vmem:[%s5880_s10 + $0x18] sm:$0xf] %vm3840_vm8, %v3805_v45  ;;  %v3437_v20 = vadd.f32 %v5864_v62, %v3392_v5  ;;  %v3039_v6 = vadd.f32 %v2947_v36, %v2720_v14  ;;  %v3596_v14 = vpop.permute.xlu0 %3595  ;;  %v2817_v36 = vsel %vm2758_vm5, %v2812_v49, %v2816_v21 }
 0x324   : > { %v2452_v44 = vpop.f32.mrf.mxu1  ;;  %v3211_v51 = vpop.f32.mrf.mxu0 }
 0x325   : > { %v3478_v47 = vmax.f32 %v3437_v20, 0.0  ;;  %v2543_v48 = vadd.f32 %v2452_v44, %v6548_v29  ;;  %v3303_v24 = vadd.f32 %v3211_v51, %v3039_v6  ;;  %4090 = vmatmul.msk.bf16.gmra.mxu2 %vm1214_vm2, %v5970_v39  ;;  %v2345_v44 = vrot.slane %v5095_v60, 2 }
 0x327   : > { %v3765_v35 = vmul.f32 %v3591_v40, %v3478_v47  ;;  %v3348_v15 = vadd.f32 %v5846_v34, %v3303_v24  ;;  %4133 = vmatmul.msk.bf16.gmra.mxu0 %vm1214_vm2, %v3101_v55  ;;  %v2721_v56 = vadd.f32 %v2630_v0, %v2543_v48  ;;  %v3102_v24 = vrot.slane %v6478_v46, 3 }
 0x328   : > { %v2633_v16 = vpop.f32.mrf.mxu2 }
 0x329   : > { %v3806_v28 = vpack.c.bf16 %v3765_v35, %v3765_v35  ;;  %v3393_v23 = vmul.f32 %v5855_v25, %v3348_v15  ;;  %v6550_v35 = vld [vmem:[#allocation22_spill] sm:$0xff]  ;;  %v3103_v46 = vsel %vm3074_vm7, %v3100_v31, %v3102_v24 }
 0x32a   : > { %v2949_v59 = vpop.f32.mrf.mxu3 }
 0x32b   : > { %3848 = vst.msk [vmem:[%s5880_s10 + $0x1c] sm:$0xf] %vm3840_vm8, %v3806_v28  ;;  %v3438_v52 = vadd.f32 %v5864_v62, %v3393_v23  ;;  %v3040_v2 = vadd.f32 %v2949_v59, %v2721_v56  ;;  %v2818_v23 = vrot.slane %v5189_v43, 2  ;;  %v2819_v56 = vrot.slane %v5111_v11, 3 }
 0x32c   : > { %v2455_v38 = vpop.f32.mrf.mxu1  ;;  %v3213_v13 = vpop.f32.mrf.mxu0 }
 0x32d   : > { %v3479_v63 = vmax.f32 %v3438_v52, 0.0  ;;  %v2544_v45 = vadd.f32 %v2455_v38, %v6549_v26  ;;  %v3304_v5 = vadd.f32 %v3213_v13, %v3040_v2  ;;  %v2820_v26 = vor.u32 %v2819_v56, %v2818_v23  ;;  %v3611_v23 = vpop.permute.xlu0 %3610 }
 0x32f   : > { %v3766_v20 = vmul.f32 %v3596_v14, %v3479_v63  ;;  %v3349_v0 = vadd.f32 %v5846_v34, %v3304_v5  ;;  %4068 = vmatmul.msk.bf16.gmra.mxu1 %vm1214_vm2, %v5943_v22  ;;  %4112 = vmatmul.msk.bf16.gmra.mxu3 %vm1214_vm2, %v2817_v36  ;;  %v2722_v29 = vadd.f32 %v2633_v16, %v2544_v45  ;;  %v3601_v16 = vpop.permute.xlu1 %3600 }
 0x330   : > { %v2635_v6 = vpop.f32.mrf.mxu2  ;;  %v5997_v22 = vsel %vm2313_vm6, %v2343_v61, %v2345_v44 }
 0x331   : > { %v3807_v51 = vpack.c.bf16 %v3766_v20, %v3766_v20  ;;  %v3394_v47 = vmul.f32 %v5855_v25, %v3349_v0  ;;  %v3606_v20 = vpop.permute.xlu2 %3605  ;;  %v2821_v0 = vsel %vm2758_vm5, %v2816_v21, %v2820_v26 }
 0x332   : > { %v2952_v48 = vpop.f32.mrf.mxu3 }
 0x333   : > { %3849 = vst.msk [vmem:[%s5880_s10 + $0x20] sm:$0xf] %vm3840_vm8, %v3807_v51  ;;  %v3439_v49 = vadd.f32 %v5864_v62, %v3394_v47  ;;  %v3041_v40 = vadd.f32 %v2952_v48, %v2722_v29 }
 0x334   : > { %v2457_v55 = vpop.f32.mrf.mxu1  ;;  %v3216_v30 = vpop.f32.mrf.mxu0 }
 0x335   : > { %v3480_v8 = vmax.f32 %v3439_v49, 0.0  ;;  %v2545_v15 = vadd.f32 %v2457_v55, %v6550_v35  ;;  %v3305_v28 = vadd.f32 %v3216_v30, %v3041_v40  ;;  %4091 = vmatmul.msk.bf16.gmra.mxu2 %vm1214_vm2, %v5997_v22  ;;  %v3104_v55 = vrot.slane %v5095_v60, 3 }
 0x337   : > { %v3767_v59 = vmul.f32 %v3601_v16, %v3480_v8  ;;  %v3350_v52 = vadd.f32 %v5846_v34, %v3305_v28  ;;  %4134 = vmatmul.msk.bf16.gmra.mxu0 %vm1214_vm2, %v3103_v46  ;;  %v2723_v13 = vadd.f32 %v2635_v6, %v2545_v15  ;;  %v6551_v28 = vld [vmem:[#allocation32_spill] sm:$0xff]  ;;  %v3105_v60 = vsel %vm3074_vm7, %v3102_v24, %v3104_v55 }
 0x338   : > { %v2638_v61 = vpop.f32.mrf.mxu2 }
 0x339   : > { %v3808_v2 = vpack.c.bf16 %v3767_v59, %v3767_v59  ;;  %v3395_v38 = vmul.f32 %v5855_v25, %v3350_v52 }
 0x33a   : > { %v2954_v63 = vpop.f32.mrf.mxu3 }
 0x33b   : > { %3850 = vst.msk [vmem:[%s5880_s10 + $0x24] sm:$0xf] %vm3840_vm8, %v3808_v2  ;;  %v3440_v31 = vadd.f32 %v5864_v62, %v3395_v38  ;;  %v3042_v45 = vadd.f32 %v2954_v63, %v2723_v13 }
 0x33c   : > { %v2460_v43 = vpop.f32.mrf.mxu1  ;;  %v3218_v5 = vpop.f32.mrf.mxu0 }
 0x33d   : > { %v3481_v11 = vmax.f32 %v3440_v31, 0.0  ;;  %v2546_v14 = vadd.f32 %v2460_v43, %v5595_v1  ;;  %v3306_v36 = vadd.f32 %v3218_v5, %v3042_v45  ;;  %v2347_v1 = vrot.slane %v6484_v27, 2 }
 0x33f   : > { %v3768_v51 = vmul.f32 %v3606_v20, %v3481_v11  ;;  %v3351_v6 = vadd.f32 %v5846_v34, %v3306_v36  ;;  %4069 = vmatmul.msk.bf16.gmra.mxu1 %vm1214_vm2, %v5970_v39  ;;  %4113 = vmatmul.msk.bf16.gmra.mxu3 %vm1214_vm2, %v2821_v0  ;;  %v2724_v49 = vadd.f32 %v2638_v61, %v2546_v14  ;;  %v2823_v61 = vrot.slane %v5018_v32, 3  ;;  %v6552_v14 = vld [vmem:[#allocation24_spill] sm:$0xff]  ;;  %v3616_v20 = vpop.permute.xlu1 %3615 }
 0x340   : > { %v2640_v47 = vpop.f32.mrf.mxu2  ;;  %v6024_v39 = vsel %vm2313_vm6, %v2345_v44, %v2347_v1  ;;  %v2822_v44 = vrot.slane %v6486_v19, 2 }
 0x341   : > { %v3809_v29 = vpack.c.bf16 %v3768_v51, %v3768_v51  ;;  %v3396_v48 = vmul.f32 %v5855_v25, %v3351_v6 }
 0x342   : > { %v2957_v40 = vpop.f32.mrf.mxu3  ;;  %v2824_v5 = vor.u32 %v2823_v61, %v2822_v44 }
 0x343   : > { %3851 = vst.msk [vmem:[%s5880_s10 + $0x28] sm:$0xf] %vm3840_vm8, %v3809_v29  ;;  %v3441_v21 = vadd.f32 %v5864_v62, %v3396_v48  ;;  %v3043_v30 = vadd.f32 %v2957_v40, %v2724_v49 }
 0x344   : > { %v2462_v8 = vpop.f32.mrf.mxu1  ;;  %v3221_v35 = vpop.f32.mrf.mxu0  ;;  %v2825_v32 = vsel %vm2758_vm5, %v2820_v26, %v2824_v5 }
 0x345   : > { %v3482_v15 = vmax.f32 %v3441_v21, 0.0  ;;  %v2547_v16 = vadd.f32 %v2462_v8, %v6551_v28  ;;  %v3307_v46 = vadd.f32 %v3221_v35, %v3043_v30  ;;  %4092 = vmatmul.msk.bf16.gmra.mxu2 %vm1214_vm2, %v6024_v39  ;;  %v6553_v28 = vld [vmem:[#allocation26_spill] sm:$0xff] }
 0x347   : > { %v3769_v56 = vmul.f32 %v3611_v23, %v3482_v15  ;;  %v3352_v59 = vadd.f32 %v5846_v34, %v3307_v46  ;;  %4135 = vmatmul.msk.bf16.gmra.mxu0 %vm1214_vm2, %v3105_v60  ;;  %v2725_v13 = vadd.f32 %v2640_v47, %v2547_v16  ;;  %v2349_v47 = vrot.slane %v6487_v41, 2  ;;  %v3621_v23 = vpop.permute.xlu2 %3620 }
 0x348   : > { %v2643_v52 = vpop.f32.mrf.mxu2 }
 0x349   : > { %v3810_v2 = vpack.c.bf16 %v3769_v56, %v3769_v56  ;;  %v3397_v38 = vmul.f32 %v5855_v25, %v3352_v59  ;;  %v6050_v35 = vsel %vm2313_vm6, %v2347_v1, %v2349_v47  ;;  %v2826_v56 = vrot.slane %v5152_v54, 2 }
 0x34a   : > { %v2959_v63 = vpop.f32.mrf.mxu3  ;;  %v2827_v59 = vrot.slane %v6489_v12, 3 }
 0x34b   : > { %3852 = vst.msk [vmem:[%s5880_s10 + $0x2c] sm:$0xf] %vm3840_vm8, %v3810_v2  ;;  %v3442_v31 = vadd.f32 %v5864_v62, %v3397_v38  ;;  %v3044_v24 = vadd.f32 %v2959_v63, %v2725_v13 }
 0x34c   : > { %v2465_v45 = vpop.f32.mrf.mxu1  ;;  %v3223_v43 = vpop.f32.mrf.mxu0  ;;  %v2828_v13 = vor.u32 %v2827_v59, %v2826_v56 }
 0x34d   : > { %v3483_v11 = vmax.f32 %v3442_v31, 0.0  ;;  %v2548_v36 = vadd.f32 %v2465_v45, %v6552_v14  ;;  %v3308_v19 = vadd.f32 %v3223_v43, %v3044_v24  ;;  %v3626_v43 = vpop.permute.xlu0 %3625 }
 0x34f   : > { %v3770_v0 = vmul.f32 %v3616_v20, %v3483_v11  ;;  %v3353_v51 = vadd.f32 %v5846_v34, %v3308_v19  ;;  %4070 = vmatmul.msk.bf16.gmra.mxu1 %vm1214_vm2, %v5997_v22  ;;  %4114 = vmatmul.msk.bf16.gmra.mxu3 %vm1214_vm2, %v2825_v32  ;;  %v2726_v49 = vadd.f32 %v2643_v52, %v2548_v36  ;;  %v3106_v22 = vrot.slane %v6484_v27, 3 }
 0x350   : > { %v2645_v6 = vpop.f32.mrf.mxu2  ;;  %v2829_v11 = vsel %vm2758_vm5, %v2824_v5, %v2828_v13 }
 0x351   : > { %v3811_v29 = vpack.c.bf16 %v3770_v0, %v3770_v0  ;;  %v3398_v48 = vmul.f32 %v5855_v25, %v3353_v51  ;;  %v3107_v60 = vsel %vm3074_vm7, %v3104_v55, %v3106_v22 }
 0x352   : > { %v2962_v40 = vpop.f32.mrf.mxu3 }
 0x353   : > { %3853 = vst.msk [vmem:[%s5880_s10 + $0x30] sm:$0xf] %vm3840_vm8, %v3811_v29  ;;  %v3443_v26 = vadd.f32 %v5864_v62, %v3398_v48  ;;  %v3045_v21 = vadd.f32 %v2962_v40, %v2726_v49  ;;  %v6554_v49 = vld [vmem:[#allocation47_spill] sm:$0xff] }
 0x354   : > { %v2467_v30 = vpop.f32.mrf.mxu1  ;;  %v3226_v8 = vpop.f32.mrf.mxu0 }
 0x355   : > { %v3484_v15 = vmax.f32 %v3443_v26, 0.0  ;;  %v2549_v16 = vadd.f32 %v2467_v30, %v6553_v28  ;;  %v3309_v46 = vadd.f32 %v3226_v8, %v3045_v21  ;;  %4093 = vmatmul.msk.bf16.gmra.mxu2 %vm1214_vm2, %v6050_v35  ;;  %v6555_v26 = vld [vmem:[#allocation28_spill] sm:$0xff] }
 0x357   : > { %v3771_v52 = vmul.f32 %v3621_v23, %v3484_v15  ;;  %v3354_v1 = vadd.f32 %v5846_v34, %v3309_v46  ;;  %4136 = vmatmul.msk.bf16.gmra.mxu0 %vm1214_vm2, %v3107_v60  ;;  %v2727_v2 = vadd.f32 %v2645_v6, %v2549_v16 }
 0x358   : > { %v2648_v27 = vpop.f32.mrf.mxu2 }
 0x359   : > { %v3812_v44 = vpack.c.bf16 %v3771_v52, %v3771_v52  ;;  %v3399_v61 = vmul.f32 %v5855_v25, %v3354_v1 }
 0x35a   : > { %v2964_v38 = vpop.f32.mrf.mxu3 }
 0x35b   : > { %3854 = vst.msk [vmem:[%s5880_s10 + $0x34] sm:$0xf] %vm3840_vm8, %v3812_v44  ;;  %v3444_v55 = vadd.f32 %v5864_v62, %v3399_v61  ;;  %v3046_v63 = vadd.f32 %v2964_v38, %v2727_v2  ;;  %v3636_v61 = vpop.permute.xlu2 %3635  ;;  %v6556_v2 = vld [vmem:[#allocation43_spill] sm:$0xff] }
 0x35c   : > { %v2470_v54 = vpop.f32.mrf.mxu1  ;;  %v3228_v31 = vpop.f32.mrf.mxu0  ;;  %v2833_v38 = vsel %vm2758_vm5, %v2828_v13, %v6556_v2  ;;  %v6561_v2 = vld [vmem:[#allocation49_spill] sm:$0xff] }
 0x35d   : > { %v3485_v12 = vmax.f32 %v3444_v55, 0.0  ;;  %v2550_v24 = vadd.f32 %v2470_v54, %v5627_v9  ;;  %v3310_v45 = vadd.f32 %v3228_v31, %v3046_v63  ;;  %v3108_v9 = vrot.slane %v6487_v41, 3  ;;  %v3631_v41 = vpop.permute.xlu1 %3630 }
 0x35f   : > { %v3772_v14 = vmul.f32 %v3626_v43, %v3485_v12  ;;  %v3355_v36 = vadd.f32 %v5846_v34, %v3310_v45  ;;  %4071 = vmatmul.msk.bf16.gmra.mxu1 %vm1214_vm2, %v6024_v39  ;;  %4115 = vmatmul.msk.bf16.gmra.mxu3 %vm1214_vm2, %v2829_v11  ;;  %v2728_v0 = vadd.f32 %v2648_v27, %v2550_v24 }
 0x360   : > { %v2650_v19 = vpop.f32.mrf.mxu2  ;;  %v6078_v39 = vsel %vm2313_vm6, %v2349_v47, %v6554_v49  ;;  %v3109_v8 = vsel %vm3074_vm7, %v3106_v22, %v3108_v9 }
 0x361   : > { %v3813_v20 = vpack.c.bf16 %v3772_v14, %v3772_v14  ;;  %v3400_v32 = vmul.f32 %v5855_v25, %v3355_v36 }
 0x362   : > { %v2967_v51 = vpop.f32.mrf.mxu3 }
 0x363   : > { %3855 = vst.msk [vmem:[%s5880_s10 + $0x38] sm:$0xf] %vm3840_vm8, %v3813_v20  ;;  %v3445_v5 = vadd.f32 %v5864_v62, %v3400_v32  ;;  %v3047_v6 = vadd.f32 %v2967_v51, %v2728_v0  ;;  %v3641_v20 = vpop.permute.xlu0 %3640  ;;  %v6558_v32 = vrot.slane %v5148_v18, 3 }
 0x364   : > { %v2472_v29 = vpop.f32.mrf.mxu1  ;;  %v3231_v48 = vpop.f32.mrf.mxu0 }
 0x365   : > { %v3486_v40 = vmax.f32 %v3445_v5, 0.0  ;;  %v2551_v21 = vadd.f32 %v2472_v29, %v6555_v26  ;;  %v3311_v30 = vadd.f32 %v3231_v48, %v3047_v6  ;;  %4094 = vmatmul.msk.bf16.gmra.mxu2 %vm1214_vm2, %v6078_v39  ;;  %v3111_v0 = vsel %vm3074_vm7, %v3108_v9, %v6558_v32 }
 0x367   : > { %v3773_v15 = vmul.f32 %v3631_v41, %v3486_v40  ;;  %v3356_v28 = vadd.f32 %v5846_v34, %v3311_v30  ;;  %4137 = vmatmul.msk.bf16.gmra.mxu0 %vm1214_vm2, %v3109_v8  ;;  %v2729_v23 = vadd.f32 %v2650_v19, %v2551_v21  ;;  %v6557_v19 = vld [vmem:[#allocation48_spill] sm:$0xff]  ;;  %v6559_v30 = vld [vmem:[#allocation25_spill] sm:$0xff] }
 0x368   : > { %v2653_v16 = vpop.f32.mrf.mxu2 }
 0x369   : > { %v3814_v46 = vpack.c.bf16 %v3773_v15, %v3773_v15  ;;  %v3401_v47 = vmul.f32 %v5855_v25, %v3356_v28  ;;  %v3646_v15 = vpop.permute.xlu1 %3645 }
 0x36a   : > { %v2969_v60 = vpop.f32.mrf.mxu3 }
 0x36b   : > { %3856 = vst.msk [vmem:[%s5880_s10 + $0x3c] sm:$0xf] %vm3840_vm8, %v3814_v46  ;;  %v3446_v56 = vadd.f32 %v5864_v62, %v3401_v47  ;;  %v3048_v59 = vadd.f32 %v2969_v60, %v2729_v23  ;;  %v6560_v46 = vld [vmem:[#allocation53_spill] sm:$0xff] }
 0x36c   : > { %v2475_v52 = vpop.f32.mrf.mxu1  ;;  %v3233_v1 = vpop.f32.mrf.mxu0 }
 0x36d   : > { %v3487_v22 = vmax.f32 %v3446_v56, 0.0  ;;  %v2552_v27 = vadd.f32 %v2475_v52, %v5643_v17  ;;  %v3312_v44 = vadd.f32 %v3233_v1, %v3048_v59 }
 0x36f   : > { %v3774_v55 = vmul.f32 %v3636_v61, %v3487_v22  ;;  %v3357_v63 = vadd.f32 %v5846_v34, %v3312_v44  ;;  %4072 = vmatmul.msk.bf16.gmra.mxu1 %vm1214_vm2, %v6050_v35  ;;  %4116 = vmatmul.msk.bf16.gmra.mxu3 %vm1214_vm2, %v2833_v38  ;;  %v2730_v24 = vadd.f32 %v2653_v16, %v2552_v27  ;;  %v3651_v38 = vpop.permute.xlu2 %3650 }
 0x370   : > { %v2655_v54 = vpop.f32.mrf.mxu2 }
 0x371   : > { %v3815_v31 = vpack.c.bf16 %v3774_v55, %v3774_v55  ;;  %v3402_v12 = vmul.f32 %v5855_v25, %v3357_v63 }
 0x372   : > { %v2972_v45 = vpop.f32.mrf.mxu3 }
 0x373   : > { %3857 = vst.msk [vmem:[%s5880_s10 + $0x40] sm:$0xf] %vm3840_vm8, %v3815_v31  ;;  %v3447_v17 = vadd.f32 %v5864_v62, %v3402_v12  ;;  %v3049_v43 = vadd.f32 %v2972_v45, %v2730_v24 }
 0x374   : > { %v2477_v13 = vpop.f32.mrf.mxu1  ;;  %v3236_v11 = vpop.f32.mrf.mxu0 }
 0x375   : > { %v3488_v14 = vmax.f32 %v3447_v17, 0.0  ;;  %v2553_v36 = vadd.f32 %v2477_v13, %v5650_v33  ;;  %v3313_v35 = vadd.f32 %v3236_v11, %v3049_v43  ;;  %4095 = vmatmul.msk.bf16.gmra.mxu2 %vm1214_vm2, %v6557_v19  ;;  %v3656_v19 = vpop.permute.xlu0 %3655 }
 0x377   : > { %v3775_v51 = vmul.f32 %v3641_v20, %v3488_v14  ;;  %v3358_v5 = vadd.f32 %v5846_v34, %v3313_v35  ;;  %4138 = vmatmul.msk.bf16.gmra.mxu0 %vm1214_vm2, %v3111_v0  ;;  %v2731_v49 = vadd.f32 %v2655_v54, %v2553_v36  ;;  %v6562_v54 = vld [vmem:[#allocation50_spill] sm:$0xff]  ;;  %v6563_v0 = vld [vmem:[#allocation51_spill] sm:$0xff] }
 0x378   : > { %v2658_v6 = vpop.f32.mrf.mxu2 }
 0x379   : > { %v3816_v29 = vpack.c.bf16 %v3775_v51, %v3775_v51  ;;  %v3403_v48 = vmul.f32 %v5855_v25, %v3358_v5  ;;  %v6564_v51 = vld [vmem:[#allocation58_spill] sm:$0xff] }
 0x37a   : > { %v2974_v33 = vpop.f32.mrf.mxu3 }
 0x37b   : > { %3858 = vst.msk [vmem:[%s5880_s10 + $0x44] sm:$0xf] %vm3840_vm8, %v3816_v29  ;;  %v3448_v40 = vadd.f32 %v5864_v62, %v3403_v48  ;;  %v3050_v26 = vadd.f32 %v2974_v33, %v2731_v49 }
 0x37c   : > { %v2480_v18 = vpop.f32.mrf.mxu1  ;;  %v3238_v21 = vpop.f32.mrf.mxu0 }
 0x37d   : > { %v3489_v9 = vmax.f32 %v3448_v40, 0.0  ;;  %v2554_v41 = vadd.f32 %v2480_v18, %v6559_v30  ;;  %v3314_v8 = vadd.f32 %v3238_v21, %v3050_v26  ;;  %v6565_v30 = vld [vmem:[#allocation46_spill] sm:$0xff] }
 0x37f   : > { %v3776_v28 = vmul.f32 %v3646_v15, %v3489_v9  ;;  %v3359_v16 = vadd.f32 %v5846_v34, %v3314_v8  ;;  %4073 = vmatmul.msk.bf16.gmra.mxu1 %vm1214_vm2, %v6078_v39  ;;  %4117 = vmatmul.msk.bf16.gmra.mxu3 %vm1214_vm2, %v6560_v46  ;;  %v2732_v56 = vadd.f32 %v2658_v6, %v2554_v41  ;;  %v3661_v41 = vpop.permute.xlu1 %3660 }
 0x380   : > { %v2660_v47 = vpop.f32.mrf.mxu2 }
 0x381   : > { %v3817_v23 = vpack.c.bf16 %v3776_v28, %v3776_v28  ;;  %v3404_v60 = vmul.f32 %v5855_v25, %v3359_v16  ;;  %v6566_v28 = vld [vmem:[#allocation54_spill] sm:$0xff] }
 0x382   : > { %v2977_v59 = vpop.f32.mrf.mxu3 }
 0x383   : > { %3859 = vst.msk [vmem:[%s5880_s10 + $0x48] sm:$0xf] %vm3840_vm8, %v3817_v23  ;;  %v3449_v52 = vadd.f32 %v5864_v62, %v3404_v60  ;;  %v3051_v1 = vadd.f32 %v2977_v59, %v2732_v56 }
 0x384   : > { %v2482_v22 = vpop.f32.mrf.mxu1  ;;  %v3241_v27 = vpop.f32.mrf.mxu0 }
 0x385   : > { %v3490_v44 = vmax.f32 %v3449_v52, 0.0  ;;  %v2555_v39 = vadd.f32 %v2482_v22, %v5672_v42  ;;  %v3315_v61 = vadd.f32 %v3241_v27, %v3051_v1  ;;  %4096 = vmatmul.msk.bf16.gmra.mxu2 %vm1214_vm2, %v6561_v2  ;;  %v6567_v2 = vld [vmem:[#allocation45_spill] sm:$0xff] }
 0x387   : > { %v3777_v55 = vmul.f32 %v3651_v38, %v3490_v44  ;;  %v3360_v63 = vadd.f32 %v5846_v34, %v3315_v61  ;;  %4139 = vmatmul.msk.bf16.gmra.mxu0 %vm1214_vm2, %v6562_v54  ;;  %v2733_v45 = vadd.f32 %v2660_v47, %v2555_v39  ;;  %v3666_v44 = vpop.permute.xlu2 %3665  ;;  %v6568_v38 = vrot.slane %v6567_v2, 2 }
 0x388   : > { %v2663_v31 = vpop.f32.mrf.mxu2 }
 0x389   : > { %v3818_v12 = vpack.c.bf16 %v3777_v55, %v3777_v55  ;;  %v3405_v24 = vmul.f32 %v5855_v25, %v3360_v63  ;;  %v6569_v55 = vld [vmem:[#allocation55_spill] sm:$0xff] }
 0x38a   : > { %v2979_v17 = vpop.f32.mrf.mxu3 }
 0x38b   : > { %3860 = vst.msk [vmem:[%s5880_s10 + $0x4c] sm:$0xf] %vm3840_vm8, %v3818_v12  ;;  %v3450_v42 = vadd.f32 %v5864_v62, %v3405_v24  ;;  %v3052_v43 = vadd.f32 %v2979_v17, %v2733_v45 }
 0x38c   : > { %v2485_v13 = vpop.f32.mrf.mxu1  ;;  %v3243_v11 = vpop.f32.mrf.mxu0 }
 0x38d   : > { %v3491_v14 = vmax.f32 %v3450_v42, 0.0  ;;  %v2556_v36 = vadd.f32 %v2485_v13, %v5679_v37  ;;  %v3316_v35 = vadd.f32 %v3243_v11, %v3052_v43 }
 0x38f   : > { %v3778_v20 = vmul.f32 %v3656_v19, %v3491_v14  ;;  %v3361_v32 = vadd.f32 %v5846_v34, %v3316_v35  ;;  %4074 = vmatmul.msk.bf16.gmra.mxu1 %vm1214_vm2, %v6563_v0  ;;  %4118 = vmatmul.msk.bf16.gmra.mxu3 %vm1214_vm2, %v6564_v51  ;;  %v2734_v48 = vadd.f32 %v2663_v31, %v2556_v36  ;;  %v3671_v14 = vpop.permute.xlu0 %3670  ;;  %v6570_v19 = vld [vmem:[#allocation38_spill] sm:$0xff] }
 0x390   : > { %v2665_v5 = vpop.f32.mrf.mxu2 }
 0x391   : > { %v3819_v6 = vpack.c.bf16 %v3778_v20, %v3778_v20  ;;  %v3406_v29 = vmul.f32 %v5855_v25, %v3361_v32  ;;  %v6571_v20 = vrot.slane %v6570_v19, 3 }
 0x392   : > { %v2982_v49 = vpop.f32.mrf.mxu3 }
 0x393   : > { %3861 = vst.msk [vmem:[%s5880_s10 + $0x50] sm:$0xf] %vm3840_vm8, %v3819_v6  ;;  %v3451_v37 = vadd.f32 %v5864_v62, %v3406_v29  ;;  %v3053_v33 = vadd.f32 %v2982_v49, %v2734_v48 }
 0x394   : > { %v2487_v40 = vpop.f32.mrf.mxu1  ;;  %v3246_v26 = vpop.f32.mrf.mxu0 }
 0x395   : > { %v3492_v18 = vmax.f32 %v3451_v37, 0.0  ;;  %v2557_v21 = vadd.f32 %v2487_v40, %v5685_v7  ;;  %v3317_v9 = vadd.f32 %v3246_v26, %v3053_v33  ;;  %4097 = vmatmul.msk.bf16.gmra.mxu2 %vm1214_vm2, %v6565_v30  ;;  %v3676_v40 = vpop.permute.xlu1 %3675 }
 0x397   : > { %v3779_v8 = vmul.f32 %v3661_v41, %v3492_v18  ;;  %v3362_v15 = vadd.f32 %v5846_v34, %v3317_v9  ;;  %4140 = vmatmul.msk.bf16.gmra.mxu0 %vm1214_vm2, %v6566_v28  ;;  %v2735_v23 = vadd.f32 %v2665_v5, %v2557_v21 }
 0x398   : > { %v2668_v16 = vpop.f32.mrf.mxu2 }
 0x399   : > { %v3820_v46 = vpack.c.bf16 %v3779_v8, %v3779_v8  ;;  %v3407_v47 = vmul.f32 %v5855_v25, %v3362_v15  ;;  %v6191_v8 = vld [vmem:[%s6294_s7] ss:$0 sm:$0xff] }
 0x39a   : > { %v2984_v60 = vpop.f32.mrf.mxu3 }
 0x39b   : > { %3862 = vst.msk [vmem:[%s5880_s10 + $0x54] sm:$0xf] %vm3840_vm8, %v3820_v46  ;;  %v3452_v7 = vadd.f32 %v5864_v62, %v3407_v47  ;;  %v3054_v56 = vadd.f32 %v2984_v60, %v2735_v23  ;;  %v6572_v23 = vld [vmem:[#allocation27_spill] sm:$0xff] }
 0x39c   : > { %v2490_v59 = vpop.f32.mrf.mxu1  ;;  %v3248_v52 = vpop.f32.mrf.mxu0 }
 0x39d   : > { %v3493_v1 = vmax.f32 %v3452_v7, 0.0  ;;  %v2558_v22 = vadd.f32 %v2490_v59, %v5694_v10  ;;  %v3318_v27 = vadd.f32 %v3248_v52, %v3054_v56  ;;  %v3681_v56 = vpop.permute.xlu2 %3680 }
 0x39f   : > { %v3780_v39 = vmul.f32 %v3666_v44, %v3493_v1  ;;  %v3363_v61 = vadd.f32 %v5846_v34, %v3318_v27  ;;  %4075 = vmatmul.msk.bf16.gmra.mxu1 %vm1214_vm2, %v6568_v38  ;;  %4119 = vmatmul.msk.bf16.gmra.mxu3 %vm1214_vm2, %v6569_v55  ;;  %v2736_v12 = vadd.f32 %v2668_v16, %v2558_v22 }
 0x3a0   : > { %v2670_v63 = vpop.f32.mrf.mxu2 }
 0x3a1   : > { %v3821_v54 = vpack.c.bf16 %v3780_v39, %v3780_v39  ;;  %v3408_v31 = vmul.f32 %v5855_v25, %v3363_v61 }
 0x3a2   : > { %v2987_v24 = vpop.f32.mrf.mxu3 }
 0x3a3   : > { %3863 = vst.msk [vmem:[%s5880_s10 + $0x58] sm:$0xf] %vm3840_vm8, %v3821_v54  ;;  %v3453_v10 = vadd.f32 %v5864_v62, %v3408_v31  ;;  %v3055_v45 = vadd.f32 %v2987_v24, %v2736_v12  ;;  %v6573_v54 = vld [vmem:[#allocation31_spill] sm:$0xff]  ;;  %v3686_v24 = vpop.permute.xlu0 %3685 }
 0x3a4   : > { %v2492_v17 = vpop.f32.mrf.mxu1  ;;  %v3251_v42 = vpop.f32.mrf.mxu0 }
 0x3a5   : > { %v3494_v43 = vmax.f32 %v3453_v10, 0.0  ;;  %v2559_v13 = vadd.f32 %v2492_v17, %v5700_v57  ;;  %v3319_v11 = vadd.f32 %v3251_v42, %v3055_v45 }
 0x3a7   : > { %v3781_v36 = vmul.f32 %v3671_v14, %v3494_v43  ;;  %v3364_v35 = vadd.f32 %v5846_v34, %v3319_v11  ;;  %4141 = vmatmul.msk.bf16.gmra.mxu0 %vm1214_vm2, %v6571_v20  ;;  %v2737_v5 = vadd.f32 %v2670_v63, %v2559_v13 }
 0x3a8   : > { %v2673_v32 = vpop.f32.mrf.mxu2 }
 0x3a9   : > { %v3822_v0 = vpack.c.bf16 %v3781_v36, %v3781_v36  ;;  %v3409_v51 = vmul.f32 %v5855_v25, %v3364_v35  ;;  %v6177_v25 = vld [vmem:[%s6292_s5] ss:$0 sm:$0xff] }
 0x3aa   : > { %v2989_v6 = vpop.f32.mrf.mxu3 }
 0x3ab   : > { %3864 = vst.msk [vmem:[%s5880_s10 + $0x5c] sm:$0xf] %vm3840_vm8, %v3822_v0  ;;  %v3454_v29 = vadd.f32 %v5864_v62, %v3409_v51  ;;  %v3056_v57 = vadd.f32 %v2989_v6, %v2737_v5  ;;  %v6183_v62 = vld [vmem:[%s6293_s6] ss:$0 sm:$0xff]  ;;  %v3691_v5 = vpop.permute.xlu1 %3690 }
 0x3ac   : > { %v2495_v48 = vpop.f32.mrf.mxu1  ;;  %v3253_v49 = vpop.f32.mrf.mxu0 }
 0x3ad   : > { %v3495_v37 = vmax.f32 %v3454_v29, 0.0  ;;  %v2560_v34 = vadd.f32 %v2495_v48, %v5711_v4  ;;  %v3320_v33 = vadd.f32 %v3253_v49, %v3056_v57 }
 0x3af   : > { %v3782_v26 = vmul.f32 %v3676_v40, %v3495_v37  ;;  %v3365_v18 = vadd.f32 %v6177_v25, %v3320_v33  ;;  %v2738_v4 = vadd.f32 %v2673_v32, %v2560_v34  ;;  %v6574_v32 = vld [vmem:[#allocation41_spill] sm:$0xff] }
 0x3b0   : > { %v2675_v21 = vpop.f32.mrf.mxu2 }
 0x3b1   : > { %v3823_v9 = vpack.c.bf16 %v3782_v26, %v3782_v26  ;;  %v3410_v30 = vmul.f32 %v6183_v62, %v3365_v18 }
 0x3b2   : > { %v2992_v41 = vpop.f32.mrf.mxu3 }
 0x3b3   : > { %3865 = vst.msk [vmem:[%s5880_s10 + $0x60] sm:$0xf] %vm3840_vm8, %v3823_v9  ;;  %v3455_v15 = vadd.f32 %v6191_v8, %v3410_v30  ;;  %v3057_v28 = vadd.f32 %v2992_v41, %v2738_v4  ;;  %v6575_v9 = vld [vmem:[#allocation36_spill] sm:$0xff]  ;;  %v3696_v41 = vpop.permute.xlu2 %3695 }
 0x3b4   : > { %v2497_v16 = vpop.f32.mrf.mxu1  ;;  %v3256_v46 = vpop.f32.mrf.mxu0 }
 0x3b5   : > { %v3496_v47 = vmax.f32 %v3455_v15, 0.0  ;;  %v2561_v60 = vadd.f32 %v2497_v16, %v6572_v23  ;;  %v3321_v7 = vadd.f32 %v3256_v46, %v3057_v28 }
 0x3b7   : > { %v3783_v59 = vmul.f32 %v3681_v56, %v3496_v47  ;;  %v3366_v52 = vadd.f32 %v6177_v25, %v3321_v7  ;;  %v2739_v44 = vadd.f32 %v2675_v21, %v2561_v60 }
 0x3b8   : > { %v2678_v1 = vpop.f32.mrf.mxu2 }
 0x3b9   : > { %v3824_v22 = vpack.c.bf16 %v3783_v59, %v3783_v59  ;;  %v3411_v27 = vmul.f32 %v6183_v62, %v3366_v52 }
 0x3ba   : > { %v2994_v39 = vpop.f32.mrf.mxu3 }
 0x3bb   : > { %3866 = vst.msk [vmem:[%s5880_s10 + $0x64] sm:$0xf] %vm3840_vm8, %v3824_v22  ;;  %v3456_v61 = vadd.f32 %v6191_v8, %v3411_v27  ;;  %v3058_v2 = vadd.f32 %v2994_v39, %v2739_v44  ;;  %v6576_v22 = vld [vmem:[#allocation33_spill] sm:$0xff]  ;;  %v3701_v39 = vpop.permute.xlu0 %3700 }
 0x3bc   : > { %v2500_v38 = vpop.f32.mrf.mxu1  ;;  %v3258_v55 = vpop.f32.mrf.mxu0 }
 0x3bd   : > { %v3497_v63 = vmax.f32 %v3456_v61, 0.0  ;;  %v2562_v31 = vadd.f32 %v2500_v38, %v6573_v54  ;;  %v3322_v12 = vadd.f32 %v3258_v55, %v3058_v2 }
 0x3bf   : > { %v3784_v10 = vmul.f32 %v3686_v24, %v3497_v63  ;;  %v3367_v45 = vadd.f32 %v6177_v25, %v3322_v12  ;;  %v2740_v13 = vadd.f32 %v2678_v1, %v2562_v31 }
 0x3c0   : > { %v2680_v17 = vpop.f32.mrf.mxu2 }
 0x3c1   : > { %v3825_v42 = vpack.c.bf16 %v3784_v10, %v3784_v10  ;;  %v3412_v43 = vmul.f32 %v6183_v62, %v3367_v45 }
 0x3c2   : > { %v2997_v11 = vpop.f32.mrf.mxu3 }
 0x3c3   : > { %3867 = vst.msk [vmem:[%s5880_s10 + $0x68] sm:$0xf] %vm3840_vm8, %v3825_v42  ;;  %v3457_v14 = vadd.f32 %v6191_v8, %v3412_v43  ;;  %v3059_v36 = vadd.f32 %v2997_v11, %v2740_v13  ;;  %v6577_v42 = vld [vmem:[#allocation42_spill] sm:$0xff]  ;;  %v3706_v11 = vpop.permute.xlu1 %3705 }
 0x3c4   : > { %v2502_v35 = vpop.f32.mrf.mxu1  ;;  %v3261_v19 = vpop.f32.mrf.mxu0 }
 0x3c5   : > { %v3498_v20 = vmax.f32 %v3457_v14, 0.0  ;;  %v2563_v0 = vadd.f32 %v2502_v35, %v6574_v32  ;;  %v3323_v51 = vadd.f32 %v3261_v19, %v3059_v36 }
 0x3c7   : > { %v3785_v6 = vmul.f32 %v3691_v5, %v3498_v20  ;;  %v3368_v29 = vadd.f32 %v6177_v25, %v3323_v51  ;;  %v2741_v37 = vadd.f32 %v2680_v17, %v2563_v0 }
 0x3c8   : > { %v2683_v57 = vpop.f32.mrf.mxu2 }
 0x3c9   : > { %v3826_v48 = vpack.c.bf16 %v3785_v6, %v3785_v6  ;;  %v3413_v49 = vmul.f32 %v6183_v62, %v3368_v29 }
 0x3ca   : > { %v2999_v34 = vpop.f32.mrf.mxu3 }
 0x3cb   : > { %3868 = vst.msk [vmem:[%s5880_s10 + $0x6c] sm:$0xf] %vm3840_vm8, %v3826_v48  ;;  %v3458_v33 = vadd.f32 %v6191_v8, %v3413_v49  ;;  %v3060_v40 = vadd.f32 %v2999_v34, %v2741_v37  ;;  %v6578_v48 = vld [vmem:[#allocation40_spill] sm:$0xff]  ;;  %v3711_v34 = vpop.permute.xlu2 %3710 }
 0x3cc   : > { %v2505_v26 = vpop.f32.mrf.mxu1  ;;  %v3263_v18 = vpop.f32.mrf.mxu0 }
 0x3cd   : > { %v3499_v21 = vmax.f32 %v3458_v33, 0.0  ;;  %v2564_v30 = vadd.f32 %v2505_v26, %v6575_v9  ;;  %v3324_v4 = vadd.f32 %v3263_v18, %v3060_v40 }
 0x3cf   : > { %v3786_v15 = vmul.f32 %v3696_v41, %v3499_v21  ;;  %v3369_v28 = vadd.f32 %v6177_v25, %v3324_v4  ;;  %v2742_v23 = vadd.f32 %v2683_v57, %v2564_v30 }
 0x3d0   : > { %v2685_v16 = vpop.f32.mrf.mxu2 }
 0x3d1   : > { %v3827_v46 = vpack.c.bf16 %v3786_v15, %v3786_v15  ;;  %v3414_v47 = vmul.f32 %v6183_v62, %v3369_v28 }
 0x3d2   : > { %v3002_v60 = vpop.f32.mrf.mxu3 }
 0x3d3   : > { %3869 = vst.msk [vmem:[%s5880_s10 + $0x70] sm:$0xf] %vm3840_vm8, %v3827_v46  ;;  %v3459_v7 = vadd.f32 %v6191_v8, %v3414_v47  ;;  %v3061_v56 = vadd.f32 %v3002_v60, %v2742_v23  ;;  %v3716_v23 = vpop.permute.xlu0 %3715 }
 0x3d4   : > { %v2507_v59 = vpop.f32.mrf.mxu1  ;;  %v3266_v52 = vpop.f32.mrf.mxu0 }
 0x3d5   : > { %v3500_v1 = vmax.f32 %v3459_v7, 0.0  ;;  %v2565_v27 = vadd.f32 %v2507_v59, %v6576_v22  ;;  %v3325_v44 = vadd.f32 %v3266_v52, %v3061_v56 }
 0x3d7   : > { %v3787_v61 = vmul.f32 %v3701_v39, %v3500_v1  ;;  %v3370_v2 = vadd.f32 %v6177_v25, %v3325_v44  ;;  %v2743_v54 = vadd.f32 %v2685_v16, %v2565_v27 }
 0x3d8   : > { %v2688_v38 = vpop.f32.mrf.mxu2 }
 0x3d9   : > { %v3828_v55 = vpack.c.bf16 %v3787_v61, %v3787_v61  ;;  %v3415_v63 = vmul.f32 %v6183_v62, %v3370_v2  ;;  %v6579_v2 = vld [vmem:[#allocation35_spill] sm:$0xff] }
 0x3da   : > { %v3004_v31 = vpop.f32.mrf.mxu3 }
 0x3db   : > { %3870 = vst.msk [vmem:[%s5880_s10 + $0x74] sm:$0xf] %vm3840_vm8, %v3828_v55  ;;  %v3460_v12 = vadd.f32 %v6191_v8, %v3415_v63  ;;  %v3062_v24 = vadd.f32 %v3004_v31, %v2743_v54  ;;  %v3721_v63 = vpop.permute.xlu1 %3720 }
 0x3dc   : > { %v2510_v10 = vpop.f32.mrf.mxu1  ;;  %v3268_v45 = vpop.f32.mrf.mxu0 }
 0x3dd   : > { %v3501_v17 = vmax.f32 %v3460_v12, 0.0  ;;  %v2566_v43 = vadd.f32 %v2510_v10, %v6577_v42  ;;  %v3326_v13 = vadd.f32 %v3268_v45, %v3062_v24 }
 0x3df   : > { %v3788_v14 = vmul.f32 %v3706_v11, %v3501_v17  ;;  %v3371_v36 = vadd.f32 %v6177_v25, %v3326_v13  ;;  %v2744_v32 = vadd.f32 %v2688_v38, %v2566_v43 }
 0x3e0   : > { %v2690_v35 = vpop.f32.mrf.mxu2 }
 0x3e1   : > { %v3829_v19 = vpack.c.bf16 %v3788_v14, %v3788_v14  ;;  %v3416_v20 = vmul.f32 %v6183_v62, %v3371_v36 }
 0x3e2   : > { %v3007_v0 = vpop.f32.mrf.mxu3 }
 0x3e3   : > { %3871 = vst.msk [vmem:[%s5880_s10 + $0x78] sm:$0xf] %vm3840_vm8, %v3829_v19  ;;  %v3461_v51 = vadd.f32 %v6191_v8, %v3416_v20  ;;  %v3063_v5 = vadd.f32 %v3007_v0, %v2744_v32  ;;  %v3726_v19 = vpop.permute.xlu2 %3725 }
 0x3e4   : > { %v2512_v6 = vpop.f32.mrf.mxu1  ;;  %v3271_v29 = vpop.f32.mrf.mxu0 }
 0x3e5   : > { %v3502_v57 = vmax.f32 %v3461_v51, 0.0  ;;  %v2567_v49 = vadd.f32 %v2512_v6, %v6578_v48  ;;  %v3327_v37 = vadd.f32 %v3271_v29, %v3063_v5 }
 0x3e7   : > { %v3789_v33 = vmul.f32 %v3711_v34, %v3502_v57  ;;  %v3372_v40 = vadd.f32 %v6177_v25, %v3327_v37  ;;  %v2745_v9 = vadd.f32 %v2690_v35, %v2567_v49  ;;  %v6580_v34 = vld [vmem:[#allocation44_spill] sm:$0xff] }
 0x3e8   : > { %v2693_v26 = vpop.f32.mrf.mxu2 }
 0x3e9   : > { %v3830_v18 = vpack.c.bf16 %v3789_v33, %v3789_v33  ;;  %v3417_v21 = vmul.f32 %v6183_v62, %v3372_v40 }
 0x3ea   : > { %v3009_v30 = vpop.f32.mrf.mxu3 }
 0x3eb   : > { %3872 = vst.msk [vmem:[%s5880_s10 + $0x7c] sm:$0xf] %vm3840_vm8, %v3830_v18  ;;  %v3462_v4 = vadd.f32 %v6191_v8, %v3417_v21  ;;  %v3064_v41 = vadd.f32 %v3009_v30, %v2745_v9 }
 0x3ec   : > { %v2515_v15 = vpop.f32.mrf.mxu1  ;;  %v3273_v28 = vpop.f32.mrf.mxu0 }
 0x3ed   : > { %v3503_v16 = vmax.f32 %v3462_v4, 0.0  ;;  %v2568_v46 = vadd.f32 %v2515_v15, %v5780_v53  ;;  %v3328_v47 = vadd.f32 %v3273_v28, %v3064_v41 }
 0x3ef   : > { %v3790_v60 = vmul.f32 %v3716_v23, %v3503_v16  ;;  %v3373_v7 = vadd.f32 %v6177_v25, %v3328_v47  ;;  %v2746_v1 = vadd.f32 %v2693_v26, %v2568_v46  ;;  %v3731_v26 = vpop.permute.xlu0 %3730 }
 0x3f0   : > { %v2695_v56 = vpop.f32.mrf.mxu2 }
 0x3f1   : > { %v3831_v59 = vpack.c.bf16 %v3790_v60, %v3790_v60  ;;  %v3418_v52 = vmul.f32 %v6183_v62, %v3373_v7 }
 0x3f2   : > { %v3012_v22 = vpop.f32.mrf.mxu3 }
 0x3f3   : > { %3873 = vst.msk [vmem:[%s5880_s10 + $0x80] sm:$0xf] %vm3840_vm8, %v3831_v59  ;;  %v3463_v27 = vadd.f32 %v6191_v8, %v3418_v52  ;;  %v3065_v44 = vadd.f32 %v3012_v22, %v2746_v1 }
 0x3f4   : > { %v2517_v39 = vpop.f32.mrf.mxu1  ;;  %v3276_v61 = vpop.f32.mrf.mxu0 }
 0x3f5   : > { %v3504_v53 = vmax.f32 %v3463_v27, 0.0  ;;  %v2569_v38 = vadd.f32 %v2517_v39, %v6579_v2  ;;  %v3329_v55 = vadd.f32 %v3276_v61, %v3065_v44 }
 0x3f7   : > { %v3791_v54 = vmul.f32 %v3721_v63, %v3504_v53  ;;  %v3374_v31 = vadd.f32 %v6177_v25, %v3329_v55  ;;  %v2747_v45 = vadd.f32 %v2695_v56, %v2569_v38  ;;  %v3736_v56 = vpop.permute.xlu1 %3735 }
 0x3f8   : > { %v2698_v12 = vpop.f32.mrf.mxu2 }
 0x3f9   : > { %v3832_v24 = vpack.c.bf16 %v3791_v54, %v3791_v54  ;;  %v3419_v10 = vmul.f32 %v6183_v62, %v3374_v31  ;;  %v3741_v54 = vpop.permute.xlu2 %3740 }
 0x3fa   : > { %v3014_v17 = vpop.f32.mrf.mxu3 }
 0x3fb   : > { %3874 = vst.msk [vmem:[%s5880_s10 + $0x84] sm:$0xf] %vm3840_vm8, %v3832_v24  ;;  %v3464_v42 = vadd.f32 %v6191_v8, %v3419_v10  ;;  %v3066_v43 = vadd.f32 %v3014_v17, %v2747_v45 }
 0x3fc   : > { %v2520_v13 = vpop.f32.mrf.mxu1  ;;  %v3278_v11 = vpop.f32.mrf.mxu0 }
 0x3fd   : > { %v3505_v14 = vmax.f32 %v3464_v42, 0.0  ;;  %v2570_v36 = vadd.f32 %v2520_v13, %v5797_v50  ;;  %v3330_v35 = vadd.f32 %v3278_v11, %v3066_v43 }
 0x3ff   : > { %v3792_v20 = vmul.f32 %v3726_v19, %v3505_v14  ;;  %v3375_v32 = vadd.f32 %v6177_v25, %v3330_v35  ;;  %v2748_v6 = vadd.f32 %v2698_v12, %v2570_v36  ;;  %v6581_v36 = vld [vmem:[#allocation39_spill] sm:$0xff] }
 0x400   : > { %v2700_v0 = vpop.f32.mrf.mxu2 }
 0x401   : > { %v3833_v51 = vpack.c.bf16 %v3792_v20, %v3792_v20  ;;  %v3420_v5 = vmul.f32 %v6183_v62, %v3375_v32  ;;  %v3746_v20 = vpop.permute.xlu0 %3745 }
 0x402   : > { %v3017_v29 = vpop.f32.mrf.mxu3 }
 0x403   : > { %3875 = vst.msk [vmem:[%s5880_s10 + $0x88] sm:$0xf] %vm3840_vm8, %v3833_v51  ;;  %v3465_v57 = vadd.f32 %v6191_v8, %v3420_v5  ;;  %v3067_v48 = vadd.f32 %v3017_v29, %v2748_v6 }
 0x404   : > { %v2522_v49 = vpop.f32.mrf.mxu1  ;;  %v3281_v37 = vpop.f32.mrf.mxu0 }
 0x405   : > { %v3506_v50 = vmax.f32 %v3465_v57, 0.0  ;;  %v2571_v33 = vadd.f32 %v2522_v49, %v6580_v34  ;;  %v3331_v40 = vadd.f32 %v3281_v37, %v3067_v48 }
 0x407   : > { %v3793_v18 = vmul.f32 %v3731_v26, %v3506_v50  ;;  %v3376_v21 = vadd.f32 %v6177_v25, %v3331_v40  ;;  %v2749_v41 = vadd.f32 %v2700_v0, %v2571_v33  ;;  %v3751_v40 = vpop.permute.xlu1 %3750 }
 0x408   : > { %v2703_v9 = vpop.f32.mrf.mxu2 }
 0x409   : > { %v3834_v30 = vpack.c.bf16 %v3793_v18, %v3793_v18  ;;  %v3421_v4 = vmul.f32 %v6183_v62, %v3376_v21 }
 0x40a   : > { %v3019_v15 = vpop.f32.mrf.mxu3 }
 0x40b   : > { %3876 = vst.msk [vmem:[%s5880_s10 + $0x8c] sm:$0xf] %vm3840_vm8, %v3834_v30  ;;  %v3466_v28 = vadd.f32 %v6191_v8, %v3421_v4  ;;  %v3068_v16 = vadd.f32 %v3019_v15, %v2749_v41 }
 0x40c   : > { %v2525_v46 = vpop.f32.mrf.mxu1  ;;  %v3283_v47 = vpop.f32.mrf.mxu0 }
 0x40d   : > { %v3507_v23 = vmax.f32 %v3466_v28, 0.0  ;;  %v2572_v60 = vadd.f32 %v2525_v46, %v5814_v3  ;;  %v3332_v7 = vadd.f32 %v3283_v47, %v3068_v16  ;;  %v3756_v28 = vpop.permute.xlu2 %3755 }
 0x40f   : > { %v3794_v59 = vmul.f32 %v3736_v56, %v3507_v23  ;;  %v3377_v52 = vadd.f32 %v6177_v25, %v3332_v7  ;;  %v2750_v44 = vadd.f32 %v2703_v9, %v2572_v60 }
 0x410   : > { %v2705_v1 = vpop.f32.mrf.mxu2 }
 0x411   : > { %v3835_v22 = vpack.c.bf16 %v3794_v59, %v3794_v59  ;;  %v3422_v27 = vmul.f32 %v6183_v62, %v3377_v52 }
 0x412   : > { %v3022_v39 = vpop.f32.mrf.mxu3 }
 0x413   : > { %3877 = vst.msk [vmem:[%s5880_s10 + $0x90] sm:$0xf] %vm3840_vm8, %v3835_v22  ;;  %v3467_v61 = vadd.f32 %v6191_v8, %v3422_v27  ;;  %v3069_v53 = vadd.f32 %v3022_v39, %v2750_v44 }
 0x414   : > { %v2527_v2 = vpop.f32.mrf.mxu1  ;;  %v3286_v38 = vpop.f32.mrf.mxu0 }
 0x415   : > { %v3508_v3 = vmax.f32 %v3467_v61, 0.0  ;;  %v2573_v55 = vadd.f32 %v2527_v2, %v5822_v58  ;;  %v3333_v63 = vadd.f32 %v3286_v38, %v3069_v53 }
 0x417   : > { %v3795_v31 = vmul.f32 %v3741_v54, %v3508_v3  ;;  %v3378_v12 = vadd.f32 %v6177_v25, %v3333_v63  ;;  %v2751_v17 = vadd.f32 %v2705_v1, %v2573_v55 }
 0x418   : > { %v2708_v24 = vpop.f32.mrf.mxu2 }
 0x419   : > { %v3836_v10 = vpack.c.bf16 %v3795_v31, %v3795_v31  ;;  %v3423_v45 = vmul.f32 %v6183_v62, %v3378_v12 }
 0x41a   : > { %v3024_v42 = vpop.f32.mrf.mxu3 }
 0x41b   : > { %3878 = vst.msk [vmem:[%s5880_s10 + $0x94] sm:$0xf] %vm3840_vm8, %v3836_v10  ;;  %v3468_v43 = vadd.f32 %v6191_v8, %v3423_v45  ;;  %v3070_v13 = vadd.f32 %v3024_v42, %v2751_v17 }
 0x41c   : > { %v2530_v11 = vpop.f32.mrf.mxu1  ;;  %v3288_v14 = vpop.f32.mrf.mxu0 }
 0x41d   : > { %v3509_v58 = vmax.f32 %v3468_v43, 0.0  ;;  %v2574_v35 = vadd.f32 %v2530_v11, %v6581_v36  ;;  %v3334_v19 = vadd.f32 %v3288_v14, %v3070_v13 }
 0x41f   : > { %v3796_v32 = vmul.f32 %v3746_v20, %v3509_v58  ;;  %v3379_v0 = vadd.f32 %v6177_v25, %v3334_v19  ;;  %v2752_v29 = vadd.f32 %v2708_v24, %v2574_v35 }
 0x420   : > { %v2710_v51 = vpop.f32.mrf.mxu2 }
 0x421   : > { %v3837_v5 = vpack.c.bf16 %v3796_v32, %v3796_v32  ;;  %v3424_v6 = vmul.f32 %v6183_v62, %v3379_v0 }
 0x422   : > { %v3027_v57 = vpop.f32.mrf.mxu3 }
 0x423   : > { %3879 = vst.msk [vmem:[%s5880_s10 + $0x98] sm:$0xf] %vm3840_vm8, %v3837_v5  ;;  %v3469_v48 = vadd.f32 %v6191_v8, %v3424_v6  ;;  %v3071_v49 = vadd.f32 %v3027_v57, %v2752_v29 }
 0x424   : > { %v2532_v37 = vpop.f32.mrf.mxu1  ;;  %v3291_v50 = vpop.f32.mrf.mxu0 }
 0x425   : > { %v3510_v34 = vmax.f32 %v3469_v48, 0.0  ;;  %v3335_v33 = vadd.f32 %v3291_v50, %v3071_v49 }
 0x427   : > { %v3797_v26 = vmul.f32 %v3751_v40, %v3510_v34  ;;  %v3380_v18 = vadd.f32 %v6177_v25, %v3335_v33 }
 0x429   : > { %v3838_v21 = vpack.c.bf16 %v3797_v26, %v3797_v26  ;;  %v3425_v9 = vmul.f32 %v6183_v62, %v3380_v18 }
 0x42a   : > { %v3029_v30 = vpop.f32.mrf.mxu3 }
 0x42b   : > { %3880 = vst.msk [vmem:[%s5880_s10 + $0x9c] sm:$0xf] %vm3840_vm8, %v3838_v21  ;;  %v3470_v4 = vadd.f32 %v6191_v8, %v3425_v9 }
 0x42c   : > { %v3293_v41 = vpop.f32.mrf.mxu0 }
 0x42d   : > { %v3511_v15 = vmax.f32 %v3470_v4, 0.0 }
 0x42f   : > { %v3798_v16 = vmul.f32 %v3756_v28, %v3511_v15 }
 0x431   : > { %v3839_v46 = vpack.c.bf16 %v3798_v16, %v3798_v16 }
 0x433   : > { %3882 = vst.msk [vmem:[%s5880_s10 + $0xa0] sm:$0x3] %vm3881_vm9, %v3839_v46 }
 0x434 PF: > { %s19_s30 = sadd.s32 1, %s4291_s30  }
 0x435   : > { %p16_p4 = scmp.ge.s32.totalorder %s19_s30, 4  }
 0x437   :  { %18 = sbr.rel (!%p16_p4) target bundleno = 1 (0x1), region = 94 }

</bundles_post_ra>
